<compile_context>
chip_gen: v7x
topology: tpu7x:2x2x1
jax: 0.10.0
libtpu: 0.0.40
codegen_flags: <defaults>
</compile_context>

<pallas_src>
import functools

import jax
import jax.numpy as jnp
import numpy as np
from jax.experimental import pallas as pl
from jax.experimental.pallas import tpu as pltpu

OBS_DIM = 16
ACTION_SIZE = 4
HIDDEN_SIZES = (64, 64)      # MlpModel default [64, 64]
LSTM_SIZE = 64
OUT_HIDDEN = 256             # output_mlp hidden_sizes=[256]


def recurrent_q_kernel(obs_ref, act_ref, h0_ref, c0_ref,
                       w0_ref, b0_ref, w1_ref, b1_ref, w2_ref, b2_ref,
                       wii_ref, wif_ref, wig_ref, wio_ref,
                       bli_ref, blf_ref, blg_ref, blo_ref,
                       whi_ref, whf_ref, whg_ref, who_ref,
                       w3x_ref, w3a_ref, b3_ref, w4_ref, b4_ref,
                       q_ref, hN_ref, cN_ref,
                       xpi_sc, xpf_sc, xpg_sc, xpo_sc, hs_sc,
                       *, seq_len, batch_pad):
    f32 = jnp.float32

    # ---- Phase 1 (batched over T*B_pad rows): feature MLP + LSTM input proj ----
    # TODO(synk): could feed bf16 weights/activations to the MXU here; kept f32
    # to match the PyTorch module's numerics exactly.
    x = obs_ref[...]                                                        # (TB, OBS)
    x = jnp.maximum(
        jnp.dot(x, w0_ref[...], preferred_element_type=f32) + b0_ref[...], 0.0)
    x = jnp.maximum(
        jnp.dot(x, w1_ref[...], preferred_element_type=f32) + b1_ref[...], 0.0)
    x = jnp.dot(x, w2_ref[...], preferred_element_type=f32) + b2_ref[...]   # (TB, 2H)

    # Per-gate input projections (PyTorch gate order i, f, g, o), precomputed
    # for every timestep so the recurrence only needs h @ W_hh.
    xpi_sc[...] = jnp.dot(x, wii_ref[...], preferred_element_type=f32) + bli_ref[...]
    xpf_sc[...] = jnp.dot(x, wif_ref[...], preferred_element_type=f32) + blf_ref[...]
    xpg_sc[...] = jnp.dot(x, wig_ref[...], preferred_element_type=f32) + blg_ref[...]
    xpo_sc[...] = jnp.dot(x, wio_ref[...], preferred_element_type=f32) + blo_ref[...]

    # ---- Phase 2 (serial over T): h @ W_hh + elementwise LSTM cell update ----
    def step(t, carry):
        h, c = carry
        r0 = pl.multiple_of(t * batch_pad, batch_pad)   # 8-sublane-aligned row block
        i_g = jax.nn.sigmoid(xpi_sc[pl.ds(r0, batch_pad), :]
                             + jnp.dot(h, whi_ref[...], preferred_element_type=f32))
        f_g = jax.nn.sigmoid(xpf_sc[pl.ds(r0, batch_pad), :]
                             + jnp.dot(h, whf_ref[...], preferred_element_type=f32))
        g_g = jnp.tanh(xpg_sc[pl.ds(r0, batch_pad), :]
                       + jnp.dot(h, whg_ref[...], preferred_element_type=f32))
        o_g = jax.nn.sigmoid(xpo_sc[pl.ds(r0, batch_pad), :]
                             + jnp.dot(h, who_ref[...], preferred_element_type=f32))
        c_new = f_g * c + i_g * g_g
        h_new = o_g * jnp.tanh(c_new)
        hs_sc[pl.ds(r0, batch_pad), :] = h_new
        return h_new, c_new

    h_fin, c_fin = jax.lax.fori_loop(
        0, seq_len, step, (h0_ref[...], c0_ref[...]), unroll=True)
    hN_ref[...] = h_fin
    cN_ref[...] = c_fin

    # ---- Phase 3 (batched over T*B_pad rows): Q-head on concat(h, action) ----
    y = jnp.maximum(
        jnp.dot(hs_sc[...], w3x_ref[...], preferred_element_type=f32)
        + jnp.dot(act_ref[...], w3a_ref[...], preferred_element_type=f32)
        + b3_ref[...], 0.0)                                                 # (TB, 256)
    q_ref[...] = jnp.dot(y, w4_ref[...], preferred_element_type=f32) + b4_ref[...]


def recurrent_q_forward(params, observation, action, h0, c0):
    """observation: (T,B,OBS_DIM), action: (T,B,ACTION), h0/c0: (B,LSTM_SIZE).
    Returns (q: (T,B), (h: (1,B,H), c: (1,B,H)))."""
    T, B, obs_dim = observation.shape
    A = action.shape[-1]
    H = LSTM_SIZE

    # Pad batch to a multiple of 8 sublanes (padded rows are independent garbage
    # that never touches the real rows and is sliced off afterwards).
    B_pad = max(8, -(-B // 8) * 8)
    pad = B_pad - B
    if pad:
        observation = jnp.pad(observation, ((0, 0), (0, pad), (0, 0)))
        action = jnp.pad(action, ((0, 0), (0, pad), (0, 0)))
        h0 = jnp.pad(h0, ((0, pad), (0, 0)))
        c0 = jnp.pad(c0, ((0, pad), (0, 0)))
    TB = T * B_pad
    obs_flat = observation.reshape(TB, obs_dim)
    act_flat = action.reshape(TB, A)

    # Split LSTM weights per gate (columns are independent -> exact).
    wih, whh, bl = params['wih'], params['whh'], params['bl']
    gate_w_ih = [wih[:, g * H:(g + 1) * H] for g in range(4)]
    gate_b = [bl[:, g * H:(g + 1) * H] for g in range(4)]
    gate_w_hh = [whh[:, g * H:(g + 1) * H] for g in range(4)]

    args = [obs_flat, act_flat, h0, c0,
            params['w0'], params['b0'], params['w1'], params['b1'],
            params['w2'], params['b2'],
            *gate_w_ih, *gate_b, *gate_w_hh,
            params['w3x'], params['w3a'], params['b3'],
            params['w4'], params['b4']]

    in_specs = [pl.BlockSpec(a.shape, lambda i: (0, 0)) for a in args]
    out_shapes = (
        jax.ShapeDtypeStruct((TB, 1), jnp.float32),    # q (flat, pre-squeeze)
        jax.ShapeDtypeStruct((B_pad, H), jnp.float32),  # h_N
        jax.ShapeDtypeStruct((B_pad, H), jnp.float32),  # c_N
    )
    out_specs = (
        pl.BlockSpec((TB, 1), lambda i: (0, 0)),
        pl.BlockSpec((B_pad, H), lambda i: (0, 0)),
        pl.BlockSpec((B_pad, H), lambda i: (0, 0)),
    )

    kernel = functools.partial(recurrent_q_kernel, seq_len=T, batch_pad=B_pad)

    q_flat, hN, cN = pl.pallas_call(
        kernel,
        out_shape=out_shapes,
        grid=(1,),
        in_specs=in_specs,
        out_specs=out_specs,
        scratch_shapes=[pltpu.VMEM((TB, H), jnp.float32) for _ in range(5)],
        compiler_params=pltpu.CompilerParams(
            dimension_semantics=("arbitrary",)),
    )(*args)

    # restore_leading_dims with lead_dim=2 -> (T, B); LSTM state (num_layers=1, B, H)
    q = q_flat.reshape(T, B_pad)[:, :B]
    return q, (hN[:B][None], cN[:B][None])


def init_params(key):
    """Deterministic PyTorch-style uniform(-1/sqrt(fan_in), 1/sqrt(fan_in)) init."""
    def linear(k, fan_in, fan_out):
        kw, kb = jax.random.split(k)
        bound = 1.0 / np.sqrt(fan_in)
        w = jax.random.uniform(kw, (fan_in, fan_out), jnp.float32, -bound, bound)
        b = jax.random.uniform(kb, (1, fan_out), jnp.float32, -bound, bound)
        return w, b

    keys = jax.random.split(key, 6)
    H = LSTM_SIZE
    w0, b0 = linear(keys[0], OBS_DIM, HIDDEN_SIZES[0])
    w1, b1 = linear(keys[1], HIDDEN_SIZES[0], HIDDEN_SIZES[1])
    w2, b2 = linear(keys[2], HIDDEN_SIZES[1], 2 * H)

    bound = 1.0 / np.sqrt(H)
    kih, khh, kbih, kbhh = jax.random.split(keys[3], 4)
    wih = jax.random.uniform(kih, (2 * H, 4 * H), jnp.float32, -bound, bound)
    whh = jax.random.uniform(khh, (H, 4 * H), jnp.float32, -bound, bound)
    b_ih = jax.random.uniform(kbih, (1, 4 * H), jnp.float32, -bound, bound)
    b_hh = jax.random.uniform(kbhh, (1, 4 * H), jnp.float32, -bound, bound)
    bl = b_ih + b_hh

    fan3 = H + ACTION_SIZE
    kw3, kb3 = jax.random.split(keys[4])
    bound3 = 1.0 / np.sqrt(fan3)
    w3 = jax.random.uniform(kw3, (fan3, OUT_HIDDEN), jnp.float32, -bound3, bound3)
    b3 = jax.random.uniform(kb3, (1, OUT_HIDDEN), jnp.float32, -bound3, bound3)
    w3x, w3a = w3[:H], w3[H:]          # split form of concat((x, action)) @ w3
    w4, b4 = linear(keys[5], OUT_HIDDEN, 1)

    return dict(w0=w0, b0=b0, w1=w1, b1=b1, w2=w2, b2=b2,
                wih=wih, whh=whh, bl=bl,
                w3x=w3x, w3a=w3a, b3=b3, w4=w4, b4=b4)


def reference_forward(params, obs, act, h0, c0):
    """Pure-JAX reference replicating the PyTorch forward semantics."""
    T, B, _ = obs.shape
    H = LSTM_SIZE
    x = obs.reshape(T * B, -1)
    x = jax.nn.relu(x @ params['w0'] + params['b0'])
    x = jax.nn.relu(x @ params['w1'] + params['b1'])
    x = x @ params['w2'] + params['b2']
    x = x.reshape(T, B, -1)

    def step(carry, xt):
        h, c = carry
        gates = xt @ params['wih'] + h @ params['whh'] + params['bl']
        i = jax.nn.sigmoid(gates[:, :H])
        f = jax.nn.sigmoid(gates[:, H:2 * H])
        g = jnp.tanh(gates[:, 2 * H:3 * H])
        o = jax.nn.sigmoid(gates[:, 3 * H:])
        c = f * c + i * g
        h = o * jnp.tanh(c)
        return (h, c), h

    (hN, cN), hs = jax.lax.scan(step, (h0, c0), x)
    hs = hs.reshape(T * B, H)
    a = act.reshape(T * B, -1)
    y = jax.nn.relu(hs @ params['w3x'] + a @ params['w3a'] + params['b3'])
    q = (y @ params['w4'] + params['b4']).reshape(T, B)
    return q, hN, cN


if __name__ == "__main__":
    # TODO(synk): the `action is None` branch (returns zeros) and the rlpyt
    # namedarraytuple wrapper are handled outside the kernel / not modeled.
    key = jax.random.PRNGKey(0)
    k_params, k_obs, k_act = jax.random.split(key, 3)

    T, B = 8, 4
    params = init_params(k_params)
    observation = jax.random.normal(k_obs, (T, B, OBS_DIM), jnp.float32)
    action = jax.random.normal(k_act, (T, B, ACTION_SIZE), jnp.float32)
    h0 = jnp.zeros((B, LSTM_SIZE), jnp.float32)   # rnn_state=None -> zeros
    c0 = jnp.zeros((B, LSTM_SIZE), jnp.float32)

    q, (hN, cN) = recurrent_q_forward(params, observation, action, h0, c0)
    jax.block_until_ready((q, hN, cN))

    q_ref, h_ref, c_ref = reference_forward(params, observation, action, h0, c0)
    np.testing.assert_allclose(np.asarray(q), np.asarray(q_ref), rtol=1e-4, atol=1e-4)
    np.testing.assert_allclose(np.asarray(hN[0]), np.asarray(h_ref), rtol=1e-4, atol=1e-4)
    np.testing.assert_allclose(np.asarray(cN[0]), np.asarray(c_ref), rtol=1e-4, atol=1e-4)

    print("KERNEL_OK")
</pallas_src>

<mosaic_0001>
module attributes {stable_mosaic.version = 11 : i64} {
  func.func @recurrent_q_kernel(%arg0: i32, %arg1: memref<64x16xf32, #tpu.memory_space<vmem>>, %arg2: memref<64x4xf32, #tpu.memory_space<vmem>>, %arg3: memref<8x64xf32, #tpu.memory_space<vmem>>, %arg4: memref<8x64xf32, #tpu.memory_space<vmem>>, %arg5: memref<16x64xf32, #tpu.memory_space<vmem>>, %arg6: memref<1x64xf32, #tpu.memory_space<vmem>>, %arg7: memref<64x64xf32, #tpu.memory_space<vmem>>, %arg8: memref<1x64xf32, #tpu.memory_space<vmem>>, %arg9: memref<64x128xf32, #tpu.memory_space<vmem>>, %arg10: memref<1x128xf32, #tpu.memory_space<vmem>>, %arg11: memref<128x64xf32, #tpu.memory_space<vmem>>, %arg12: memref<128x64xf32, #tpu.memory_space<vmem>>, %arg13: memref<128x64xf32, #tpu.memory_space<vmem>>, %arg14: memref<128x64xf32, #tpu.memory_space<vmem>>, %arg15: memref<1x64xf32, #tpu.memory_space<vmem>>, %arg16: memref<1x64xf32, #tpu.memory_space<vmem>>, %arg17: memref<1x64xf32, #tpu.memory_space<vmem>>, %arg18: memref<1x64xf32, #tpu.memory_space<vmem>>, %arg19: memref<64x64xf32, #tpu.memory_space<vmem>>, %arg20: memref<64x64xf32, #tpu.memory_space<vmem>>, %arg21: memref<64x64xf32, #tpu.memory_space<vmem>>, %arg22: memref<64x64xf32, #tpu.memory_space<vmem>>, %arg23: memref<64x256xf32, #tpu.memory_space<vmem>>, %arg24: memref<4x256xf32, #tpu.memory_space<vmem>>, %arg25: memref<1x256xf32, #tpu.memory_space<vmem>>, %arg26: memref<256x1xf32, #tpu.memory_space<vmem>>, %arg27: memref<1x1xf32, #tpu.memory_space<vmem>>, %arg28: memref<64x1xf32, #tpu.memory_space<vmem>>, %arg29: memref<8x64xf32, #tpu.memory_space<vmem>>, %arg30: memref<8x64xf32, #tpu.memory_space<vmem>>, %arg31: memref<64x64xf32, #tpu.memory_space<vmem>>, %arg32: memref<64x64xf32, #tpu.memory_space<vmem>>, %arg33: memref<64x64xf32, #tpu.memory_space<vmem>>, %arg34: memref<64x64xf32, #tpu.memory_space<vmem>>, %arg35: memref<64x64xf32, #tpu.memory_space<vmem>>) attributes {dimension_semantics = [#tpu.dimension_semantics<arbitrary>], iteration_bounds = array<i64: 1>, scalar_prefetch = 0 : i64, scratch_operands = 5 : i64, tpu.core_type = #tpu.core_type<tc>, window_params = [{pipeline_mode = #tpu.pipeline_mode<synchronous>, transform_indices = @transform_0, window_bounds = array<i64: 64, 16>}, {pipeline_mode = #tpu.pipeline_mode<synchronous>, transform_indices = @transform_1, window_bounds = array<i64: 64, 4>}, {pipeline_mode = #tpu.pipeline_mode<synchronous>, transform_indices = @transform_2, window_bounds = array<i64: 8, 64>}, {pipeline_mode = #tpu.pipeline_mode<synchronous>, transform_indices = @transform_3, window_bounds = array<i64: 8, 64>}, {pipeline_mode = #tpu.pipeline_mode<synchronous>, transform_indices = @transform_4, window_bounds = array<i64: 16, 64>}, {pipeline_mode = #tpu.pipeline_mode<synchronous>, transform_indices = @transform_5, window_bounds = array<i64: 1, 64>}, {pipeline_mode = #tpu.pipeline_mode<synchronous>, transform_indices = @transform_6, window_bounds = array<i64: 64, 64>}, {pipeline_mode = #tpu.pipeline_mode<synchronous>, transform_indices = @transform_7, window_bounds = array<i64: 1, 64>}, {pipeline_mode = #tpu.pipeline_mode<synchronous>, transform_indices = @transform_8, window_bounds = array<i64: 64, 128>}, {pipeline_mode = #tpu.pipeline_mode<synchronous>, transform_indices = @transform_9, window_bounds = array<i64: 1, 128>}, {pipeline_mode = #tpu.pipeline_mode<synchronous>, transform_indices = @transform_10, window_bounds = array<i64: 128, 64>}, {pipeline_mode = #tpu.pipeline_mode<synchronous>, transform_indices = @transform_11, window_bounds = array<i64: 128, 64>}, {pipeline_mode = #tpu.pipeline_mode<synchronous>, transform_indices = @transform_12, window_bounds = array<i64: 128, 64>}, {pipeline_mode = #tpu.pipeline_mode<synchronous>, transform_indices = @transform_13, window_bounds = array<i64: 128, 64>}, {pipeline_mode = #tpu.pipeline_mode<synchronous>, transform_indices = @transform_14, window_bounds = array<i64: 1, 64>}, {pipeline_mode = #tpu.pipeline_mode<synchronous>, transform_indices = @transform_15, window_bounds = array<i64: 1, 64>}, {pipeline_mode = #tpu.pipeline_mode<synchronous>, transform_indices = @transform_16, window_bounds = array<i64: 1, 64>}, {pipeline_mode = #tpu.pipeline_mode<synchronous>, transform_indices = @transform_17, window_bounds = array<i64: 1, 64>}, {pipeline_mode = #tpu.pipeline_mode<synchronous>, transform_indices = @transform_18, window_bounds = array<i64: 64, 64>}, {pipeline_mode = #tpu.pipeline_mode<synchronous>, transform_indices = @transform_19, window_bounds = array<i64: 64, 64>}, {pipeline_mode = #tpu.pipeline_mode<synchronous>, transform_indices = @transform_20, window_bounds = array<i64: 64, 64>}, {pipeline_mode = #tpu.pipeline_mode<synchronous>, transform_indices = @transform_21, window_bounds = array<i64: 64, 64>}, {pipeline_mode = #tpu.pipeline_mode<synchronous>, transform_indices = @transform_22, window_bounds = array<i64: 64, 256>}, {pipeline_mode = #tpu.pipeline_mode<synchronous>, transform_indices = @transform_23, window_bounds = array<i64: 4, 256>}, {pipeline_mode = #tpu.pipeline_mode<synchronous>, transform_indices = @transform_24, window_bounds = array<i64: 1, 256>}, {pipeline_mode = #tpu.pipeline_mode<synchronous>, transform_indices = @transform_25, window_bounds = array<i64: 256, 1>}, {pipeline_mode = #tpu.pipeline_mode<synchronous>, transform_indices = @transform_26, window_bounds = array<i64: 1, 1>}, {pipeline_mode = #tpu.pipeline_mode<synchronous>, transform_indices = @transform_27, window_bounds = array<i64: 64, 1>}, {pipeline_mode = #tpu.pipeline_mode<synchronous>, transform_indices = @transform_28, window_bounds = array<i64: 8, 64>}, {pipeline_mode = #tpu.pipeline_mode<synchronous>, transform_indices = @transform_29, window_bounds = array<i64: 8, 64>}]} {
    %c0 = arith.constant 0 : index
    %c0_0 = arith.constant 0 : index
    %0 = vector.load %arg1[%c0, %c0_0] : memref<64x16xf32, #tpu.memory_space<vmem>>, vector<64x16xf32>
    %c0_1 = arith.constant 0 : index
    %c0_2 = arith.constant 0 : index
    %1 = vector.load %arg5[%c0_1, %c0_2] : memref<16x64xf32, #tpu.memory_space<vmem>>, vector<16x64xf32>
    %cst = arith.constant dense<0.000000e+00> : vector<64x64xf32>
    %2 = tpu.matmul %0, %1, %cst {dimension_numbers = #tpu.dot_dimension_numbers<[1], [0], [0], [1], [0, 0, 1, 1], [], []>} : vector<64x16xf32>, vector<16x64xf32>, vector<64x64xf32> -> vector<64x64xf32>
    %c0_3 = arith.constant 0 : index
    %c0_4 = arith.constant 0 : index
    %3 = vector.load %arg6[%c0_3, %c0_4] : memref<1x64xf32, #tpu.memory_space<vmem>>, vector<1x64xf32>
    %4 = vector.broadcast %3 : vector<1x64xf32> to vector<64x64xf32>
    %5 = arith.addf %2, %4 : vector<64x64xf32>
    %cst_5 = arith.constant 0.000000e+00 : f32
    %6 = vector.broadcast %cst_5 : f32 to vector<64x64xf32>
    %7 = arith.maximumf %5, %6 : vector<64x64xf32>
    %c0_6 = arith.constant 0 : index
    %c0_7 = arith.constant 0 : index
    %8 = vector.load %arg7[%c0_6, %c0_7] : memref<64x64xf32, #tpu.memory_space<vmem>>, vector<64x64xf32>
    %cst_8 = arith.constant dense<0.000000e+00> : vector<64x64xf32>
    %9 = tpu.matmul %7, %8, %cst_8 {dimension_numbers = #tpu.dot_dimension_numbers<[1], [0], [0], [1], [0, 0, 1, 1], [], []>} : vector<64x64xf32>, vector<64x64xf32>, vector<64x64xf32> -> vector<64x64xf32>
    %c0_9 = arith.constant 0 : index
    %c0_10 = arith.constant 0 : index
    %10 = vector.load %arg8[%c0_9, %c0_10] : memref<1x64xf32, #tpu.memory_space<vmem>>, vector<1x64xf32>
    %11 = vector.broadcast %10 : vector<1x64xf32> to vector<64x64xf32>
    %12 = arith.addf %9, %11 : vector<64x64xf32>
    %cst_11 = arith.constant 0.000000e+00 : f32
    %13 = vector.broadcast %cst_11 : f32 to vector<64x64xf32>
    %14 = arith.maximumf %12, %13 : vector<64x64xf32>
    %c0_12 = arith.constant 0 : index
    %c0_13 = arith.constant 0 : index
    %15 = vector.load %arg9[%c0_12, %c0_13] : memref<64x128xf32, #tpu.memory_space<vmem>>, vector<64x128xf32>
    %cst_14 = arith.constant dense<0.000000e+00> : vector<64x128xf32>
    %16 = tpu.matmul %14, %15, %cst_14 {dimension_numbers = #tpu.dot_dimension_numbers<[1], [0], [0], [1], [0, 0, 1, 1], [], []>} : vector<64x64xf32>, vector<64x128xf32>, vector<64x128xf32> -> vector<64x128xf32>
    %c0_15 = arith.constant 0 : index
    %c0_16 = arith.constant 0 : index
    %17 = vector.load %arg10[%c0_15, %c0_16] : memref<1x128xf32, #tpu.memory_space<vmem>>, vector<1x128xf32>
    %18 = vector.broadcast %17 : vector<1x128xf32> to vector<64x128xf32>
    %19 = arith.addf %16, %18 : vector<64x128xf32>
    %c0_17 = arith.constant 0 : index
    %c0_18 = arith.constant 0 : index
    %20 = vector.load %arg11[%c0_17, %c0_18] : memref<128x64xf32, #tpu.memory_space<vmem>>, vector<128x64xf32>
    %cst_19 = arith.constant dense<0.000000e+00> : vector<64x64xf32>
    %21 = tpu.matmul %19, %20, %cst_19 {dimension_numbers = #tpu.dot_dimension_numbers<[1], [0], [0], [1], [0, 0, 1, 1], [], []>} : vector<64x128xf32>, vector<128x64xf32>, vector<64x64xf32> -> vector<64x64xf32>
    %c0_20 = arith.constant 0 : index
    %c0_21 = arith.constant 0 : index
    %22 = vector.load %arg15[%c0_20, %c0_21] : memref<1x64xf32, #tpu.memory_space<vmem>>, vector<1x64xf32>
    %23 = vector.broadcast %22 : vector<1x64xf32> to vector<64x64xf32>
    %24 = arith.addf %21, %23 : vector<64x64xf32>
    %c0_22 = arith.constant 0 : index
    %c0_23 = arith.constant 0 : index
    %25 = vector.load %arg31[%c0_22, %c0_23] : memref<64x64xf32, #tpu.memory_space<vmem>>, vector<64x64xf32>
    tpu.vector_store %arg31[%c0_22, %c0_23], %24 {strides = array<i32>} : memref<64x64xf32, #tpu.memory_space<vmem>>, vector<64x64xf32>,
    %c0_24 = arith.constant 0 : index
    %c0_25 = arith.constant 0 : index
    %26 = vector.load %arg12[%c0_24, %c0_25] : memref<128x64xf32, #tpu.memory_space<vmem>>, vector<128x64xf32>
    %cst_26 = arith.constant dense<0.000000e+00> : vector<64x64xf32>
    %27 = tpu.matmul %19, %26, %cst_26 {dimension_numbers = #tpu.dot_dimension_numbers<[1], [0], [0], [1], [0, 0, 1, 1], [], []>} : vector<64x128xf32>, vector<128x64xf32>, vector<64x64xf32> -> vector<64x64xf32>
    %c0_27 = arith.constant 0 : index
    %c0_28 = arith.constant 0 : index
    %28 = vector.load %arg16[%c0_27, %c0_28] : memref<1x64xf32, #tpu.memory_space<vmem>>, vector<1x64xf32>
    %29 = vector.broadcast %28 : vector<1x64xf32> to vector<64x64xf32>
    %30 = arith.addf %27, %29 : vector<64x64xf32>
    %c0_29 = arith.constant 0 : index
    %c0_30 = arith.constant 0 : index
    %31 = vector.load %arg32[%c0_29, %c0_30] : memref<64x64xf32, #tpu.memory_space<vmem>>, vector<64x64xf32>
    tpu.vector_store %arg32[%c0_29, %c0_30], %30 {strides = array<i32>} : memref<64x64xf32, #tpu.memory_space<vmem>>, vector<64x64xf32>,
    %c0_31 = arith.constant 0 : index
    %c0_32 = arith.constant 0 : index
    %32 = vector.load %arg13[%c0_31, %c0_32] : memref<128x64xf32, #tpu.memory_space<vmem>>, vector<128x64xf32>
    %cst_33 = arith.constant dense<0.000000e+00> : vector<64x64xf32>
    %33 = tpu.matmul %19, %32, %cst_33 {dimension_numbers = #tpu.dot_dimension_numbers<[1], [0], [0], [1], [0, 0, 1, 1], [], []>} : vector<64x128xf32>, vector<128x64xf32>, vector<64x64xf32> -> vector<64x64xf32>
    %c0_34 = arith.constant 0 : index
    %c0_35 = arith.constant 0 : index
    %34 = vector.load %arg17[%c0_34, %c0_35] : memref<1x64xf32, #tpu.memory_space<vmem>>, vector<1x64xf32>
    %35 = vector.broadcast %34 : vector<1x64xf32> to vector<64x64xf32>
    %36 = arith.addf %33, %35 : vector<64x64xf32>
    %c0_36 = arith.constant 0 : index
    %c0_37 = arith.constant 0 : index
    %37 = vector.load %arg33[%c0_36, %c0_37] : memref<64x64xf32, #tpu.memory_space<vmem>>, vector<64x64xf32>
    tpu.vector_store %arg33[%c0_36, %c0_37], %36 {strides = array<i32>} : memref<64x64xf32, #tpu.memory_space<vmem>>, vector<64x64xf32>,
    %c0_38 = arith.constant 0 : index
    %c0_39 = arith.constant 0 : index
    %38 = vector.load %arg14[%c0_38, %c0_39] : memref<128x64xf32, #tpu.memory_space<vmem>>, vector<128x64xf32>
    %cst_40 = arith.constant dense<0.000000e+00> : vector<64x64xf32>
    %39 = tpu.matmul %19, %38, %cst_40 {dimension_numbers = #tpu.dot_dimension_numbers<[1], [0], [0], [1], [0, 0, 1, 1], [], []>} : vector<64x128xf32>, vector<128x64xf32>, vector<64x64xf32> -> vector<64x64xf32>
    %c0_41 = arith.constant 0 : index
    %c0_42 = arith.constant 0 : index
    %40 = vector.load %arg18[%c0_41, %c0_42] : memref<1x64xf32, #tpu.memory_space<vmem>>, vector<1x64xf32>
    %41 = vector.broadcast %40 : vector<1x64xf32> to vector<64x64xf32>
    %42 = arith.addf %39, %41 : vector<64x64xf32>
    %c0_43 = arith.constant 0 : index
    %c0_44 = arith.constant 0 : index
    %43 = vector.load %arg34[%c0_43, %c0_44] : memref<64x64xf32, #tpu.memory_space<vmem>>, vector<64x64xf32>
    tpu.vector_store %arg34[%c0_43, %c0_44], %42 {strides = array<i32>} : memref<64x64xf32, #tpu.memory_space<vmem>>, vector<64x64xf32>,
    %c0_45 = arith.constant 0 : index
    %c0_46 = arith.constant 0 : index
    %44 = vector.load %arg3[%c0_45, %c0_46] : memref<8x64xf32, #tpu.memory_space<vmem>>, vector<8x64xf32>
    %c0_47 = arith.constant 0 : index
    %c0_48 = arith.constant 0 : index
    %45 = vector.load %arg4[%c0_47, %c0_48] : memref<8x64xf32, #tpu.memory_space<vmem>>, vector<8x64xf32>
    %c0_i32 = arith.constant 0 : i32
    %c8_i32 = arith.constant 8 : i32
    %46 = arith.muli %c0_i32, %c8_i32 : i32
    %47 = tpu.assume_multiple %46, 8 : i32
    %48 = arith.index_cast %47 : i32 to index
    %c0_49 = arith.constant 0 : index
    %49 = vector.load %arg31[%48, %c0_49] : memref<64x64xf32, #tpu.memory_space<vmem>>, vector<8x64xf32>
    %c0_50 = arith.constant 0 : index
    %c0_51 = arith.constant 0 : index
    %50 = vector.load %arg19[%c0_50, %c0_51] : memref<64x64xf32, #tpu.memory_space<vmem>>, vector<64x64xf32>
    %cst_52 = arith.constant dense<0.000000e+00> : vector<8x64xf32>
    %51 = tpu.matmul %44, %50, %cst_52 {dimension_numbers = #tpu.dot_dimension_numbers<[1], [0], [0], [1], [0, 0, 1, 1], [], []>} : vector<8x64xf32>, vector<64x64xf32>, vector<8x64xf32> -> vector<8x64xf32>
    %52 = arith.addf %49, %51 : vector<8x64xf32>
    %53 = arith.negf %52 : vector<8x64xf32>
    %54 = math.exp %53 : vector<8x64xf32>
    %cst_53 = arith.constant 1.000000e+00 : f32
    %55 = vector.broadcast %cst_53 : f32 to vector<8x64xf32>
    %56 = arith.addf %55, %54 : vector<8x64xf32>
    %57 = arith.divf %55, %56 : vector<8x64xf32>
    %58 = arith.index_cast %47 : i32 to index
    %c0_54 = arith.constant 0 : index
    %59 = vector.load %arg32[%58, %c0_54] : memref<64x64xf32, #tpu.memory_space<vmem>>, vector<8x64xf32>
    %c0_55 = arith.constant 0 : index
    %c0_56 = arith.constant 0 : index
    %60 = vector.load %arg20[%c0_55, %c0_56] : memref<64x64xf32, #tpu.memory_space<vmem>>, vector<64x64xf32>
    %cst_57 = arith.constant dense<0.000000e+00> : vector<8x64xf32>
    %61 = tpu.matmul %44, %60, %cst_57 {dimension_numbers = #tpu.dot_dimension_numbers<[1], [0], [0], [1], [0, 0, 1, 1], [], []>} : vector<8x64xf32>, vector<64x64xf32>, vector<8x64xf32> -> vector<8x64xf32>
    %62 = arith.addf %59, %61 : vector<8x64xf32>
    %63 = arith.negf %62 : vector<8x64xf32>
    %64 = math.exp %63 : vector<8x64xf32>
    %cst_58 = arith.constant 1.000000e+00 : f32
    %65 = vector.broadcast %cst_58 : f32 to vector<8x64xf32>
    %66 = arith.addf %65, %64 : vector<8x64xf32>
    %67 = arith.divf %65, %66 : vector<8x64xf32>
    %68 = arith.index_cast %47 : i32 to index
    %c0_59 = arith.constant 0 : index
    %69 = vector.load %arg33[%68, %c0_59] : memref<64x64xf32, #tpu.memory_space<vmem>>, vector<8x64xf32>
    %c0_60 = arith.constant 0 : index
    %c0_61 = arith.constant 0 : index
    %70 = vector.load %arg21[%c0_60, %c0_61] : memref<64x64xf32, #tpu.memory_space<vmem>>, vector<64x64xf32>
    %cst_62 = arith.constant dense<0.000000e+00> : vector<8x64xf32>
    %71 = tpu.matmul %44, %70, %cst_62 {dimension_numbers = #tpu.dot_dimension_numbers<[1], [0], [0], [1], [0, 0, 1, 1], [], []>} : vector<8x64xf32>, vector<64x64xf32>, vector<8x64xf32> -> vector<8x64xf32>
    %72 = arith.addf %69, %71 : vector<8x64xf32>
    %73 = math.tanh %72 : vector<8x64xf32>
    %74 = arith.index_cast %47 : i32 to index
    %c0_63 = arith.constant 0 : index
    %75 = vector.load %arg34[%74, %c0_63] : memref<64x64xf32, #tpu.memory_space<vmem>>, vector<8x64xf32>
    %c0_64 = arith.constant 0 : index
    %c0_65 = arith.constant 0 : index
    %76 = vector.load %arg22[%c0_64, %c0_65] : memref<64x64xf32, #tpu.memory_space<vmem>>, vector<64x64xf32>
    %cst_66 = arith.constant dense<0.000000e+00> : vector<8x64xf32>
    %77 = tpu.matmul %44, %76, %cst_66 {dimension_numbers = #tpu.dot_dimension_numbers<[1], [0], [0], [1], [0, 0, 1, 1], [], []>} : vector<8x64xf32>, vector<64x64xf32>, vector<8x64xf32> -> vector<8x64xf32>
    %78 = arith.addf %75, %77 : vector<8x64xf32>
    %79 = arith.negf %78 : vector<8x64xf32>
    %80 = math.exp %79 : vector<8x64xf32>
    %cst_67 = arith.constant 1.000000e+00 : f32
    %81 = vector.broadcast %cst_67 : f32 to vector<8x64xf32>
    %82 = arith.addf %81, %80 : vector<8x64xf32>
    %83 = arith.divf %81, %82 : vector<8x64xf32>
    %84 = arith.mulf %67, %45 : vector<8x64xf32>
    %85 = arith.mulf %57, %73 : vector<8x64xf32>
    %86 = arith.addf %84, %85 : vector<8x64xf32>
    %87 = math.tanh %86 : vector<8x64xf32>
    %88 = arith.mulf %83, %87 : vector<8x64xf32>
    %89 = arith.index_cast %47 : i32 to index
    %c0_68 = arith.constant 0 : index
    %90 = vector.load %arg35[%89, %c0_68] : memref<64x64xf32, #tpu.memory_space<vmem>>, vector<8x64xf32>
    tpu.vector_store %arg35[%89, %c0_68], %88 {strides = array<i32>} : memref<64x64xf32, #tpu.memory_space<vmem>>, vector<8x64xf32>,
    %c1_i32 = arith.constant 1 : i32
    %c8_i32_69 = arith.constant 8 : i32
    %91 = arith.muli %c1_i32, %c8_i32_69 : i32
    %92 = tpu.assume_multiple %91, 8 : i32
    %93 = arith.index_cast %92 : i32 to index
    %c0_70 = arith.constant 0 : index
    %94 = vector.load %arg31[%93, %c0_70] : memref<64x64xf32, #tpu.memory_space<vmem>>, vector<8x64xf32>
    %c0_71 = arith.constant 0 : index
    %c0_72 = arith.constant 0 : index
    %95 = vector.load %arg19[%c0_71, %c0_72] : memref<64x64xf32, #tpu.memory_space<vmem>>, vector<64x64xf32>
    %cst_73 = arith.constant dense<0.000000e+00> : vector<8x64xf32>
    %96 = tpu.matmul %88, %95, %cst_73 {dimension_numbers = #tpu.dot_dimension_numbers<[1], [0], [0], [1], [0, 0, 1, 1], [], []>} : vector<8x64xf32>, vector<64x64xf32>, vector<8x64xf32> -> vector<8x64xf32>
    %97 = arith.addf %94, %96 : vector<8x64xf32>
    %98 = arith.negf %97 : vector<8x64xf32>
    %99 = math.exp %98 : vector<8x64xf32>
    %cst_74 = arith.constant 1.000000e+00 : f32
    %100 = vector.broadcast %cst_74 : f32 to vector<8x64xf32>
    %101 = arith.addf %100, %99 : vector<8x64xf32>
    %102 = arith.divf %100, %101 : vector<8x64xf32>
    %103 = arith.index_cast %92 : i32 to index
    %c0_75 = arith.constant 0 : index
    %104 = vector.load %arg32[%103, %c0_75] : memref<64x64xf32, #tpu.memory_space<vmem>>, vector<8x64xf32>
    %c0_76 = arith.constant 0 : index
    %c0_77 = arith.constant 0 : index
    %105 = vector.load %arg20[%c0_76, %c0_77] : memref<64x64xf32, #tpu.memory_space<vmem>>, vector<64x64xf32>
    %cst_78 = arith.constant dense<0.000000e+00> : vector<8x64xf32>
    %106 = tpu.matmul %88, %105, %cst_78 {dimension_numbers = #tpu.dot_dimension_numbers<[1], [0], [0], [1], [0, 0, 1, 1], [], []>} : vector<8x64xf32>, vector<64x64xf32>, vector<8x64xf32> -> vector<8x64xf32>
    %107 = arith.addf %104, %106 : vector<8x64xf32>
    %108 = arith.negf %107 : vector<8x64xf32>
    %109 = math.exp %108 : vector<8x64xf32>
    %cst_79 = arith.constant 1.000000e+00 : f32
    %110 = vector.broadcast %cst_79 : f32 to vector<8x64xf32>
    %111 = arith.addf %110, %109 : vector<8x64xf32>
    %112 = arith.divf %110, %111 : vector<8x64xf32>
    %113 = arith.index_cast %92 : i32 to index
    %c0_80 = arith.constant 0 : index
    %114 = vector.load %arg33[%113, %c0_80] : memref<64x64xf32, #tpu.memory_space<vmem>>, vector<8x64xf32>
    %c0_81 = arith.constant 0 : index
    %c0_82 = arith.constant 0 : index
    %115 = vector.load %arg21[%c0_81, %c0_82] : memref<64x64xf32, #tpu.memory_space<vmem>>, vector<64x64xf32>
    %cst_83 = arith.constant dense<0.000000e+00> : vector<8x64xf32>
    %116 = tpu.matmul %88, %115, %cst_83 {dimension_numbers = #tpu.dot_dimension_numbers<[1], [0], [0], [1], [0, 0, 1, 1], [], []>} : vector<8x64xf32>, vector<64x64xf32>, vector<8x64xf32> -> vector<8x64xf32>
    %117 = arith.addf %114, %116 : vector<8x64xf32>
    %118 = math.tanh %117 : vector<8x64xf32>
    %119 = arith.index_cast %92 : i32 to index
    %c0_84 = arith.constant 0 : index
    %120 = vector.load %arg34[%119, %c0_84] : memref<64x64xf32, #tpu.memory_space<vmem>>, vector<8x64xf32>
    %c0_85 = arith.constant 0 : index
    %c0_86 = arith.constant 0 : index
    %121 = vector.load %arg22[%c0_85, %c0_86] : memref<64x64xf32, #tpu.memory_space<vmem>>, vector<64x64xf32>
    %cst_87 = arith.constant dense<0.000000e+00> : vector<8x64xf32>
    %122 = tpu.matmul %88, %121, %cst_87 {dimension_numbers = #tpu.dot_dimension_numbers<[1], [0], [0], [1], [0, 0, 1, 1], [], []>} : vector<8x64xf32>, vector<64x64xf32>, vector<8x64xf32> -> vector<8x64xf32>
    %123 = arith.addf %120, %122 : vector<8x64xf32>
    %124 = arith.negf %123 : vector<8x64xf32>
    %125 = math.exp %124 : vector<8x64xf32>
    %cst_88 = arith.constant 1.000000e+00 : f32
    %126 = vector.broadcast %cst_88 : f32 to vector<8x64xf32>
    %127 = arith.addf %126, %125 : vector<8x64xf32>
    %128 = arith.divf %126, %127 : vector<8x64xf32>
    %129 = arith.mulf %112, %86 : vector<8x64xf32>
    %130 = arith.mulf %102, %118 : vector<8x64xf32>
    %131 = arith.addf %129, %130 : vector<8x64xf32>
    %132 = math.tanh %131 : vector<8x64xf32>
    %133 = arith.mulf %128, %132 : vector<8x64xf32>
    %134 = arith.index_cast %92 : i32 to index
    %c0_89 = arith.constant 0 : index
    %135 = vector.load %arg35[%134, %c0_89] : memref<64x64xf32, #tpu.memory_space<vmem>>, vector<8x64xf32>
    tpu.vector_store %arg35[%134, %c0_89], %133 {strides = array<i32>} : memref<64x64xf32, #tpu.memory_space<vmem>>, vector<8x64xf32>,
    %c2_i32 = arith.constant 2 : i32
    %c8_i32_90 = arith.constant 8 : i32
    %136 = arith.muli %c2_i32, %c8_i32_90 : i32
    %137 = tpu.assume_multiple %136, 8 : i32
    %138 = arith.index_cast %137 : i32 to index
    %c0_91 = arith.constant 0 : index
    %139 = vector.load %arg31[%138, %c0_91] : memref<64x64xf32, #tpu.memory_space<vmem>>, vector<8x64xf32>
    %c0_92 = arith.constant 0 : index
    %c0_93 = arith.constant 0 : index
    %140 = vector.load %arg19[%c0_92, %c0_93] : memref<64x64xf32, #tpu.memory_space<vmem>>, vector<64x64xf32>
    %cst_94 = arith.constant dense<0.000000e+00> : vector<8x64xf32>
    %141 = tpu.matmul %133, %140, %cst_94 {dimension_numbers = #tpu.dot_dimension_numbers<[1], [0], [0], [1], [0, 0, 1, 1], [], []>} : vector<8x64xf32>, vector<64x64xf32>, vector<8x64xf32> -> vector<8x64xf32>
    %142 = arith.addf %139, %141 : vector<8x64xf32>
    %143 = arith.negf %142 : vector<8x64xf32>
    %144 = math.exp %143 : vector<8x64xf32>
    %cst_95 = arith.constant 1.000000e+00 : f32
    %145 = vector.broadcast %cst_95 : f32 to vector<8x64xf32>
    %146 = arith.addf %145, %144 : vector<8x64xf32>
    %147 = arith.divf %145, %146 : vector<8x64xf32>
    %148 = arith.index_cast %137 : i32 to index
    %c0_96 = arith.constant 0 : index
    %149 = vector.load %arg32[%148, %c0_96] : memref<64x64xf32, #tpu.memory_space<vmem>>, vector<8x64xf32>
    %c0_97 = arith.constant 0 : index
    %c0_98 = arith.constant 0 : index
    %150 = vector.load %arg20[%c0_97, %c0_98] : memref<64x64xf32, #tpu.memory_space<vmem>>, vector<64x64xf32>
    %cst_99 = arith.constant dense<0.000000e+00> : vector<8x64xf32>
    %151 = tpu.matmul %133, %150, %cst_99 {dimension_numbers = #tpu.dot_dimension_numbers<[1], [0], [0], [1], [0, 0, 1, 1], [], []>} : vector<8x64xf32>, vector<64x64xf32>, vector<8x64xf32> -> vector<8x64xf32>
    %152 = arith.addf %149, %151 : vector<8x64xf32>
    %153 = arith.negf %152 : vector<8x64xf32>
    %154 = math.exp %153 : vector<8x64xf32>
    %cst_100 = arith.constant 1.000000e+00 : f32
    %155 = vector.broadcast %cst_100 : f32 to vector<8x64xf32>
    %156 = arith.addf %155, %154 : vector<8x64xf32>
    %157 = arith.divf %155, %156 : vector<8x64xf32>
    %158 = arith.index_cast %137 : i32 to index
    %c0_101 = arith.constant 0 : index
    %159 = vector.load %arg33[%158, %c0_101] : memref<64x64xf32, #tpu.memory_space<vmem>>, vector<8x64xf32>
    %c0_102 = arith.constant 0 : index
    %c0_103 = arith.constant 0 : index
    %160 = vector.load %arg21[%c0_102, %c0_103] : memref<64x64xf32, #tpu.memory_space<vmem>>, vector<64x64xf32>
    %cst_104 = arith.constant dense<0.000000e+00> : vector<8x64xf32>
    %161 = tpu.matmul %133, %160, %cst_104 {dimension_numbers = #tpu.dot_dimension_numbers<[1], [0], [0], [1], [0, 0, 1, 1], [], []>} : vector<8x64xf32>, vector<64x64xf32>, vector<8x64xf32> -> vector<8x64xf32>
    %162 = arith.addf %159, %161 : vector<8x64xf32>
    %163 = math.tanh %162 : vector<8x64xf32>
    %164 = arith.index_cast %137 : i32 to index
    %c0_105 = arith.constant 0 : index
    %165 = vector.load %arg34[%164, %c0_105] : memref<64x64xf32, #tpu.memory_space<vmem>>, vector<8x64xf32>
    %c0_106 = arith.constant 0 : index
    %c0_107 = arith.constant 0 : index
    %166 = vector.load %arg22[%c0_106, %c0_107] : memref<64x64xf32, #tpu.memory_space<vmem>>, vector<64x64xf32>
    %cst_108 = arith.constant dense<0.000000e+00> : vector<8x64xf32>
    %167 = tpu.matmul %133, %166, %cst_108 {dimension_numbers = #tpu.dot_dimension_numbers<[1], [0], [0], [1], [0, 0, 1, 1], [], []>} : vector<8x64xf32>, vector<64x64xf32>, vector<8x64xf32> -> vector<8x64xf32>
    %168 = arith.addf %165, %167 : vector<8x64xf32>
    %169 = arith.negf %168 : vector<8x64xf32>
    %170 = math.exp %169 : vector<8x64xf32>
    %cst_109 = arith.constant 1.000000e+00 : f32
    %171 = vector.broadcast %cst_109 : f32 to vector<8x64xf32>
    %172 = arith.addf %171, %170 : vector<8x64xf32>
    %173 = arith.divf %171, %172 : vector<8x64xf32>
    %174 = arith.mulf %157, %131 : vector<8x64xf32>
    %175 = arith.mulf %147, %163 : vector<8x64xf32>
    %176 = arith.addf %174, %175 : vector<8x64xf32>
    %177 = math.tanh %176 : vector<8x64xf32>
    %178 = arith.mulf %173, %177 : vector<8x64xf32>
    %179 = arith.index_cast %137 : i32 to index
    %c0_110 = arith.constant 0 : index
    %180 = vector.load %arg35[%179, %c0_110] : memref<64x64xf32, #tpu.memory_space<vmem>>, vector<8x64xf32>
    tpu.vector_store %arg35[%179, %c0_110], %178 {strides = array<i32>} : memref<64x64xf32, #tpu.memory_space<vmem>>, vector<8x64xf32>,
    %c3_i32 = arith.constant 3 : i32
    %c8_i32_111 = arith.constant 8 : i32
    %181 = arith.muli %c3_i32, %c8_i32_111 : i32
    %182 = tpu.assume_multiple %181, 8 : i32
    %183 = arith.index_cast %182 : i32 to index
    %c0_112 = arith.constant 0 : index
    %184 = vector.load %arg31[%183, %c0_112] : memref<64x64xf32, #tpu.memory_space<vmem>>, vector<8x64xf32>
    %c0_113 = arith.constant 0 : index
    %c0_114 = arith.constant 0 : index
    %185 = vector.load %arg19[%c0_113, %c0_114] : memref<64x64xf32, #tpu.memory_space<vmem>>, vector<64x64xf32>
    %cst_115 = arith.constant dense<0.000000e+00> : vector<8x64xf32>
    %186 = tpu.matmul %178, %185, %cst_115 {dimension_numbers = #tpu.dot_dimension_numbers<[1], [0], [0], [1], [0, 0, 1, 1], [], []>} : vector<8x64xf32>, vector<64x64xf32>, vector<8x64xf32> -> vector<8x64xf32>
    %187 = arith.addf %184, %186 : vector<8x64xf32>
    %188 = arith.negf %187 : vector<8x64xf32>
    %189 = math.exp %188 : vector<8x64xf32>
    %cst_116 = arith.constant 1.000000e+00 : f32
    %190 = vector.broadcast %cst_116 : f32 to vector<8x64xf32>
    %191 = arith.addf %190, %189 : vector<8x64xf32>
    %192 = arith.divf %190, %191 : vector<8x64xf32>
    %193 = arith.index_cast %182 : i32 to index
    %c0_117 = arith.constant 0 : index
    %194 = vector.load %arg32[%193, %c0_117] : memref<64x64xf32, #tpu.memory_space<vmem>>, vector<8x64xf32>
    %c0_118 = arith.constant 0 : index
    %c0_119 = arith.constant 0 : index
    %195 = vector.load %arg20[%c0_118, %c0_119] : memref<64x64xf32, #tpu.memory_space<vmem>>, vector<64x64xf32>
    %cst_120 = arith.constant dense<0.000000e+00> : vector<8x64xf32>
    %196 = tpu.matmul %178, %195, %cst_120 {dimension_numbers = #tpu.dot_dimension_numbers<[1], [0], [0], [1], [0, 0, 1, 1], [], []>} : vector<8x64xf32>, vector<64x64xf32>, vector<8x64xf32> -> vector<8x64xf32>
    %197 = arith.addf %194, %196 : vector<8x64xf32>
    %198 = arith.negf %197 : vector<8x64xf32>
    %199 = math.exp %198 : vector<8x64xf32>
    %cst_121 = arith.constant 1.000000e+00 : f32
    %200 = vector.broadcast %cst_121 : f32 to vector<8x64xf32>
    %201 = arith.addf %200, %199 : vector<8x64xf32>
    %202 = arith.divf %200, %201 : vector<8x64xf32>
    %203 = arith.index_cast %182 : i32 to index
    %c0_122 = arith.constant 0 : index
    %204 = vector.load %arg33[%203, %c0_122] : memref<64x64xf32, #tpu.memory_space<vmem>>, vector<8x64xf32>
    %c0_123 = arith.constant 0 : index
    %c0_124 = arith.constant 0 : index
    %205 = vector.load %arg21[%c0_123, %c0_124] : memref<64x64xf32, #tpu.memory_space<vmem>>, vector<64x64xf32>
    %cst_125 = arith.constant dense<0.000000e+00> : vector<8x64xf32>
    %206 = tpu.matmul %178, %205, %cst_125 {dimension_numbers = #tpu.dot_dimension_numbers<[1], [0], [0], [1], [0, 0, 1, 1], [], []>} : vector<8x64xf32>, vector<64x64xf32>, vector<8x64xf32> -> vector<8x64xf32>
    %207 = arith.addf %204, %206 : vector<8x64xf32>
    %208 = math.tanh %207 : vector<8x64xf32>
    %209 = arith.index_cast %182 : i32 to index
    %c0_126 = arith.constant 0 : index
    %210 = vector.load %arg34[%209, %c0_126] : memref<64x64xf32, #tpu.memory_space<vmem>>, vector<8x64xf32>
    %c0_127 = arith.constant 0 : index
    %c0_128 = arith.constant 0 : index
    %211 = vector.load %arg22[%c0_127, %c0_128] : memref<64x64xf32, #tpu.memory_space<vmem>>, vector<64x64xf32>
    %cst_129 = arith.constant dense<0.000000e+00> : vector<8x64xf32>
    %212 = tpu.matmul %178, %211, %cst_129 {dimension_numbers = #tpu.dot_dimension_numbers<[1], [0], [0], [1], [0, 0, 1, 1], [], []>} : vector<8x64xf32>, vector<64x64xf32>, vector<8x64xf32> -> vector<8x64xf32>
    %213 = arith.addf %210, %212 : vector<8x64xf32>
    %214 = arith.negf %213 : vector<8x64xf32>
    %215 = math.exp %214 : vector<8x64xf32>
    %cst_130 = arith.constant 1.000000e+00 : f32
    %216 = vector.broadcast %cst_130 : f32 to vector<8x64xf32>
    %217 = arith.addf %216, %215 : vector<8x64xf32>
    %218 = arith.divf %216, %217 : vector<8x64xf32>
    %219 = arith.mulf %202, %176 : vector<8x64xf32>
    %220 = arith.mulf %192, %208 : vector<8x64xf32>
    %221 = arith.addf %219, %220 : vector<8x64xf32>
    %222 = math.tanh %221 : vector<8x64xf32>
    %223 = arith.mulf %218, %222 : vector<8x64xf32>
    %224 = arith.index_cast %182 : i32 to index
    %c0_131 = arith.constant 0 : index
    %225 = vector.load %arg35[%224, %c0_131] : memref<64x64xf32, #tpu.memory_space<vmem>>, vector<8x64xf32>
    tpu.vector_store %arg35[%224, %c0_131], %223 {strides = array<i32>} : memref<64x64xf32, #tpu.memory_space<vmem>>, vector<8x64xf32>,
    %c4_i32 = arith.constant 4 : i32
    %c8_i32_132 = arith.constant 8 : i32
    %226 = arith.muli %c4_i32, %c8_i32_132 : i32
    %227 = tpu.assume_multiple %226, 8 : i32
    %228 = arith.index_cast %227 : i32 to index
    %c0_133 = arith.constant 0 : index
    %229 = vector.load %arg31[%228, %c0_133] : memref<64x64xf32, #tpu.memory_space<vmem>>, vector<8x64xf32>
    %c0_134 = arith.constant 0 : index
    %c0_135 = arith.constant 0 : index
    %230 = vector.load %arg19[%c0_134, %c0_135] : memref<64x64xf32, #tpu.memory_space<vmem>>, vector<64x64xf32>
    %cst_136 = arith.constant dense<0.000000e+00> : vector<8x64xf32>
    %231 = tpu.matmul %223, %230, %cst_136 {dimension_numbers = #tpu.dot_dimension_numbers<[1], [0], [0], [1], [0, 0, 1, 1], [], []>} : vector<8x64xf32>, vector<64x64xf32>, vector<8x64xf32> -> vector<8x64xf32>
    %232 = arith.addf %229, %231 : vector<8x64xf32>
    %233 = arith.negf %232 : vector<8x64xf32>
    %234 = math.exp %233 : vector<8x64xf32>
    %cst_137 = arith.constant 1.000000e+00 : f32
    %235 = vector.broadcast %cst_137 : f32 to vector<8x64xf32>
    %236 = arith.addf %235, %234 : vector<8x64xf32>
    %237 = arith.divf %235, %236 : vector<8x64xf32>
    %238 = arith.index_cast %227 : i32 to index
    %c0_138 = arith.constant 0 : index
    %239 = vector.load %arg32[%238, %c0_138] : memref<64x64xf32, #tpu.memory_space<vmem>>, vector<8x64xf32>
    %c0_139 = arith.constant 0 : index
    %c0_140 = arith.constant 0 : index
    %240 = vector.load %arg20[%c0_139, %c0_140] : memref<64x64xf32, #tpu.memory_space<vmem>>, vector<64x64xf32>
    %cst_141 = arith.constant dense<0.000000e+00> : vector<8x64xf32>
    %241 = tpu.matmul %223, %240, %cst_141 {dimension_numbers = #tpu.dot_dimension_numbers<[1], [0], [0], [1], [0, 0, 1, 1], [], []>} : vector<8x64xf32>, vector<64x64xf32>, vector<8x64xf32> -> vector<8x64xf32>
    %242 = arith.addf %239, %241 : vector<8x64xf32>
    %243 = arith.negf %242 : vector<8x64xf32>
    %244 = math.exp %243 : vector<8x64xf32>
    %cst_142 = arith.constant 1.000000e+00 : f32
    %245 = vector.broadcast %cst_142 : f32 to vector<8x64xf32>
    %246 = arith.addf %245, %244 : vector<8x64xf32>
    %247 = arith.divf %245, %246 : vector<8x64xf32>
    %248 = arith.index_cast %227 : i32 to index
    %c0_143 = arith.constant 0 : index
    %249 = vector.load %arg33[%248, %c0_143] : memref<64x64xf32, #tpu.memory_space<vmem>>, vector<8x64xf32>
    %c0_144 = arith.constant 0 : index
    %c0_145 = arith.constant 0 : index
    %250 = vector.load %arg21[%c0_144, %c0_145] : memref<64x64xf32, #tpu.memory_space<vmem>>, vector<64x64xf32>
    %cst_146 = arith.constant dense<0.000000e+00> : vector<8x64xf32>
    %251 = tpu.matmul %223, %250, %cst_146 {dimension_numbers = #tpu.dot_dimension_numbers<[1], [0], [0], [1], [0, 0, 1, 1], [], []>} : vector<8x64xf32>, vector<64x64xf32>, vector<8x64xf32> -> vector<8x64xf32>
    %252 = arith.addf %249, %251 : vector<8x64xf32>
    %253 = math.tanh %252 : vector<8x64xf32>
    %254 = arith.index_cast %227 : i32 to index
    %c0_147 = arith.constant 0 : index
    %255 = vector.load %arg34[%254, %c0_147] : memref<64x64xf32, #tpu.memory_space<vmem>>, vector<8x64xf32>
    %c0_148 = arith.constant 0 : index
    %c0_149 = arith.constant 0 : index
    %256 = vector.load %arg22[%c0_148, %c0_149] : memref<64x64xf32, #tpu.memory_space<vmem>>, vector<64x64xf32>
    %cst_150 = arith.constant dense<0.000000e+00> : vector<8x64xf32>
    %257 = tpu.matmul %223, %256, %cst_150 {dimension_numbers = #tpu.dot_dimension_numbers<[1], [0], [0], [1], [0, 0, 1, 1], [], []>} : vector<8x64xf32>, vector<64x64xf32>, vector<8x64xf32> -> vector<8x64xf32>
    %258 = arith.addf %255, %257 : vector<8x64xf32>
    %259 = arith.negf %258 : vector<8x64xf32>
    %260 = math.exp %259 : vector<8x64xf32>
    %cst_151 = arith.constant 1.000000e+00 : f32
    %261 = vector.broadcast %cst_151 : f32 to vector<8x64xf32>
    %262 = arith.addf %261, %260 : vector<8x64xf32>
    %263 = arith.divf %261, %262 : vector<8x64xf32>
    %264 = arith.mulf %247, %221 : vector<8x64xf32>
    %265 = arith.mulf %237, %253 : vector<8x64xf32>
    %266 = arith.addf %264, %265 : vector<8x64xf32>
    %267 = math.tanh %266 : vector<8x64xf32>
    %268 = arith.mulf %263, %267 : vector<8x64xf32>
    %269 = arith.index_cast %227 : i32 to index
    %c0_152 = arith.constant 0 : index
    %270 = vector.load %arg35[%269, %c0_152] : memref<64x64xf32, #tpu.memory_space<vmem>>, vector<8x64xf32>
    tpu.vector_store %arg35[%269, %c0_152], %268 {strides = array<i32>} : memref<64x64xf32, #tpu.memory_space<vmem>>, vector<8x64xf32>,
    %c5_i32 = arith.constant 5 : i32
    %c8_i32_153 = arith.constant 8 : i32
    %271 = arith.muli %c5_i32, %c8_i32_153 : i32
    %272 = tpu.assume_multiple %271, 8 : i32
    %273 = arith.index_cast %272 : i32 to index
    %c0_154 = arith.constant 0 : index
    %274 = vector.load %arg31[%273, %c0_154] : memref<64x64xf32, #tpu.memory_space<vmem>>, vector<8x64xf32>
    %c0_155 = arith.constant 0 : index
    %c0_156 = arith.constant 0 : index
    %275 = vector.load %arg19[%c0_155, %c0_156] : memref<64x64xf32, #tpu.memory_space<vmem>>, vector<64x64xf32>
    %cst_157 = arith.constant dense<0.000000e+00> : vector<8x64xf32>
    %276 = tpu.matmul %268, %275, %cst_157 {dimension_numbers = #tpu.dot_dimension_numbers<[1], [0], [0], [1], [0, 0, 1, 1], [], []>} : vector<8x64xf32>, vector<64x64xf32>, vector<8x64xf32> -> vector<8x64xf32>
    %277 = arith.addf %274, %276 : vector<8x64xf32>
    %278 = arith.negf %277 : vector<8x64xf32>
    %279 = math.exp %278 : vector<8x64xf32>
    %cst_158 = arith.constant 1.000000e+00 : f32
    %280 = vector.broadcast %cst_158 : f32 to vector<8x64xf32>
    %281 = arith.addf %280, %279 : vector<8x64xf32>
    %282 = arith.divf %280, %281 : vector<8x64xf32>
    %283 = arith.index_cast %272 : i32 to index
    %c0_159 = arith.constant 0 : index
    %284 = vector.load %arg32[%283, %c0_159] : memref<64x64xf32, #tpu.memory_space<vmem>>, vector<8x64xf32>
    %c0_160 = arith.constant 0 : index
    %c0_161 = arith.constant 0 : index
    %285 = vector.load %arg20[%c0_160, %c0_161] : memref<64x64xf32, #tpu.memory_space<vmem>>, vector<64x64xf32>
    %cst_162 = arith.constant dense<0.000000e+00> : vector<8x64xf32>
    %286 = tpu.matmul %268, %285, %cst_162 {dimension_numbers = #tpu.dot_dimension_numbers<[1], [0], [0], [1], [0, 0, 1, 1], [], []>} : vector<8x64xf32>, vector<64x64xf32>, vector<8x64xf32> -> vector<8x64xf32>
    %287 = arith.addf %284, %286 : vector<8x64xf32>
    %288 = arith.negf %287 : vector<8x64xf32>
    %289 = math.exp %288 : vector<8x64xf32>
    %cst_163 = arith.constant 1.000000e+00 : f32
    %290 = vector.broadcast %cst_163 : f32 to vector<8x64xf32>
    %291 = arith.addf %290, %289 : vector<8x64xf32>
    %292 = arith.divf %290, %291 : vector<8x64xf32>
    %293 = arith.index_cast %272 : i32 to index
    %c0_164 = arith.constant 0 : index
    %294 = vector.load %arg33[%293, %c0_164] : memref<64x64xf32, #tpu.memory_space<vmem>>, vector<8x64xf32>
    %c0_165 = arith.constant 0 : index
    %c0_166 = arith.constant 0 : index
    %295 = vector.load %arg21[%c0_165, %c0_166] : memref<64x64xf32, #tpu.memory_space<vmem>>, vector<64x64xf32>
    %cst_167 = arith.constant dense<0.000000e+00> : vector<8x64xf32>
    %296 = tpu.matmul %268, %295, %cst_167 {dimension_numbers = #tpu.dot_dimension_numbers<[1], [0], [0], [1], [0, 0, 1, 1], [], []>} : vector<8x64xf32>, vector<64x64xf32>, vector<8x64xf32> -> vector<8x64xf32>
    %297 = arith.addf %294, %296 : vector<8x64xf32>
    %298 = math.tanh %297 : vector<8x64xf32>
    %299 = arith.index_cast %272 : i32 to index
    %c0_168 = arith.constant 0 : index
    %300 = vector.load %arg34[%299, %c0_168] : memref<64x64xf32, #tpu.memory_space<vmem>>, vector<8x64xf32>
    %c0_169 = arith.constant 0 : index
    %c0_170 = arith.constant 0 : index
    %301 = vector.load %arg22[%c0_169, %c0_170] : memref<64x64xf32, #tpu.memory_space<vmem>>, vector<64x64xf32>
    %cst_171 = arith.constant dense<0.000000e+00> : vector<8x64xf32>
    %302 = tpu.matmul %268, %301, %cst_171 {dimension_numbers = #tpu.dot_dimension_numbers<[1], [0], [0], [1], [0, 0, 1, 1], [], []>} : vector<8x64xf32>, vector<64x64xf32>, vector<8x64xf32> -> vector<8x64xf32>
    %303 = arith.addf %300, %302 : vector<8x64xf32>
    %304 = arith.negf %303 : vector<8x64xf32>
    %305 = math.exp %304 : vector<8x64xf32>
    %cst_172 = arith.constant 1.000000e+00 : f32
    %306 = vector.broadcast %cst_172 : f32 to vector<8x64xf32>
    %307 = arith.addf %306, %305 : vector<8x64xf32>
    %308 = arith.divf %306, %307 : vector<8x64xf32>
    %309 = arith.mulf %292, %266 : vector<8x64xf32>
    %310 = arith.mulf %282, %298 : vector<8x64xf32>
    %311 = arith.addf %309, %310 : vector<8x64xf32>
    %312 = math.tanh %311 : vector<8x64xf32>
    %313 = arith.mulf %308, %312 : vector<8x64xf32>
    %314 = arith.index_cast %272 : i32 to index
    %c0_173 = arith.constant 0 : index
    %315 = vector.load %arg35[%314, %c0_173] : memref<64x64xf32, #tpu.memory_space<vmem>>, vector<8x64xf32>
    tpu.vector_store %arg35[%314, %c0_173], %313 {strides = array<i32>} : memref<64x64xf32, #tpu.memory_space<vmem>>, vector<8x64xf32>,
    %c6_i32 = arith.constant 6 : i32
    %c8_i32_174 = arith.constant 8 : i32
    %316 = arith.muli %c6_i32, %c8_i32_174 : i32
    %317 = tpu.assume_multiple %316, 8 : i32
    %318 = arith.index_cast %317 : i32 to index
    %c0_175 = arith.constant 0 : index
    %319 = vector.load %arg31[%318, %c0_175] : memref<64x64xf32, #tpu.memory_space<vmem>>, vector<8x64xf32>
    %c0_176 = arith.constant 0 : index
    %c0_177 = arith.constant 0 : index
    %320 = vector.load %arg19[%c0_176, %c0_177] : memref<64x64xf32, #tpu.memory_space<vmem>>, vector<64x64xf32>
    %cst_178 = arith.constant dense<0.000000e+00> : vector<8x64xf32>
    %321 = tpu.matmul %313, %320, %cst_178 {dimension_numbers = #tpu.dot_dimension_numbers<[1], [0], [0], [1], [0, 0, 1, 1], [], []>} : vector<8x64xf32>, vector<64x64xf32>, vector<8x64xf32> -> vector<8x64xf32>
    %322 = arith.addf %319, %321 : vector<8x64xf32>
    %323 = arith.negf %322 : vector<8x64xf32>
    %324 = math.exp %323 : vector<8x64xf32>
    %cst_179 = arith.constant 1.000000e+00 : f32
    %325 = vector.broadcast %cst_179 : f32 to vector<8x64xf32>
    %326 = arith.addf %325, %324 : vector<8x64xf32>
    %327 = arith.divf %325, %326 : vector<8x64xf32>
    %328 = arith.index_cast %317 : i32 to index
    %c0_180 = arith.constant 0 : index
    %329 = vector.load %arg32[%328, %c0_180] : memref<64x64xf32, #tpu.memory_space<vmem>>, vector<8x64xf32>
    %c0_181 = arith.constant 0 : index
    %c0_182 = arith.constant 0 : index
    %330 = vector.load %arg20[%c0_181, %c0_182] : memref<64x64xf32, #tpu.memory_space<vmem>>, vector<64x64xf32>
    %cst_183 = arith.constant dense<0.000000e+00> : vector<8x64xf32>
    %331 = tpu.matmul %313, %330, %cst_183 {dimension_numbers = #tpu.dot_dimension_numbers<[1], [0], [0], [1], [0, 0, 1, 1], [], []>} : vector<8x64xf32>, vector<64x64xf32>, vector<8x64xf32> -> vector<8x64xf32>
    %332 = arith.addf %329, %331 : vector<8x64xf32>
    %333 = arith.negf %332 : vector<8x64xf32>
    %334 = math.exp %333 : vector<8x64xf32>
    %cst_184 = arith.constant 1.000000e+00 : f32
    %335 = vector.broadcast %cst_184 : f32 to vector<8x64xf32>
    %336 = arith.addf %335, %334 : vector<8x64xf32>
    %337 = arith.divf %335, %336 : vector<8x64xf32>
    %338 = arith.index_cast %317 : i32 to index
    %c0_185 = arith.constant 0 : index
    %339 = vector.load %arg33[%338, %c0_185] : memref<64x64xf32, #tpu.memory_space<vmem>>, vector<8x64xf32>
    %c0_186 = arith.constant 0 : index
    %c0_187 = arith.constant 0 : index
    %340 = vector.load %arg21[%c0_186, %c0_187] : memref<64x64xf32, #tpu.memory_space<vmem>>, vector<64x64xf32>
    %cst_188 = arith.constant dense<0.000000e+00> : vector<8x64xf32>
    %341 = tpu.matmul %313, %340, %cst_188 {dimension_numbers = #tpu.dot_dimension_numbers<[1], [0], [0], [1], [0, 0, 1, 1], [], []>} : vector<8x64xf32>, vector<64x64xf32>, vector<8x64xf32> -> vector<8x64xf32>
    %342 = arith.addf %339, %341 : vector<8x64xf32>
    %343 = math.tanh %342 : vector<8x64xf32>
    %344 = arith.index_cast %317 : i32 to index
    %c0_189 = arith.constant 0 : index
    %345 = vector.load %arg34[%344, %c0_189] : memref<64x64xf32, #tpu.memory_space<vmem>>, vector<8x64xf32>
    %c0_190 = arith.constant 0 : index
    %c0_191 = arith.constant 0 : index
    %346 = vector.load %arg22[%c0_190, %c0_191] : memref<64x64xf32, #tpu.memory_space<vmem>>, vector<64x64xf32>
    %cst_192 = arith.constant dense<0.000000e+00> : vector<8x64xf32>
    %347 = tpu.matmul %313, %346, %cst_192 {dimension_numbers = #tpu.dot_dimension_numbers<[1], [0], [0], [1], [0, 0, 1, 1], [], []>} : vector<8x64xf32>, vector<64x64xf32>, vector<8x64xf32> -> vector<8x64xf32>
    %348 = arith.addf %345, %347 : vector<8x64xf32>
    %349 = arith.negf %348 : vector<8x64xf32>
    %350 = math.exp %349 : vector<8x64xf32>
    %cst_193 = arith.constant 1.000000e+00 : f32
    %351 = vector.broadcast %cst_193 : f32 to vector<8x64xf32>
    %352 = arith.addf %351, %350 : vector<8x64xf32>
    %353 = arith.divf %351, %352 : vector<8x64xf32>
    %354 = arith.mulf %337, %311 : vector<8x64xf32>
    %355 = arith.mulf %327, %343 : vector<8x64xf32>
    %356 = arith.addf %354, %355 : vector<8x64xf32>
    %357 = math.tanh %356 : vector<8x64xf32>
    %358 = arith.mulf %353, %357 : vector<8x64xf32>
    %359 = arith.index_cast %317 : i32 to index
    %c0_194 = arith.constant 0 : index
    %360 = vector.load %arg35[%359, %c0_194] : memref<64x64xf32, #tpu.memory_space<vmem>>, vector<8x64xf32>
    tpu.vector_store %arg35[%359, %c0_194], %358 {strides = array<i32>} : memref<64x64xf32, #tpu.memory_space<vmem>>, vector<8x64xf32>,
    %c7_i32 = arith.constant 7 : i32
    %c8_i32_195 = arith.constant 8 : i32
    %361 = arith.muli %c7_i32, %c8_i32_195 : i32
    %362 = tpu.assume_multiple %361, 8 : i32
    %363 = arith.index_cast %362 : i32 to index
    %c0_196 = arith.constant 0 : index
    %364 = vector.load %arg31[%363, %c0_196] : memref<64x64xf32, #tpu.memory_space<vmem>>, vector<8x64xf32>
    %c0_197 = arith.constant 0 : index
    %c0_198 = arith.constant 0 : index
    %365 = vector.load %arg19[%c0_197, %c0_198] : memref<64x64xf32, #tpu.memory_space<vmem>>, vector<64x64xf32>
    %cst_199 = arith.constant dense<0.000000e+00> : vector<8x64xf32>
    %366 = tpu.matmul %358, %365, %cst_199 {dimension_numbers = #tpu.dot_dimension_numbers<[1], [0], [0], [1], [0, 0, 1, 1], [], []>} : vector<8x64xf32>, vector<64x64xf32>, vector<8x64xf32> -> vector<8x64xf32>
    %367 = arith.addf %364, %366 : vector<8x64xf32>
    %368 = arith.negf %367 : vector<8x64xf32>
    %369 = math.exp %368 : vector<8x64xf32>
    %cst_200 = arith.constant 1.000000e+00 : f32
    %370 = vector.broadcast %cst_200 : f32 to vector<8x64xf32>
    %371 = arith.addf %370, %369 : vector<8x64xf32>
    %372 = arith.divf %370, %371 : vector<8x64xf32>
    %373 = arith.index_cast %362 : i32 to index
    %c0_201 = arith.constant 0 : index
    %374 = vector.load %arg32[%373, %c0_201] : memref<64x64xf32, #tpu.memory_space<vmem>>, vector<8x64xf32>
    %c0_202 = arith.constant 0 : index
    %c0_203 = arith.constant 0 : index
    %375 = vector.load %arg20[%c0_202, %c0_203] : memref<64x64xf32, #tpu.memory_space<vmem>>, vector<64x64xf32>
    %cst_204 = arith.constant dense<0.000000e+00> : vector<8x64xf32>
    %376 = tpu.matmul %358, %375, %cst_204 {dimension_numbers = #tpu.dot_dimension_numbers<[1], [0], [0], [1], [0, 0, 1, 1], [], []>} : vector<8x64xf32>, vector<64x64xf32>, vector<8x64xf32> -> vector<8x64xf32>
    %377 = arith.addf %374, %376 : vector<8x64xf32>
    %378 = arith.negf %377 : vector<8x64xf32>
    %379 = math.exp %378 : vector<8x64xf32>
    %cst_205 = arith.constant 1.000000e+00 : f32
    %380 = vector.broadcast %cst_205 : f32 to vector<8x64xf32>
    %381 = arith.addf %380, %379 : vector<8x64xf32>
    %382 = arith.divf %380, %381 : vector<8x64xf32>
    %383 = arith.index_cast %362 : i32 to index
    %c0_206 = arith.constant 0 : index
    %384 = vector.load %arg33[%383, %c0_206] : memref<64x64xf32, #tpu.memory_space<vmem>>, vector<8x64xf32>
    %c0_207 = arith.constant 0 : index
    %c0_208 = arith.constant 0 : index
    %385 = vector.load %arg21[%c0_207, %c0_208] : memref<64x64xf32, #tpu.memory_space<vmem>>, vector<64x64xf32>
    %cst_209 = arith.constant dense<0.000000e+00> : vector<8x64xf32>
    %386 = tpu.matmul %358, %385, %cst_209 {dimension_numbers = #tpu.dot_dimension_numbers<[1], [0], [0], [1], [0, 0, 1, 1], [], []>} : vector<8x64xf32>, vector<64x64xf32>, vector<8x64xf32> -> vector<8x64xf32>
    %387 = arith.addf %384, %386 : vector<8x64xf32>
    %388 = math.tanh %387 : vector<8x64xf32>
    %389 = arith.index_cast %362 : i32 to index
    %c0_210 = arith.constant 0 : index
    %390 = vector.load %arg34[%389, %c0_210] : memref<64x64xf32, #tpu.memory_space<vmem>>, vector<8x64xf32>
    %c0_211 = arith.constant 0 : index
    %c0_212 = arith.constant 0 : index
    %391 = vector.load %arg22[%c0_211, %c0_212] : memref<64x64xf32, #tpu.memory_space<vmem>>, vector<64x64xf32>
    %cst_213 = arith.constant dense<0.000000e+00> : vector<8x64xf32>
    %392 = tpu.matmul %358, %391, %cst_213 {dimension_numbers = #tpu.dot_dimension_numbers<[1], [0], [0], [1], [0, 0, 1, 1], [], []>} : vector<8x64xf32>, vector<64x64xf32>, vector<8x64xf32> -> vector<8x64xf32>
    %393 = arith.addf %390, %392 : vector<8x64xf32>
    %394 = arith.negf %393 : vector<8x64xf32>
    %395 = math.exp %394 : vector<8x64xf32>
    %cst_214 = arith.constant 1.000000e+00 : f32
    %396 = vector.broadcast %cst_214 : f32 to vector<8x64xf32>
    %397 = arith.addf %396, %395 : vector<8x64xf32>
    %398 = arith.divf %396, %397 : vector<8x64xf32>
    %399 = arith.mulf %382, %356 : vector<8x64xf32>
    %400 = arith.mulf %372, %388 : vector<8x64xf32>
    %401 = arith.addf %399, %400 : vector<8x64xf32>
    %402 = math.tanh %401 : vector<8x64xf32>
    %403 = arith.mulf %398, %402 : vector<8x64xf32>
    %404 = arith.index_cast %362 : i32 to index
    %c0_215 = arith.constant 0 : index
    %405 = vector.load %arg35[%404, %c0_215] : memref<64x64xf32, #tpu.memory_space<vmem>>, vector<8x64xf32>
    tpu.vector_store %arg35[%404, %c0_215], %403 {strides = array<i32>} : memref<64x64xf32, #tpu.memory_space<vmem>>, vector<8x64xf32>,
    %c8_i32_216 = arith.constant 8 : i32
    %c0_217 = arith.constant 0 : index
    %c0_218 = arith.constant 0 : index
    %406 = vector.load %arg29[%c0_217, %c0_218] : memref<8x64xf32, #tpu.memory_space<vmem>>, vector<8x64xf32>
    tpu.vector_store %arg29[%c0_217, %c0_218], %403 {strides = array<i32>} : memref<8x64xf32, #tpu.memory_space<vmem>>, vector<8x64xf32>,
    %c0_219 = arith.constant 0 : index
    %c0_220 = arith.constant 0 : index
    %407 = vector.load %arg30[%c0_219, %c0_220] : memref<8x64xf32, #tpu.memory_space<vmem>>, vector<8x64xf32>
    tpu.vector_store %arg30[%c0_219, %c0_220], %401 {strides = array<i32>} : memref<8x64xf32, #tpu.memory_space<vmem>>, vector<8x64xf32>,
    %c0_221 = arith.constant 0 : index
    %c0_222 = arith.constant 0 : index
    %408 = vector.load %arg35[%c0_221, %c0_222] : memref<64x64xf32, #tpu.memory_space<vmem>>, vector<64x64xf32>
    %c0_223 = arith.constant 0 : index
    %c0_224 = arith.constant 0 : index
    %409 = vector.load %arg23[%c0_223, %c0_224] : memref<64x256xf32, #tpu.memory_space<vmem>>, vector<64x256xf32>
    %cst_225 = arith.constant dense<0.000000e+00> : vector<64x256xf32>
    %410 = tpu.matmul %408, %409, %cst_225 {dimension_numbers = #tpu.dot_dimension_numbers<[1], [0], [0], [1], [0, 0, 1, 1], [], []>} : vector<64x64xf32>, vector<64x256xf32>, vector<64x256xf32> -> vector<64x256xf32>
    %c0_226 = arith.constant 0 : index
    %c0_227 = arith.constant 0 : index
    %411 = vector.load %arg2[%c0_226, %c0_227] : memref<64x4xf32, #tpu.memory_space<vmem>>, vector<64x4xf32>
    %c0_228 = arith.constant 0 : index
    %c0_229 = arith.constant 0 : index
    %412 = vector.load %arg24[%c0_228, %c0_229] : memref<4x256xf32, #tpu.memory_space<vmem>>, vector<4x256xf32>
    %cst_230 = arith.constant dense<0.000000e+00> : vector<64x256xf32>
    %413 = tpu.matmul %411, %412, %cst_230 {dimension_numbers = #tpu.dot_dimension_numbers<[1], [0], [0], [1], [0, 0, 1, 1], [], []>} : vector<64x4xf32>, vector<4x256xf32>, vector<64x256xf32> -> vector<64x256xf32>
    %414 = arith.addf %410, %413 : vector<64x256xf32>
    %c0_231 = arith.constant 0 : index
    %c0_232 = arith.constant 0 : index
    %415 = vector.load %arg25[%c0_231, %c0_232] : memref<1x256xf32, #tpu.memory_space<vmem>>, vector<1x256xf32>
    %416 = vector.broadcast %415 : vector<1x256xf32> to vector<64x256xf32>
    %417 = arith.addf %414, %416 : vector<64x256xf32>
    %cst_233 = arith.constant 0.000000e+00 : f32
    %418 = vector.broadcast %cst_233 : f32 to vector<64x256xf32>
    %419 = arith.maximumf %417, %418 : vector<64x256xf32>
    %c0_234 = arith.constant 0 : index
    %c0_235 = arith.constant 0 : index
    %420 = vector.load %arg26[%c0_234, %c0_235] : memref<256x1xf32, #tpu.memory_space<vmem>>, vector<256x1xf32>
    %cst_236 = arith.constant dense<0.000000e+00> : vector<64x1xf32>
    %421 = tpu.matmul %419, %420, %cst_236 {dimension_numbers = #tpu.dot_dimension_numbers<[1], [0], [0], [1], [0, 0, 1, 1], [], []>} : vector<64x256xf32>, vector<256x1xf32>, vector<64x1xf32> -> vector<64x1xf32>
    %c0_237 = arith.constant 0 : index
    %c0_238 = arith.constant 0 : index
    %422 = vector.load %arg27[%c0_237, %c0_238] : memref<1x1xf32, #tpu.memory_space<vmem>>, vector<1x1xf32>
    %423 = vector.broadcast %422 : vector<1x1xf32> to vector<64x1xf32>
    %424 = arith.addf %421, %423 : vector<64x1xf32>
    %c0_239 = arith.constant 0 : index
    %c0_240 = arith.constant 0 : index
    %425 = vector.load %arg28[%c0_239, %c0_240] : memref<64x1xf32, #tpu.memory_space<vmem>>, vector<64x1xf32>
    tpu.vector_store %arg28[%c0_239, %c0_240], %424 {strides = array<i32>} : memref<64x1xf32, #tpu.memory_space<vmem>>, vector<64x1xf32>,
    return
  }
  func.func @transform_0(%arg0: i32) -> (i32, i32) {
    %c0_i32 = arith.constant 0 : i32
    %c0_i32_0 = arith.constant 0 : i32
    %c0_i32_1 = arith.constant 0 : i32
    return %c0_i32, %c0_i32_0 : i32, i32
  }
  func.func @transform_1(%arg0: i32) -> (i32, i32) {
    %c0_i32 = arith.constant 0 : i32
    %c0_i32_0 = arith.constant 0 : i32
    %c0_i32_1 = arith.constant 0 : i32
    return %c0_i32, %c0_i32_0 : i32, i32
  }
  func.func @transform_2(%arg0: i32) -> (i32, i32) {
    %c0_i32 = arith.constant 0 : i32
    %c0_i32_0 = arith.constant 0 : i32
    %c0_i32_1 = arith.constant 0 : i32
    return %c0_i32, %c0_i32_0 : i32, i32
  }
  func.func @transform_3(%arg0: i32) -> (i32, i32) {
    %c0_i32 = arith.constant 0 : i32
    %c0_i32_0 = arith.constant 0 : i32
    %c0_i32_1 = arith.constant 0 : i32
    return %c0_i32, %c0_i32_0 : i32, i32
  }
  func.func @transform_4(%arg0: i32) -> (i32, i32) {
    %c0_i32 = arith.constant 0 : i32
    %c0_i32_0 = arith.constant 0 : i32
    %c0_i32_1 = arith.constant 0 : i32
    return %c0_i32, %c0_i32_0 : i32, i32
  }
  func.func @transform_5(%arg0: i32) -> (i32, i32) {
    %c0_i32 = arith.constant 0 : i32
    %c0_i32_0 = arith.constant 0 : i32
    %c0_i32_1 = arith.constant 0 : i32
    return %c0_i32, %c0_i32_0 : i32, i32
  }
  func.func @transform_6(%arg0: i32) -> (i32, i32) {
    %c0_i32 = arith.constant 0 : i32
    %c0_i32_0 = arith.constant 0 : i32
    %c0_i32_1 = arith.constant 0 : i32
    return %c0_i32, %c0_i32_0 : i32, i32
  }
  func.func @transform_7(%arg0: i32) -> (i32, i32) {
    %c0_i32 = arith.constant 0 : i32
    %c0_i32_0 = arith.constant 0 : i32
    %c0_i32_1 = arith.constant 0 : i32
    return %c0_i32, %c0_i32_0 : i32, i32
  }
  func.func @transform_8(%arg0: i32) -> (i32, i32) {
    %c0_i32 = arith.constant 0 : i32
    %c0_i32_0 = arith.constant 0 : i32
    %c0_i32_1 = arith.constant 0 : i32
    return %c0_i32, %c0_i32_0 : i32, i32
  }
  func.func @transform_9(%arg0: i32) -> (i32, i32) {
    %c0_i32 = arith.constant 0 : i32
    %c0_i32_0 = arith.constant 0 : i32
    %c0_i32_1 = arith.constant 0 : i32
    return %c0_i32, %c0_i32_0 : i32, i32
  }
  func.func @transform_10(%arg0: i32) -> (i32, i32) {
    %c0_i32 = arith.constant 0 : i32
    %c0_i32_0 = arith.constant 0 : i32
    %c0_i32_1 = arith.constant 0 : i32
    return %c0_i32, %c0_i32_0 : i32, i32
  }
  func.func @transform_11(%arg0: i32) -> (i32, i32) {
    %c0_i32 = arith.constant 0 : i32
    %c0_i32_0 = arith.constant 0 : i32
    %c0_i32_1 = arith.constant 0 : i32
    return %c0_i32, %c0_i32_0 : i32, i32
  }
  func.func @transform_12(%arg0: i32) -> (i32, i32) {
    %c0_i32 = arith.constant 0 : i32
    %c0_i32_0 = arith.constant 0 : i32
    %c0_i32_1 = arith.constant 0 : i32
    return %c0_i32, %c0_i32_0 : i32, i32
  }
  func.func @transform_13(%arg0: i32) -> (i32, i32) {
    %c0_i32 = arith.constant 0 : i32
    %c0_i32_0 = arith.constant 0 : i32
    %c0_i32_1 = arith.constant 0 : i32
    return %c0_i32, %c0_i32_0 : i32, i32
  }
  func.func @transform_14(%arg0: i32) -> (i32, i32) {
    %c0_i32 = arith.constant 0 : i32
    %c0_i32_0 = arith.constant 0 : i32
    %c0_i32_1 = arith.constant 0 : i32
    return %c0_i32, %c0_i32_0 : i32, i32
  }
  func.func @transform_15(%arg0: i32) -> (i32, i32) {
    %c0_i32 = arith.constant 0 : i32
    %c0_i32_0 = arith.constant 0 : i32
    %c0_i32_1 = arith.constant 0 : i32
    return %c0_i32, %c0_i32_0 : i32, i32
  }
  func.func @transform_16(%arg0: i32) -> (i32, i32) {
    %c0_i32 = arith.constant 0 : i32
    %c0_i32_0 = arith.constant 0 : i32
    %c0_i32_1 = arith.constant 0 : i32
    return %c0_i32, %c0_i32_0 : i32, i32
  }
  func.func @transform_17(%arg0: i32) -> (i32, i32) {
    %c0_i32 = arith.constant 0 : i32
    %c0_i32_0 = arith.constant 0 : i32
    %c0_i32_1 = arith.constant 0 : i32
    return %c0_i32, %c0_i32_0 : i32, i32
  }
  func.func @transform_18(%arg0: i32) -> (i32, i32) {
    %c0_i32 = arith.constant 0 : i32
    %c0_i32_0 = arith.constant 0 : i32
    %c0_i32_1 = arith.constant 0 : i32
    return %c0_i32, %c0_i32_0 : i32, i32
  }
  func.func @transform_19(%arg0: i32) -> (i32, i32) {
    %c0_i32 = arith.constant 0 : i32
    %c0_i32_0 = arith.constant 0 : i32
    %c0_i32_1 = arith.constant 0 : i32
    return %c0_i32, %c0_i32_0 : i32, i32
  }
  func.func @transform_20(%arg0: i32) -> (i32, i32) {
    %c0_i32 = arith.constant 0 : i32
    %c0_i32_0 = arith.constant 0 : i32
    %c0_i32_1 = arith.constant 0 : i32
    return %c0_i32, %c0_i32_0 : i32, i32
  }
  func.func @transform_21(%arg0: i32) -> (i32, i32) {
    %c0_i32 = arith.constant 0 : i32
    %c0_i32_0 = arith.constant 0 : i32
    %c0_i32_1 = arith.constant 0 : i32
    return %c0_i32, %c0_i32_0 : i32, i32
  }
  func.func @transform_22(%arg0: i32) -> (i32, i32) {
    %c0_i32 = arith.constant 0 : i32
    %c0_i32_0 = arith.constant 0 : i32
    %c0_i32_1 = arith.constant 0 : i32
    return %c0_i32, %c0_i32_0 : i32, i32
  }
  func.func @transform_23(%arg0: i32) -> (i32, i32) {
    %c0_i32 = arith.constant 0 : i32
    %c0_i32_0 = arith.constant 0 : i32
    %c0_i32_1 = arith.constant 0 : i32
    return %c0_i32, %c0_i32_0 : i32, i32
  }
  func.func @transform_24(%arg0: i32) -> (i32, i32) {
    %c0_i32 = arith.constant 0 : i32
    %c0_i32_0 = arith.constant 0 : i32
    %c0_i32_1 = arith.constant 0 : i32
    return %c0_i32, %c0_i32_0 : i32, i32
  }
  func.func @transform_25(%arg0: i32) -> (i32, i32) {
    %c0_i32 = arith.constant 0 : i32
    %c0_i32_0 = arith.constant 0 : i32
    %c0_i32_1 = arith.constant 0 : i32
    return %c0_i32, %c0_i32_0 : i32, i32
  }
  func.func @transform_26(%arg0: i32) -> (i32, i32) {
    %c0_i32 = arith.constant 0 : i32
    %c0_i32_0 = arith.constant 0 : i32
    %c0_i32_1 = arith.constant 0 : i32
    return %c0_i32, %c0_i32_0 : i32, i32
  }
  func.func @transform_27(%arg0: i32) -> (i32, i32) {
    %c0_i32 = arith.constant 0 : i32
    %c0_i32_0 = arith.constant 0 : i32
    %c0_i32_1 = arith.constant 0 : i32
    return %c0_i32, %c0_i32_0 : i32, i32
  }
  func.func @transform_28(%arg0: i32) -> (i32, i32) {
    %c0_i32 = arith.constant 0 : i32
    %c0_i32_0 = arith.constant 0 : i32
    %c0_i32_1 = arith.constant 0 : i32
    return %c0_i32, %c0_i32_0 : i32, i32
  }
  func.func @transform_29(%arg0: i32) -> (i32, i32) {
    %c0_i32 = arith.constant 0 : i32
    %c0_i32_0 = arith.constant 0 : i32
    %c0_i32_1 = arith.constant 0 : i32
    return %c0_i32, %c0_i32_0 : i32, i32
  }
}

</mosaic_0001>

<bundles_post_ra>
// kernel: tpu_custom_call.1
= control target key start
LH: loop header
LB: loop body
LE: loop exit
PB: predicated region body
PF: predicated region fallthrough
CT: control target
= control target key end

     0   :  { %s6782_s6 = smov 1   ;;  %s6783_s10 = smov 2   ;;  %s7814_s0 = inlined_call_operand.smem [shape: u32[30], index: -1, kind: input, shape index: {}] }
   0x1   :  { %s6824_s5 = sld [smem:[%s7814_s0]]   ;;  %s6784_s14 = smov 3  }
   0x2   :  { %s6829_s9 = sld [smem:[%s7814_s0 + %s6782_s6]]   ;;  %s6785_s18 = smov 4  }
   0x3   :  { %s6834_s13 = sld [smem:[%s7814_s0 + %s6783_s10]]   ;;  %s6786_s22 = smov 5  }
   0x4   :  { %s6839_s17 = sld [smem:[%s7814_s0 + %s6784_s14]]   ;;  %s6787_s26 = smov 6  }
   0x5   :  { %s6844_s21 = sld [smem:[%s7814_s0 + %s6785_s18]]   ;;  %s6788_s30 = smov 7  }
   0x6   :  { %s6849_s25 = sld [smem:[%s7814_s0 + %s6786_s22]]   ;;  %s6789_s4 = smov 8  }
   0x7   :  { %s6854_s29 = sld [smem:[%s7814_s0 + %s6787_s26]]   ;;  %s6790_s10 = smov 9  }
   0x8   :  { %7819 = sst [smem:[#allocation14_spill]] %s6829_s9  ;;  %s6791_s15 = smov 10  }
   0x9   :  { %7820 = sst [smem:[#allocation15_spill]] %s6834_s13  ;;  %s6792_s20 = smov 11  }
   0xa   :  { %7821 = sst [smem:[#allocation16_spill]] %s6839_s17  ;;  %s6793_s26 = smov 12  }
   0xb   :  { %s6859_s3 = sld [smem:[%s7814_s0 + %s6788_s30]]   ;;  %s6794_s1 = smov 13  }
   0xc   :  { %s6864_s8 = sld [smem:[%s7814_s0 + %s6789_s4]]   ;;  %s6795_s7 = smov 14  }
   0xd   :  { %s6869_s14 = sld [smem:[%s7814_s0 + %s6790_s10]]   ;;  %s6797_s22 = smov 16  }
   0xe   :  { %s6874_s19 = sld [smem:[%s7814_s0 + %s6791_s15]]   ;;  %s6796_s15 = smov 15  }
   0xf   :  { %s6879_s24 = sld [smem:[%s7814_s0 + %s6792_s20]]   ;;  %s6798_s28 = smov 17  }
  0x10   :  { %s6884_s30 = sld [smem:[%s7814_s0 + %s6793_s26]]   ;;  %s6808_s16 = smov 27  }
  0x11   :  { %s6889_s6 = sld [smem:[%s7814_s0 + %s6794_s1]]   ;;  %s6809_s23 = smov 28  }
  0x12   :  { %s6894_s12 = sld [smem:[%s7814_s0 + %s6795_s7]]   ;;  %s6799_s7 = smov 18  }
  0x13   :  { %s6899_s20 = sld [smem:[%s7814_s0 + %s6796_s15]]   ;;  %s6800_s15 = smov 19  }
  0x14   :  { %s6904_s27 = sld [smem:[%s7814_s0 + %s6797_s22]]   ;;  %s6801_s22 = smov 20  }
  0x15   :  { %s6909_s4 = sld [smem:[%s7814_s0 + %s6798_s28]]   ;;  %s6802_s28 = smov 21  }
  0x16   :  { %s6914_s9 = sld [smem:[%s7814_s0 + %s6799_s7]]   ;;  %s6803_s7 = smov 22  }
  0x17   :  { %s6919_s17 = sld [smem:[%s7814_s0 + %s6800_s15]]   ;;  %s6804_s15 = smov 23  }
  0x18   :  { %7822 = sst [smem:[#allocation17_spill]] %s6894_s12  ;;  %s6810_s1 = smov 29  }
  0x19   :  { %7823 = sst [smem:[#allocation18_spill]] %s6899_s20 }
  0x1a   :  { %7824 = sst [smem:[#allocation19_spill]] %s6904_s27 }
  0x1b   :  { %7825 = sst [smem:[#allocation20_spill]] %s6909_s4 }
  0x1c   :  { %s6924_s27 = sld [smem:[%s7814_s0 + %s6801_s22]]   ;;  %s6805_s22 = smov 24  }
  0x1d   :  { %s6929_s4 = sld [smem:[%s7814_s0 + %s6802_s28]]   ;;  %s6806_s28 = smov 25  }
  0x1e   :  { %s6934_s20 = sld [smem:[%s7814_s0 + %s6803_s7]]   ;;  %s6807_s7 = smov 26  }
  0x1f   :  { %s6939_s12 = sld [smem:[%s7814_s0 + %s6804_s15]]  }
  0x20   :  { %s6944_s13 = sld [smem:[%s7814_s0 + %s6805_s22]]  }
  0x23   :  { %7826 = sst [smem:[#allocation21_spill]] %s6929_s4 }
  0x24   :  { %7827 = sst [smem:[#allocation22_spill]] %s6934_s20 }
  0x25   :  { %7828 = sst [smem:[#allocation23_spill]] %s6939_s12 }
  0x26   :  { %7829 = sst [smem:[#allocation24_spill]] %s6944_s13 }
  0x27   :  { %s6949_s4 = sld [smem:[%s7814_s0 + %s6806_s28]]  }
  0x28   :  { %s4511_s20 = sld [smem:[%s7814_s0 + %s6807_s7]]  }
  0x29   :  { %s6957_s12 = sld [smem:[%s7814_s0 + %s6808_s16]]  }
  0x2a   :  { %s6962_s13 = sld [smem:[%s7814_s0 + %s6809_s23]]  }
  0x2d   :  { %7830 = sst [smem:[#allocation25_spill]] %s6949_s4 }
  0x2e   :  { %s6967_s4 = sld [smem:[%s7814_s0 + %s6810_s1]]   ;;  %v65_v0 = vstv %s4511_s20 }
  0x2f   :  { %66 = vst [vmem:[#allocation7] sm:$0x1] %v65_v0 }
  0x30   :  { %67 = vsyncpa [#allocation9], 0  ;;  %v131_v1 = vld [vmem:[%s6844_s21] sm:$0xff]  ;;  %v132_v2 = vld [vmem:[%s6844_s21 + $0x8] sm:$0xff]  ;;  %vm140_vm0 = vcmask 130048  }
  0x31   :  { %v123_v3 = vld [vmem:[%s6824_s5] sm:$0xff]  ;;  %v5959_v4 = vpack.c.bf16 %v132_v2, %v131_v1  ;;  %v124_v5 = vld [vmem:[%s6824_s5 + $0x8] sm:$0xff]  ;;  %v125_v8 = vld [vmem:[%s6824_s5 + $0x10] sm:$0xff] }
  0x32   :  { %5107 = vmatprep.mubr.msk.f32.mxu0 %vm140_vm0, %v123_v3  ;;  %v278_v6 = vld [vmem:[%s6854_s29] sm:$0xff]  ;;  %v279_v7 = vld [vmem:[%s6854_s29 + $0x8] sm:$0xff]  ;;  %v280_v10 = vld [vmem:[%s6854_s29 + $0x10] sm:$0xff] }
  0x33   :  { %5960 = vmatprep.subr.bf16.mxu0 %v5959_v4  ;;  %v5963_v9 = vpack.c.bf16 %v279_v7, %v278_v6  ;;  %v281_v11 = vld [vmem:[%s6854_s29 + $0x18] sm:$0xff]  ;;  %v282_v13 = vld [vmem:[%s6854_s29 + $0x20] sm:$0xff]  ;;  %v283_v14 = vld [vmem:[%s6854_s29 + $0x28] sm:$0xff] }
  0x34   :  { %5962 = vmatpush3.bf16.msra.mxu0 %v5959_v4  ;;  %v5967_v12 = vpack.c.bf16 %v281_v11, %v280_v10 }
  0x35   :  { %68 = vsyncpa [#allocation11], 0  ;;  %5964 = vmatprep.subr.bf16.mxu1 %v5963_v9  ;;  %v126_v15 = vld [vmem:[%s6824_s5 + $0x18] sm:$0xff]  ;;  %v5971_v16 = vpack.c.bf16 %v283_v14, %v282_v13  ;;  %v127_v17 = vld [vmem:[%s6824_s5 + $0x20] sm:$0xff]  ;;  %vm293_vm1 = vcmask 523264   ;;  %s7831_s0 = sld [smem:[#allocation21_spill]] }
  0x36   :  { %5966 = vmatpush3.bf16.msra.mxu1 %v5963_v9  ;;  %v128_v18 = vld [vmem:[%s6824_s5 + $0x28] sm:$0xff]  ;;  %v129_v19 = vld [vmem:[%s6824_s5 + $0x30] sm:$0xff]  ;;  %v130_v20 = vld [vmem:[%s6824_s5 + $0x38] sm:$0xff]  ;;  %s7832_s5 = sld [smem:[#allocation15_spill]]  ;;  %vm6812_vm2 = vmmov 0   ;;  %s7833_s21 = sld [smem:[#allocation17_spill]] }
  0x37   :  { %5108 = vmatmul.mubr.msk.f32.vlgmr.msra.gmra.mrb[0].mxu0 %vm140_vm0, %v124_v5  ;;  %5968 = vmatprep.subr.bf16.mxu1 %v5967_v12  ;;  %v284_v21 = vld [vmem:[%s6854_s29 + $0x30] sm:$0xff]  ;;  %v285_v22 = vld [vmem:[%s6854_s29 + $0x38] sm:$0xff]  ;;  %v431_v24 = vld [vmem:[%s6864_s8] sm:$0xff]  ;;  %s7835_s29 = sld [smem:[#allocation19_spill]]  ;;  %vm4002_vm3 = vcmask 1043456   ;;  %vm3977_vm4 = vcmask 31744  }
  0x38   :  { %5110 = vmatprep.mubr.msk.f32.mxu0 %vm140_vm0, %v125_v8  ;;  %v5975_v23 = vpack.c.bf16 %v285_v22, %v284_v21  ;;  %v432_v25 = vld [vmem:[%s6864_s8 + $0x8] sm:$0xff]  ;;  %v433_v26 = vld [vmem:[%s6864_s8 + $0x10] sm:$0xff]  ;;  %v434_v28 = vld [vmem:[%s6864_s8 + $0x18] sm:$0xff]  ;;  %vm4445_vm5 = vcmask 7168   ;;  %s6815_s20 = smov [#allocation10]  }
  0x39   :  { %v5979_v27 = vpack.c.bf16 %v432_v25, %v431_v24  ;;  %v5983_v29 = vpack.c.bf16 %v434_v28, %v433_v26  ;;  %v435_v30 = vld [vmem:[%s6864_s8 + $0x20] sm:$0xff]  ;;  %v436_v31 = vld [vmem:[%s6864_s8 + $0x28] sm:$0xff]  ;;  %v437_v58 = vld [vmem:[%s6864_s8 + $0x30] sm:$0xff] }
  0x3a   :  { %5970 = vmatpush3.bf16.msra.mxu1 %v5967_v12  ;;  %v5987_v32 = vpack.c.bf16 %v436_v31, %v435_v30  ;;  %v4515_v33 = vld [vmem:[%s6849_s25] ss:$0 sm:$0xff]  ;;  %v438_v59 = vld [vmem:[%s6864_s8 + $0x38] sm:$0xff]  ;;  %v576_v62 = vld [vmem:[%s6874_s19 + $0x8] sm:$0xff]  ;;  %s7834_s25 = sld [smem:[#allocation18_spill]]  ;;  %s7837_s8 = sld [smem:[#allocation16_spill]] }
  0x3b   :  { %5111 = vmatmul.mubr.msk.f32.gmra.mrb[2].mxu0 %vm140_vm0, %v126_v15  ;;  %5972 = vmatprep.subr.bf16.mxu1 %v5971_v16  ;;  %v5991_v60 = vpack.c.bf16 %v438_v59, %v437_v58  ;;  %v575_v61 = vld [vmem:[%s6874_s19] sm:$0xff]  ;;  %v712_v1 = vld [vmem:[%s6879_s24 + $0x8] sm:$0xff]  ;;  %v577_v2 = vld [vmem:[%s6874_s19 + $0x10] sm:$0xff] }
  0x3c   :  { %5113 = vmatprep.mubr.msk.f32.mxu0 %vm140_vm0, %v127_v17  ;;  %5980 = vmatprep.subr.bf16.mxu0 %v5979_v27  ;;  %v711_v63 = vld [vmem:[%s6879_s24] sm:$0xff]  ;;  %v5995_v0 = vpack.c.bf16 %v576_v62, %v575_v61  ;;  %v578_v3 = vld [vmem:[%s6874_s19 + $0x18] sm:$0xff]  ;;  %v580_v7 = vld [vmem:[%s6874_s19 + $0x28] sm:$0xff] }
  0x3d   :  { %5982 = vmatpush3.bf16.msra.mxu0 %v5979_v27  ;;  %v6027_v4 = vpack.c.bf16 %v712_v1, %v711_v63  ;;  %v5999_v5 = vpack.c.bf16 %v578_v3, %v577_v2  ;;  %v579_v6 = vld [vmem:[%s6874_s19 + $0x20] sm:$0xff]  ;;  %v581_v9 = vld [vmem:[%s6874_s19 + $0x30] sm:$0xff]  ;;  %v582_v10 = vld [vmem:[%s6874_s19 + $0x38] sm:$0xff] }
  0x3e   :  { %5974 = vmatpush3.bf16.msra.mxu1 %v5971_v16  ;;  %5984 = vmatprep.subr.bf16.mxu0 %v5983_v29  ;;  %v6003_v8 = vpack.c.bf16 %v580_v7, %v579_v6  ;;  %v6007_v11 = vpack.c.bf16 %v582_v10, %v581_v9  ;;  %v583_v12 = vld [vmem:[%s6874_s19 + $0x40] sm:$0xff]  ;;  %v584_v13 = vld [vmem:[%s6874_s19 + $0x48] sm:$0xff]  ;;  %v585_v15 = vld [vmem:[%s6874_s19 + $0x50] sm:$0xff] }
  0x3f   :  { %5114 = vmatmul.mubr.msk.f32.gmra.mrb[4].mxu0 %vm140_vm0, %v128_v18  ;;  %5976 = vmatprep.subr.bf16.mxu1 %v5975_v23  ;;  %v6011_v14 = vpack.c.bf16 %v584_v13, %v583_v12  ;;  %v586_v16 = vld [vmem:[%s6874_s19 + $0x58] sm:$0xff]  ;;  %v587_v18 = vld [vmem:[%s6874_s19 + $0x60] sm:$0xff]  ;;  %v713_v26 = vld [vmem:[%s6879_s24 + $0x10] sm:$0xff] }
  0x40   :  { %5116 = vmatprep.mubr.msk.f32.mxu0 %vm140_vm0, %v129_v19  ;;  %v6015_v17 = vpack.c.bf16 %v586_v16, %v585_v15  ;;  %v588_v19 = vld [vmem:[%s6874_s19 + $0x68] sm:$0xff]  ;;  %v4524_v21 = vld [vmem:[%s6859_s3] ss:$0 sm:$0xff]  ;;  %v714_v27 = vld [vmem:[%s6879_s24 + $0x18] sm:$0xff]  ;;  %s7836_s3 = sld [smem:[#allocation20_spill]] }
  0x41   :  { %5986 = vmatpush3.bf16.msra.mxu0 %v5983_v29  ;;  %v721_v58 = vld [vmem:[%s6879_s24 + $0x50] sm:$0xff]  ;;  %v722_v59 = vld [vmem:[%s6879_s24 + $0x58] sm:$0xff]  ;;  %v723_v61 = vld [vmem:[%s6879_s24 + $0x60] sm:$0xff] }
  0x42   :  { %5978 = vmatpush3.bf16.msra.mxu1 %v5975_v23  ;;  %5988 = vmatprep.subr.bf16.mxu0 %v5987_v32  ;;  %v724_v62 = vld [vmem:[%s6879_s24 + $0x68] sm:$0xff]  ;;  %v590_v1 = vld [vmem:[%s6874_s19 + $0x78] sm:$0xff]  ;;  %v725_v2 = vld [vmem:[%s6879_s24 + $0x70] sm:$0xff] }
  0x43   :  { %5117 = vmatmul.mubr.msk.f32.gmra.mrb[6].mxu0 %vm140_vm0, %v130_v20  ;;  %5996 = vmatprep.subr.bf16.mxu1 %v5995_v0  ;;  %v6019_v20 = vpack.c.bf16 %v588_v19, %v587_v18  ;;  %v6051_v63 = vpack.c.bf16 %v724_v62, %v723_v61  ;;  %v847_v6 = vld [vmem:[%s6884_s30] sm:$0xff]  ;;  %v848_v7 = vld [vmem:[%s6884_s30 + $0x8] sm:$0xff]  ;;  %v849_v13 = vld [vmem:[%s6884_s30 + $0x10] sm:$0xff] }
  0x44   :  { %v6059_v9 = vpack.c.bf16 %v848_v7, %v847_v6  ;;  %v984_v10 = vld [vmem:[%s6889_s6 + $0x8] sm:$0xff]  ;;  %v4533_v12 = vld [vmem:[%s6869_s14] ss:$0 sm:$0xff]  ;;  %v850_v15 = vld [vmem:[%s6884_s30 + $0x18] sm:$0xff]  ;;  %s7840_s14 = sld [smem:[#allocation14_spill]] }
  0x45   :  { %5990 = vmatpush3.bf16.msra.mxu0 %v5987_v32  ;;  %v985_v16 = vld [vmem:[%s6889_s6 + $0x10] sm:$0xff]  ;;  %v995_v61 = vld [vmem:[%s6889_s6 + $0x60] sm:$0xff]  ;;  %v996_v62 = vld [vmem:[%s6889_s6 + $0x68] sm:$0xff] }
  0x46   :  { %5992 = vmatprep.subr.bf16.mxu0 %v5991_v60  ;;  %v1122_v7 = vld [vmem:[%s6914_s9] sm:$0xff] }
  0x49   :  { %5994 = vmatpush3.bf16.msra.mxu0 %v5991_v60  ;;  %v6047_v60 = vpack.c.bf16 %v722_v59, %v721_v58  ;;  %v859_v59 = vld [vmem:[%s6884_s30 + $0x60] sm:$0xff] }
  0x4a   :  { %6028 = vmatprep.subr.bf16.mxu0 %v6027_v4 }
 0x10a   :  { %v5109_v34 = vpop.f32.mrb[0].mxu0 }
 0x10b   :  { %v237_v35 = vadd.f32 %v5109_v34, %v4515_v33  ;;  %v231_v36 = vpop.f32.mrb[1].mxu0 }
 0x10c   :  { %v232_v37 = vadd.f32 %v4515_v33, %v231_v36  ;;  %v716_v36 = vld [vmem:[%s6879_s24 + $0x28] sm:$0xff] }
 0x10d   :  { %v271_v40 = vmax.f32 %v237_v35, 0.0  ;;  %v715_v35 = vld [vmem:[%s6879_s24 + $0x20] sm:$0xff] }
 0x10e   :  { %v270_v38 = vmax.f32 %v232_v37, 0.0  ;;  %v5112_v39 = vpop.f32.mrb[2].mxu0 }
 0x10f   :  { %v247_v41 = vadd.f32 %v5112_v39, %v4515_v33  ;;  %v241_v42 = vpop.f32.mrb[3].mxu0 }
 0x110   :  { %v242_v43 = vadd.f32 %v4515_v33, %v241_v42  ;;  %5135 = vmatprep.mubr.msk.f32.mxu1 %vm293_vm1, %v270_v38  ;;  %v6035_v42 = vpack.c.bf16 %v716_v36, %v715_v35  ;;  %v854_v35 = vld [vmem:[%s6884_s30 + $0x38] sm:$0xff]  ;;  %v989_v36 = vld [vmem:[%s6889_s6 + $0x30] sm:$0xff] }
 0x111   :  { %v273_v44 = vmax.f32 %v247_v41, 0.0  ;;  %5136 = vmatmul.mubr.msk.f32.vlgmr.msra.gmra.mrb[0].mxu1 %vm293_vm1, %v271_v40 }
 0x112   :  { %v272_v45 = vmax.f32 %v242_v43, 0.0  ;;  %v5115_v46 = vpop.f32.mrb[4].mxu0  ;;  %5998 = vmatpush3.bf16.msra.mxu1 %v5995_v0  ;;  %v589_v0 = vld [vmem:[%s6874_s19 + $0x70] sm:$0xff]  ;;  %s7841_s19 = sld [smem:[#allocation25_spill]] }
 0x113   :  { %v257_v47 = vadd.f32 %v5115_v46, %v4515_v33  ;;  %v251_v48 = vpop.f32.mrb[5].mxu0  ;;  %6000 = vmatprep.subr.bf16.mxu1 %v5999_v5  ;;  %v6023_v3 = vpack.c.bf16 %v590_v1, %v589_v0  ;;  %v6115_v0 = vpack.c.bf16 %v996_v62, %v995_v61  ;;  %v861_v1 = vld [vmem:[%s6884_s30 + $0x70] sm:$0xff] }
 0x114   :  { %v252_v49 = vadd.f32 %v4515_v33, %v251_v48  ;;  %5138 = vmatprep.mubr.msk.f32.mxu1 %vm293_vm1, %v272_v45  ;;  %v718_v45 = vld [vmem:[%s6879_s24 + $0x38] sm:$0xff] }
 0x115   :  { %v275_v50 = vmax.f32 %v257_v47, 0.0  ;;  %5139 = vmatmul.mubr.msk.f32.gmra.mrb[2].mxu1 %vm293_vm1, %v273_v44  ;;  %v717_v44 = vld [vmem:[%s6879_s24 + $0x30] sm:$0xff] }
 0x116   :  { %v274_v51 = vmax.f32 %v252_v49, 0.0  ;;  %v5118_v52 = vpop.f32.mrb[6].mxu0  ;;  %6002 = vmatpush3.bf16.msra.mxu1 %v5999_v5 }
 0x117   :  { %v267_v53 = vadd.f32 %v5118_v52, %v4515_v33  ;;  %v261_v54 = vpop.f32.mrb[7].mxu0  ;;  %6004 = vmatprep.subr.bf16.mxu1 %v6003_v8 }
 0x118   :  { %v262_v55 = vadd.f32 %v4515_v33, %v261_v54  ;;  %5141 = vmatprep.mubr.msk.f32.mxu1 %vm293_vm1, %v274_v51  ;;  %v6031_v33 = vpack.c.bf16 %v714_v27, %v713_v26  ;;  %v6039_v51 = vpack.c.bf16 %v718_v45, %v717_v44  ;;  %v720_v54 = vld [vmem:[%s6879_s24 + $0x48] sm:$0xff]  ;;  %v987_v26 = vld [vmem:[%s6889_s6 + $0x20] sm:$0xff] }
 0x119   :  { %v277_v56 = vmax.f32 %v267_v53, 0.0  ;;  %5142 = vmatmul.mubr.msk.f32.gmra.mrb[4].mxu1 %vm293_vm1, %v275_v50  ;;  %v719_v53 = vld [vmem:[%s6879_s24 + $0x40] sm:$0xff]  ;;  %v988_v27 = vld [vmem:[%s6889_s6 + $0x28] sm:$0xff] }
 0x11a   :  { %v276_v57 = vmax.f32 %v262_v55, 0.0  ;;  %6006 = vmatpush3.bf16.msra.mxu1 %v6003_v8  ;;  %v983_v8 = vld [vmem:[%s6889_s6] sm:$0xff] }
 0x11b   :  { %6008 = vmatprep.subr.bf16.mxu1 %v6007_v11  ;;  %v855_v44 = vld [vmem:[%s6884_s30 + $0x40] sm:$0xff] }
 0x11c   :  { %5144 = vmatprep.mubr.msk.f32.mxu1 %vm293_vm1, %v276_v57  ;;  %v6043_v57 = vpack.c.bf16 %v720_v54, %v719_v53  ;;  %v858_v54 = vld [vmem:[%s6884_s30 + $0x58] sm:$0xff] }
 0x11d   :  { %5145 = vmatmul.mubr.msk.f32.gmra.mrb[6].mxu1 %vm293_vm1, %v277_v56 }
 0x11e   :  { %6010 = vmatpush3.bf16.msra.mxu1 %v6007_v11  ;;  %v6091_v11 = vpack.c.bf16 %v984_v10, %v983_v8  ;;  %v1123_v8 = vld [vmem:[%s6914_s9 + $0x8] sm:$0xff] }
 0x11f   :  { %6012 = vmatprep.subr.bf16.mxu1 %v6011_v14  ;;  %v1212_v10 = vld [vmem:[%s6919_s17 + $0x8] sm:$0xff] }
 0x122   :  { %6014 = vmatpush3.bf16.msra.mxu1 %v6011_v14 }
 0x123   :  { %6016 = vmatprep.subr.bf16.mxu1 %v6015_v17 }
 0x126   :  { %6018 = vmatpush3.bf16.msra.mxu1 %v6015_v17  ;;  %v986_v17 = vld [vmem:[%s6889_s6 + $0x18] sm:$0xff] }
 0x127   :  { %6020 = vmatprep.subr.bf16.mxu1 %v6019_v20 }
 0x12a   :  { %6022 = vmatpush3.bf16.msra.mxu1 %v6019_v20 }
 0x12b   :  { %6024 = vmatprep.subr.bf16.mxu1 %v6023_v3 }
 0x12e   :  { %6026 = vmatpush3.bf16.msra.mxu1 %v6023_v3  ;;  %v997_v3 = vld [vmem:[%s6889_s6 + $0x70] sm:$0xff] }
 0x12f   :  { %6060 = vmatprep.subr.bf16.mxu1 %v6059_v9 }
 0x1e4   :  { %v5137_v22 = vpop.f32.mrb[0].mxu1 }
 0x1e5   :  { %v390_v23 = vadd.f32 %v5137_v22, %v4524_v21  ;;  %v384_v24 = vpop.f32.mrb[1].mxu1  ;;  %v6095_v22 = vpack.c.bf16 %v986_v17, %v985_v16  ;;  %v1213_v16 = vld [vmem:[%s6919_s17 + $0x10] sm:$0xff]  ;;  %v1214_v17 = vld [vmem:[%s6919_s17 + $0x18] sm:$0xff] }
 0x1e6   :  { %v385_v25 = vadd.f32 %v4524_v21, %v384_v24 }
 0x1e7   :  { %v424_v30 = vmax.f32 %v390_v23, 0.0  ;;  %v851_v23 = vld [vmem:[%s6884_s30 + $0x20] sm:$0xff] }
 0x1e8   :  { %v423_v28 = vmax.f32 %v385_v25, 0.0  ;;  %v5140_v29 = vpop.f32.mrb[2].mxu1  ;;  %v852_v25 = vld [vmem:[%s6884_s30 + $0x28] sm:$0xff] }
 0x1e9   :  { %v400_v31 = vadd.f32 %v5140_v29, %v4524_v21  ;;  %v394_v32 = vpop.f32.mrb[3].mxu1 }
 0x1ea   :  { %v395_v34 = vadd.f32 %v4524_v21, %v394_v32  ;;  %5163 = vmatprep.mubr.msk.f32.mxu0 %vm293_vm1, %v423_v28  ;;  %v6099_v32 = vpack.c.bf16 %v988_v27, %v987_v26  ;;  %v1128_v26 = vld [vmem:[%s6914_s9 + $0x30] sm:$0xff]  ;;  %v1129_v27 = vld [vmem:[%s6914_s9 + $0x38] sm:$0xff] }
 0x1eb   :  { %v426_v37 = vmax.f32 %v400_v31, 0.0  ;;  %5164 = vmatmul.mubr.msk.f32.vlgmr.msra.gmra.mrb[8].mxu0 %vm293_vm1, %v424_v30  ;;  %v6067_v31 = vpack.c.bf16 %v852_v25, %v851_v23  ;;  %v1216_v23 = vld [vmem:[%s6919_s17 + $0x28] sm:$0xff] }
 0x1ec   :  { %v425_v38 = vmax.f32 %v395_v34, 0.0  ;;  %v5143_v39 = vpop.f32.mrb[4].mxu1  ;;  %6030 = vmatpush3.bf16.msra.mxu0 %v6027_v4  ;;  %v726_v4 = vld [vmem:[%s6879_s24 + $0x78] sm:$0xff]  ;;  %s7842_s24 = sld [smem:[#allocation24_spill]] }
 0x1ed   :  { %v410_v40 = vadd.f32 %v5143_v39, %v4524_v21  ;;  %v404_v41 = vpop.f32.mrb[5].mxu1  ;;  %6032 = vmatprep.subr.bf16.mxu0 %v6031_v33  ;;  %v6055_v5 = vpack.c.bf16 %v726_v4, %v725_v2  ;;  %v862_v2 = vld [vmem:[%s6884_s30 + $0x78] sm:$0xff] }
 0x1ee   :  { %v405_v43 = vadd.f32 %v4524_v21, %v404_v41  ;;  %5166 = vmatprep.mubr.msk.f32.mxu0 %vm293_vm1, %v425_v38  ;;  %v998_v4 = vld [vmem:[%s6889_s6 + $0x78] sm:$0xff] }
 0x1ef   :  { %v428_v46 = vmax.f32 %v410_v40, 0.0  ;;  %5167 = vmatmul.mubr.msk.f32.gmra.mrb[10].mxu0 %vm293_vm1, %v426_v37  ;;  %v990_v37 = vld [vmem:[%s6889_s6 + $0x38] sm:$0xff]  ;;  %v6119_v6 = vpack.c.bf16 %v998_v4, %v997_v3 }
 0x1f0   :  { %v427_v47 = vmax.f32 %v405_v43, 0.0  ;;  %v5146_v48 = vpop.f32.mrb[6].mxu1  ;;  %6034 = vmatpush3.bf16.msra.mxu0 %v6031_v33  ;;  %v853_v33 = vld [vmem:[%s6884_s30 + $0x30] sm:$0xff] }
 0x1f1   :  { %v420_v49 = vadd.f32 %v5146_v48, %v4524_v21  ;;  %v414_v50 = vpop.f32.mrb[7].mxu1  ;;  %6036 = vmatprep.subr.bf16.mxu0 %v6035_v42  ;;  %v6071_v41 = vpack.c.bf16 %v854_v35, %v853_v33  ;;  %v991_v48 = vld [vmem:[%s6889_s6 + $0x40] sm:$0xff]  ;;  %v1298_v33 = vld [vmem:[%s6924_s27 + $0x8] sm:$0xff] }
 0x1f2   :  { %v415_v52 = vadd.f32 %v4524_v21, %v414_v50  ;;  %5169 = vmatprep.mubr.msk.f32.mxu0 %vm293_vm1, %v427_v47  ;;  %v6063_v21 = vpack.c.bf16 %v850_v15, %v849_v13  ;;  %v856_v47 = vld [vmem:[%s6884_s30 + $0x48] sm:$0xff]  ;;  %v1125_v15 = vld [vmem:[%s6914_s9 + $0x18] sm:$0xff] }
 0x1f3   :  { %v430_v55 = vmax.f32 %v420_v49, 0.0  ;;  %5170 = vmatmul.mubr.msk.f32.gmra.mrb[12].mxu0 %vm293_vm1, %v428_v46  ;;  %v992_v49 = vld [vmem:[%s6889_s6 + $0x48] sm:$0xff] }
 0x1f4   :  { %v429_v56 = vmax.f32 %v415_v52, 0.0  ;;  %6038 = vmatpush3.bf16.msra.mxu0 %v6035_v42  ;;  %v6103_v42 = vpack.c.bf16 %v990_v37, %v989_v36  ;;  %v6075_v52 = vpack.c.bf16 %v856_v47, %v855_v44  ;;  %v6107_v53 = vpack.c.bf16 %v992_v49, %v991_v48  ;;  %v1379_v35 = vld [vmem:[%s7831_s0 + $0x8] sm:$0xff]  ;;  %v1119_v37 = vld [vmem:[%s7832_s5] sm:$0xff] }
 0x1f5   :  { %6040 = vmatprep.subr.bf16.mxu0 %v6039_v51  ;;  %v6813_v36 = vmov 0.0   ;;  %v1302_v47 = vld [vmem:[%s6924_s27 + $0x28] sm:$0xff]  ;;  %v1382_v48 = vld [vmem:[%s7831_s0 + $0x20] sm:$0xff] }
 0x1f6   :  { %5172 = vmatprep.mubr.msk.f32.mxu0 %vm293_vm1, %v429_v56  ;;  %v994_v56 = vld [vmem:[%s6889_s6 + $0x58] sm:$0xff]  ;;  %v1383_v49 = vld [vmem:[%s7831_s0 + $0x28] sm:$0xff] }
 0x1f7   :  { %5173 = vmatmul.mubr.msk.f32.gmra.mrb[14].mxu0 %vm293_vm1, %v430_v55  ;;  %v993_v55 = vld [vmem:[%s6889_s6 + $0x50] sm:$0xff] }
 0x1f8   :  { %6042 = vmatpush3.bf16.msra.mxu0 %v6039_v51  ;;  %v857_v51 = vld [vmem:[%s6884_s30 + $0x50] sm:$0xff]  ;;  %v6111_v58 = vpack.c.bf16 %v994_v56, %v993_v55  ;;  %v1385_v55 = vld [vmem:[%s7831_s0 + $0x38] sm:$0xff] }
 0x1f9   :  { %6044 = vmatprep.subr.bf16.mxu0 %v6043_v57 }
 0x1fc   :  { %6046 = vmatpush3.bf16.msra.mxu0 %v6043_v57  ;;  %v6079_v57 = vpack.c.bf16 %v858_v54, %v857_v51  ;;  %v7223_v51 = vpack.c.bf16 %v1383_v49, %v1382_v48  ;;  %v1384_v54 = vld [vmem:[%s7831_s0 + $0x30] sm:$0xff] }
 0x1fd   :  { %6048 = vmatprep.subr.bf16.mxu0 %v6047_v60 }
 0x200   :  { %6050 = vmatpush3.bf16.msra.mxu0 %v6047_v60  ;;  %v860_v60 = vld [vmem:[%s6884_s30 + $0x68] sm:$0xff]  ;;  %s6814_s30 = smov [#allocation8]  }
 0x201   :  { %6052 = vmatprep.subr.bf16.mxu0 %v6051_v63  ;;  %s4462_s6 = sshll.u32 %s6814_s30, 4  ;;  %s4463_s6 = int_to_ptr.vmem [resolvable:$true] %s4462_s6 }
 0x202   :  { %s6734_s7 = scalar_lea.vmem %s4463_s6, 128  ;;  %p6739_p1 = scmp.lt.s32.totalorder %s4463_s6, %s4463_s6 }
 0x203   :  { %p6735_p0 = scmp.ne.s32.totalorder %s4463_s6, %s6734_s7  ;;  %p6740_p2 = scmp.lt.s32.totalorder %s6734_s7, %s6734_s7 }
 0x204   :  { %6054 = vmatpush3.bf16.msra.mxu0 %v6051_v63  ;;  %v6083_v63 = vpack.c.bf16 %v860_v60, %v859_v59  ;;  %v4543_v59 = vld [vmem:[%s7834_s25] ss:$0 sm:$0xff] }
 0x205   :  { %6056 = vmatprep.subr.bf16.mxu0 %v6055_v5  ;;  %p6741_p3 = por %p6740_p2, %p6739_p1 }
 0x207   :  { %p6742_p4 = pnand %p6741_p3, %p6735_p0 }
 0x208   :  { %6058 = vmatpush3.bf16.msra.mxu0 %v6055_v5  ;;  %v6087_v5 = vpack.c.bf16 %v862_v2, %v861_v1 }
 0x209   :  { %6092 = vmatprep.subr.bf16.mxu0 %v6091_v11 }
 0x2be   :  { %v5165_v14 = vpop.f32.mrb[8].mxu0 }
 0x2bf   :  { %v536_v18 = vpop.f32.mrb[9].mxu0  ;;  %v7064_v20 = vadd.f32 %v5165_v14, %v4533_v12  ;;  %v1124_v14 = vld [vmem:[%s6914_s9 + $0x10] sm:$0xff] }
 0x2c0   :  { %v7062_v19 = vadd.f32 %v4533_v12, %v536_v18  ;;  %v7140_v18 = vpack.c.bf16 %v1125_v15, %v1124_v14 }
 0x2c2   :  { %v5168_v24 = vpop.f32.mrb[10].mxu0  ;;  %5207 = vmatprep.mubr.f32.mxu1 %v7062_v19  ;;  %5251 = vmatprep.mubr.f32.mxu0 %v7062_v19 }
 0x2c3   :  { %v7072_v28 = vadd.f32 %v5168_v24, %v4533_v12  ;;  %v546_v29 = vpop.f32.mrb[11].mxu0  ;;  %5208 = vmatmul.mubr.f32.vlgmr.msra.gmra.mrb[8].mxu1 %v7064_v20  ;;  %5252 = vmatmul.mubr.f32.vlgmr.msra.gmra.mrb[16].mxu0 %v7064_v20 }
 0x2c4   :  { %v7076_v30 = vadd.f32 %v4533_v12, %v546_v29  ;;  %6062 = vmatpush3.bf16.msra.mxu1 %v6059_v9  ;;  %6094 = vmatpush3.bf16.msra.mxu0 %v6091_v11  ;;  %v1211_v9 = vld [vmem:[%s6919_s17] sm:$0xff]  ;;  %v6811_v11 = vmov 0.0|0.0   ;;  %v1218_v29 = vld [vmem:[%s6919_s17 + $0x38] sm:$0xff] }
 0x2c5   :  { %6064 = vmatprep.subr.bf16.mxu1 %v6063_v21  ;;  %6096 = vmatprep.subr.bf16.mxu0 %v6095_v22  ;;  %v7128_v13 = vpack.c.bf16 %v1212_v10, %v1211_v9 }
 0x2c6   :  { %v5171_v34 = vpop.f32.mrb[12].mxu0  ;;  %5210 = vmatprep.mubr.f32.mxu1 %v7076_v30  ;;  %5254 = vmatprep.mubr.f32.mxu0 %v7076_v30 }
 0x2c7   :  { %v7084_v38 = vadd.f32 %v5171_v34, %v4533_v12  ;;  %v556_v39 = vpop.f32.mrb[13].mxu0  ;;  %5211 = vmatmul.mubr.f32.gmra.mrb[10].mxu1 %v7072_v28  ;;  %5255 = vmatmul.mubr.f32.gmra.mrb[18].mxu0 %v7072_v28  ;;  %v1378_v34 = vld [vmem:[%s7831_s0] sm:$0xff] }
 0x2c8   :  { %v7088_v40 = vadd.f32 %v4533_v12, %v556_v39  ;;  %6066 = vmatpush3.bf16.msra.mxu1 %v6063_v21  ;;  %6098 = vmatpush3.bf16.msra.mxu0 %v6095_v22  ;;  %v1126_v21 = vld [vmem:[%s6914_s9 + $0x20] sm:$0xff]  ;;  %v7193_v39 = vpack.c.bf16 %v1379_v35, %v1378_v34 }
 0x2c9   :  { %6068 = vmatprep.subr.bf16.mxu1 %v6067_v31  ;;  %6100 = vmatprep.subr.bf16.mxu0 %v6099_v32  ;;  %v1215_v22 = vld [vmem:[%s6919_s17 + $0x20] sm:$0xff] }
 0x2ca   :  { %v5174_v43 = vpop.f32.mrb[14].mxu0  ;;  %5213 = vmatprep.mubr.f32.mxu1 %v7088_v40  ;;  %5257 = vmatprep.mubr.f32.mxu0 %v7088_v40  ;;  %v7158_v25 = vpack.c.bf16 %v1216_v23, %v1215_v22 }
 0x2cb   :  { %v7093_v45 = vadd.f32 %v5174_v43, %v4533_v12  ;;  %v566_v46 = vpop.f32.mrb[15].mxu0  ;;  %5214 = vmatmul.mubr.f32.gmra.mrb[12].mxu1 %v7084_v38  ;;  %5258 = vmatmul.mubr.f32.gmra.mrb[20].mxu0 %v7084_v38  ;;  %v1381_v43 = vld [vmem:[%s7831_s0 + $0x18] sm:$0xff] }
 0x2cc   :  { %v7100_v50 = vadd.f32 %v4533_v12, %v566_v46  ;;  %6070 = vmatpush3.bf16.msra.mxu1 %v6067_v31  ;;  %6102 = vmatpush3.bf16.msra.mxu0 %v6099_v32  ;;  %v7126_v12 = vpack.c.bf16 %v1123_v8, %v1122_v7  ;;  %v1297_v32 = vld [vmem:[%s6924_s27] sm:$0xff] }
 0x2cd   :  { %6072 = vmatprep.subr.bf16.mxu1 %v6071_v41  ;;  %6104 = vmatprep.subr.bf16.mxu0 %v6103_v42  ;;  %v1301_v46 = vld [vmem:[%s6924_s27 + $0x20] sm:$0xff] }
 0x2ce   :  { %5216 = vmatprep.mubr.f32.mxu1 %v7100_v50  ;;  %5260 = vmatprep.mubr.f32.mxu0 %v7100_v50 }
 0x2cf   :  { %5217 = vmatmul.mubr.f32.gmra.mrb[14].mxu1 %v7093_v45  ;;  %5261 = vmatmul.mubr.f32.gmra.mrb[22].mxu0 %v7093_v45 }
 0x2d0   :  { %6074 = vmatpush3.bf16.msra.mxu1 %v6071_v41  ;;  %6106 = vmatpush3.bf16.msra.mxu0 %v6103_v42  ;;  %v1300_v41 = vld [vmem:[%s6924_s27 + $0x18] sm:$0xff]  ;;  %v1380_v42 = vld [vmem:[%s7831_s0 + $0x10] sm:$0xff] }
 0x2d1   :  { %5295 = vmatprep.mubr.f32.mxu1 %v7062_v19  ;;  %5339 = vmatprep.mubr.f32.mxu0 %v7062_v19  ;;  %v7142_v19 = vpack.c.bf16 %v1214_v17, %v1213_v16 }
 0x2d2   :  { %6076 = vmatprep.subr.bf16.mxu1 %v6075_v52  ;;  %6108 = vmatprep.subr.bf16.mxu0 %v6107_v53 }
 0x2d4   :  { %6078 = vmatpush3.bf16.msra.mxu1 %v6075_v52  ;;  %6110 = vmatpush3.bf16.msra.mxu0 %v6107_v53  ;;  %v1303_v52 = vld [vmem:[%s6924_s27 + $0x30] sm:$0xff]  ;;  %v1304_v53 = vld [vmem:[%s6924_s27 + $0x38] sm:$0xff] }
 0x2d5   :  { %6080 = vmatprep.subr.bf16.mxu1 %v6079_v57  ;;  %6112 = vmatprep.subr.bf16.mxu0 %v6111_v58  ;;  %v7233_v56 = vpack.c.bf16 %v1304_v53, %v1303_v52 }
 0x2d8   :  { %6082 = vmatpush3.bf16.msra.mxu1 %v6079_v57  ;;  %6114 = vmatpush3.bf16.msra.mxu0 %v6111_v58  ;;  %v7235_v57 = vpack.c.bf16 %v1385_v55, %v1384_v54  ;;  %v4542_v58 = vld [vmem:[%s7833_s21] ss:$0 sm:$0xff] }
 0x2d9   :  { %6084 = vmatprep.subr.bf16.mxu1 %v6083_v63  ;;  %6116 = vmatprep.subr.bf16.mxu0 %v6115_v0 }
 0x2dc   :  { %6086 = vmatpush3.bf16.msra.mxu1 %v6083_v63  ;;  %6118 = vmatpush3.bf16.msra.mxu0 %v6115_v0 }
 0x2dd   :  { %6088 = vmatprep.subr.bf16.mxu1 %v6087_v5  ;;  %6120 = vmatprep.subr.bf16.mxu0 %v6119_v6 }
 0x2e0   :  { %6090 = vmatpush3.bf16.msra.mxu1 %v6087_v5  ;;  %6122 = vmatpush3.bf16.msra.mxu0 %v6119_v6 }
 0x2e1   :  { %6123 = vmatprep.subr.bf16.mxu1 %v6811_v11  ;;  %6135 = vmatprep.subr.bf16.mxu0 %v6811_v11 }
 0x2e3   :  { %5296 = vmatmul.mubr.f32.vlgmr.msra.gmra.mrb[16].mxu1 %v7064_v20  ;;  %5340 = vmatmul.mubr.f32.vlgmr.msra.gmra.mrb[24].mxu0 %v7064_v20  ;;  %v1127_v20 = vld [vmem:[%s6914_s9 + $0x28] sm:$0xff] }
 0x2e4   :  { %5298 = vmatprep.mubr.f32.mxu1 %v7076_v30  ;;  %5342 = vmatprep.mubr.f32.mxu0 %v7076_v30  ;;  %v7156_v24 = vpack.c.bf16 %v1127_v20, %v1126_v21  ;;  %v7172_v30 = vpack.c.bf16 %v1129_v27, %v1128_v26 }
 0x2e5   :  { %6125 = vmatpush3.bf16.msra.mxu1 %v7126_v12  ;;  %6137 = vmatpush3.bf16.msra.mxu0 %v7128_v13 }
 0x2e6   :  { %6126 = vmatprep.subr.bf16.mxu1 %v6811_v11  ;;  %6138 = vmatprep.subr.bf16.mxu0 %v6811_v11 }
 0x2e7   :  { %5299 = vmatmul.mubr.f32.gmra.mrb[18].mxu1 %v7072_v28  ;;  %5343 = vmatmul.mubr.f32.gmra.mrb[26].mxu0 %v7072_v28  ;;  %v1217_v28 = vld [vmem:[%s6919_s17 + $0x30] sm:$0xff] }
 0x2e8   :  { %5301 = vmatprep.mubr.f32.mxu1 %v7088_v40  ;;  %5345 = vmatprep.mubr.f32.mxu0 %v7088_v40  ;;  %v7174_v31 = vpack.c.bf16 %v1218_v29, %v1217_v28  ;;  %v1299_v40 = vld [vmem:[%s6924_s27 + $0x10] sm:$0xff] }
 0x2e9   :  { %6128 = vmatpush3.bf16.msra.mxu1 %v7140_v18  ;;  %6140 = vmatpush3.bf16.msra.mxu0 %v7142_v19  ;;  %v7205_v44 = vpack.c.bf16 %v1300_v41, %v1299_v40  ;;  %v4544_v40 = vld [vmem:[%s7835_s29] ss:$0 sm:$0xff] }
 0x2ea   :  { %6129 = vmatprep.subr.bf16.mxu1 %v6811_v11  ;;  %6141 = vmatprep.subr.bf16.mxu0 %v6811_v11  ;;  %v4545_v41 = vld [vmem:[%s7836_s3] ss:$0 sm:$0xff] }
 0x2eb   :  { %5302 = vmatmul.mubr.f32.gmra.mrb[20].mxu1 %v7084_v38  ;;  %5346 = vmatmul.mubr.f32.gmra.mrb[28].mxu0 %v7084_v38  ;;  %v7191_v38 = vpack.c.bf16 %v1298_v33, %v1297_v32 }
 0x2ec   :  { %5304 = vmatprep.mubr.f32.mxu1 %v7100_v50  ;;  %5348 = vmatprep.mubr.f32.mxu0 %v7100_v50  ;;  %v7221_v50 = vpack.c.bf16 %v1302_v47, %v1301_v46 }
 0x2ed   :  { %6131 = vmatpush3.bf16.msra.mxu1 %v7156_v24  ;;  %6143 = vmatpush3.bf16.msra.mxu0 %v7158_v25 }
 0x2ee   :  { %6132 = vmatprep.subr.bf16.mxu1 %v6811_v11  ;;  %6144 = vmatprep.subr.bf16.mxu0 %v6811_v11 }
 0x2ef   :  { %5305 = vmatmul.mubr.f32.gmra.mrb[22].mxu1 %v7093_v45  ;;  %5349 = vmatmul.mubr.f32.gmra.mrb[30].mxu0 %v7093_v45  ;;  %v7207_v45 = vpack.c.bf16 %v1381_v43, %v1380_v42 }
 0x2f0   :  { %5367 = vmatprep.mubr.msk.f32.mxu1 %vm6812_vm2, %v6813_v36  ;;  %5386 = vmatprep.mubr.msk.f32.mxu0 %vm6812_vm2, %v6813_v36 }
 0x2f1   :  { %6134 = vmatpush3.bf16.msra.mxu1 %v7172_v30  ;;  %6146 = vmatpush3.bf16.msra.mxu0 %v7174_v31 }
 0x2f2   :  { %6147 = vmatprep.subr.bf16.mxu1 %v6811_v11  ;;  %6159 = vmatprep.subr.bf16.mxu0 %v6811_v11 }
 0x2f4   :  { %5368 = vmatmul.mubr.msk.f32.vlgmr.msra.gmra.mrb[24].mxu1 %vm293_vm1, %v1119_v37  ;;  %5387 = vmatmul.mubr.msk.f32.vlgmr.msra.gmra.mrb[32].mxu0 %vm293_vm1, %v1119_v37 }
 0x2f5   :  { %6149 = vmatpush3.bf16.msra.mxu1 %v7191_v38  ;;  %6161 = vmatpush3.bf16.msra.mxu0 %v7193_v39 }
 0x2f6   :  { %6150 = vmatprep.subr.bf16.mxu1 %v6811_v11  ;;  %6162 = vmatprep.subr.bf16.mxu0 %v6811_v11 }
 0x2f7   :  { %5405 = vmatprep.mubr.msk.f32.mxu1 %vm6812_vm2, %v6813_v36  ;;  %5424 = vmatprep.mubr.msk.f32.mxu0 %vm6812_vm2, %v6813_v36 }
 0x2f9   :  { %6152 = vmatpush3.bf16.msra.mxu1 %v7205_v44  ;;  %6164 = vmatpush3.bf16.msra.mxu0 %v7207_v45 }
 0x2fa   :  { %6153 = vmatprep.subr.bf16.mxu1 %v6811_v11  ;;  %6165 = vmatprep.subr.bf16.mxu0 %v6811_v11 }
 0x2fd   :  { %6155 = vmatpush3.bf16.msra.mxu1 %v7221_v50  ;;  %6167 = vmatpush3.bf16.msra.mxu0 %v7223_v51 }
 0x2fe   :  { %6156 = vmatprep.subr.bf16.mxu1 %v6811_v11  ;;  %6168 = vmatprep.subr.bf16.mxu0 %v6811_v11 }
 0x301   :  { %6158 = vmatpush3.bf16.msra.mxu1 %v7233_v56  ;;  %6170 = vmatpush3.bf16.msra.mxu0 %v7235_v57 }
 0x302   :  { %6171 = vmatprep.subr.bf16.mxu1 %v6811_v11  ;;  %6183 = vmatprep.subr.bf16.mxu0 %v6811_v11 }
 0x304   :  { %5406 = vmatmul.mubr.msk.f32.vlgmr.msra.gmra.mrb[26].mxu1 %vm293_vm1, %v1119_v37  ;;  %5425 = vmatmul.mubr.msk.f32.vlgmr.msra.gmra.mrb[34].mxu0 %vm293_vm1, %v1119_v37 }
 0x305   :  { %6173 = vmatpush3.bf16.msra.mxu1 %v7126_v12  ;;  %6185 = vmatpush3.bf16.msra.mxu0 %v7128_v13 }
 0x306   :  { %6174 = vmatprep.subr.bf16.mxu1 %v6811_v11  ;;  %6186 = vmatprep.subr.bf16.mxu0 %v6811_v11 }
 0x307   :  { %5443 = vmatprep.mubr.msk.f32.mxu1 %vm6812_vm2, %v6813_v36  ;;  %5462 = vmatprep.mubr.msk.f32.mxu0 %vm6812_vm2, %v6813_v36 }
 0x309   :  { %6176 = vmatpush3.bf16.msra.mxu1 %v7140_v18  ;;  %6188 = vmatpush3.bf16.msra.mxu0 %v7142_v19 }
 0x30a   :  { %6177 = vmatprep.subr.bf16.mxu1 %v6811_v11  ;;  %6189 = vmatprep.subr.bf16.mxu0 %v6811_v11 }
 0x30d   :  { %6179 = vmatpush3.bf16.msra.mxu1 %v7156_v24  ;;  %6191 = vmatpush3.bf16.msra.mxu0 %v7158_v25 }
 0x30e   :  { %6180 = vmatprep.subr.bf16.mxu1 %v6811_v11  ;;  %6192 = vmatprep.subr.bf16.mxu0 %v6811_v11 }
 0x311   :  { %6182 = vmatpush3.bf16.msra.mxu1 %v7172_v30  ;;  %6194 = vmatpush3.bf16.msra.mxu0 %v7174_v31 }
 0x312   :  { %6195 = vmatprep.subr.bf16.mxu1 %v6811_v11  ;;  %6207 = vmatprep.subr.bf16.mxu0 %v6811_v11 }
 0x396   :  { %v5209_v60 = vpop.f32.mrb[8].mxu1  ;;  %v5253_v61 = vpop.f32.mrb[16].mxu0 }
 0x397   :  { %v670_v62 = vadd.f32 %v5209_v60, %v4542_v58  ;;  %v806_v63 = vadd.f32 %v5253_v61, %v4543_v59  ;;  %v664_v0 = vpop.f32.mrb[9].mxu1  ;;  %v800_v1 = vpop.f32.mrb[17].mxu0 }
 0x398   :  { %v665_v2 = vadd.f32 %v4542_v58, %v664_v0  ;;  %v801_v3 = vadd.f32 %v4543_v59, %v800_v1 }
 0x399   :  { %704 = vst.msk [vmem:[#allocation2 + $0x8] sm:$0xff] %vm293_vm1, %v670_v62  ;;  %840 = vst.msk [vmem:[#allocation3 + $0x8] sm:$0xff] %vm293_vm1, %v806_v63 }
 0x39a   :  { %703 = vst.msk [vmem:[#allocation2] sm:$0xff] %vm293_vm1, %v665_v2  ;;  %839 = vst.msk [vmem:[#allocation3] sm:$0xff] %vm293_vm1, %v801_v3  ;;  %v5212_v4 = vpop.f32.mrb[10].mxu1  ;;  %v5256_v5 = vpop.f32.mrb[18].mxu0 }
 0x39b   :  { %v680_v6 = vadd.f32 %v5212_v4, %v4542_v58  ;;  %v816_v7 = vadd.f32 %v5256_v5, %v4543_v59  ;;  %v674_v8 = vpop.f32.mrb[11].mxu1  ;;  %v810_v9 = vpop.f32.mrb[19].mxu0 }
 0x39c   :  { %v675_v10 = vadd.f32 %v4542_v58, %v674_v8  ;;  %v811_v14 = vadd.f32 %v4543_v59, %v810_v9 }
 0x39d   :  { %706 = vst.msk [vmem:[#allocation2 + $0x18] sm:$0xff] %vm293_vm1, %v680_v6  ;;  %842 = vst.msk [vmem:[#allocation3 + $0x18] sm:$0xff] %vm293_vm1, %v816_v7 }
 0x39e   :  { %705 = vst.msk [vmem:[#allocation2 + $0x10] sm:$0xff] %vm293_vm1, %v675_v10  ;;  %841 = vst.msk [vmem:[#allocation3 + $0x10] sm:$0xff] %vm293_vm1, %v811_v14  ;;  %v5215_v15 = vpop.f32.mrb[12].mxu1  ;;  %v5259_v16 = vpop.f32.mrb[20].mxu0 }
 0x39f   :  { %v690_v17 = vadd.f32 %v5215_v15, %v4542_v58  ;;  %v826_v21 = vadd.f32 %v5259_v16, %v4543_v59  ;;  %v684_v20 = vpop.f32.mrb[13].mxu1  ;;  %v820_v22 = vpop.f32.mrb[21].mxu0 }
 0x3a0   :  { %v685_v23 = vadd.f32 %v4542_v58, %v684_v20  ;;  %v821_v26 = vadd.f32 %v4543_v59, %v820_v22 }
 0x3a1   :  { %708 = vst.msk [vmem:[#allocation2 + $0x28] sm:$0xff] %vm293_vm1, %v690_v17  ;;  %844 = vst.msk [vmem:[#allocation3 + $0x28] sm:$0xff] %vm293_vm1, %v826_v21  ;;  %v1121_v20 = vld [vmem:[#allocation2] sm:$0xff] }
 0x3a2   :  { %707 = vst.msk [vmem:[#allocation2 + $0x20] sm:$0xff] %vm293_vm1, %v685_v23  ;;  %843 = vst.msk [vmem:[#allocation3 + $0x20] sm:$0xff] %vm293_vm1, %v821_v26  ;;  %v5218_v27 = vpop.f32.mrb[14].mxu1  ;;  %v5262_v28 = vpop.f32.mrb[22].mxu0  ;;  %v1210_v23 = vld [vmem:[#allocation3] sm:$0xff] }
 0x3a3   :  { %v700_v29 = vadd.f32 %v5218_v27, %v4542_v58  ;;  %v836_v32 = vadd.f32 %v5262_v28, %v4543_v59  ;;  %v694_v33 = vpop.f32.mrb[15].mxu1  ;;  %v830_v34 = vpop.f32.mrb[23].mxu0 }
 0x3a4   :  { %v695_v35 = vadd.f32 %v4542_v58, %v694_v33  ;;  %v831_v37 = vadd.f32 %v4543_v59, %v830_v34 }
 0x3a5   :  { %710 = vst.msk [vmem:[#allocation2 + $0x38] sm:$0xff] %vm293_vm1, %v700_v29  ;;  %846 = vst.msk [vmem:[#allocation3 + $0x38] sm:$0xff] %vm293_vm1, %v836_v32 }
 0x3a6   :  { %709 = vst.msk [vmem:[#allocation2 + $0x30] sm:$0xff] %vm293_vm1, %v695_v35  ;;  %845 = vst.msk [vmem:[#allocation3 + $0x30] sm:$0xff] %vm293_vm1, %v831_v37 }
 0x3b6   :  { %v5297_v42 = vpop.f32.mrb[16].mxu1  ;;  %v5341_v43 = vpop.f32.mrb[24].mxu0 }
 0x3b7   :  { %v942_v46 = vadd.f32 %v5297_v42, %v4544_v40  ;;  %v1078_v47 = vadd.f32 %v5341_v43, %v4545_v41  ;;  %v936_v48 = vpop.f32.mrb[17].mxu1  ;;  %v1072_v49 = vpop.f32.mrb[25].mxu0 }
 0x3b8   :  { %v937_v52 = vadd.f32 %v4544_v40, %v936_v48  ;;  %v1073_v53 = vadd.f32 %v4545_v41, %v1072_v49 }
 0x3b9   :  { %976 = vst.msk [vmem:[#allocation4 + $0x8] sm:$0xff] %vm293_vm1, %v942_v46  ;;  %1112 = vst.msk [vmem:[#allocation5 + $0x8] sm:$0xff] %vm293_vm1, %v1078_v47 }
 0x3ba   :  { %975 = vst.msk [vmem:[#allocation4] sm:$0xff] %vm293_vm1, %v937_v52  ;;  %1111 = vst.msk [vmem:[#allocation5] sm:$0xff] %vm293_vm1, %v1073_v53  ;;  %v5300_v54 = vpop.f32.mrb[18].mxu1  ;;  %v5344_v55 = vpop.f32.mrb[26].mxu0 }
 0x3bb   :  { %v952_v58 = vadd.f32 %v5300_v54, %v4544_v40  ;;  %v1088_v59 = vadd.f32 %v5344_v55, %v4545_v41  ;;  %v946_v60 = vpop.f32.mrb[19].mxu1  ;;  %v1082_v61 = vpop.f32.mrb[27].mxu0  ;;  %v1120_v55 = vld [vmem:[%s7837_s8] sm:$0xff] }
 0x3bc   :  { %v947_v62 = vadd.f32 %v4544_v40, %v946_v60  ;;  %v1083_v63 = vadd.f32 %v4545_v41, %v1082_v61 }
 0x3bd   :  { %978 = vst.msk [vmem:[#allocation4 + $0x18] sm:$0xff] %vm293_vm1, %v952_v58  ;;  %1114 = vst.msk [vmem:[#allocation5 + $0x18] sm:$0xff] %vm293_vm1, %v1088_v59 }
 0x3be   :  { %977 = vst.msk [vmem:[#allocation4 + $0x10] sm:$0xff] %vm293_vm1, %v947_v62  ;;  %1113 = vst.msk [vmem:[#allocation5 + $0x10] sm:$0xff] %vm293_vm1, %v1083_v63  ;;  %v5303_v0 = vpop.f32.mrb[20].mxu1  ;;  %v5347_v1 = vpop.f32.mrb[28].mxu0 }
 0x3bf   :  { %v962_v2 = vadd.f32 %v5303_v0, %v4544_v40  ;;  %v1098_v3 = vadd.f32 %v5347_v1, %v4545_v41  ;;  %v956_v4 = vpop.f32.mrb[21].mxu1  ;;  %v1092_v5 = vpop.f32.mrb[29].mxu0 }
 0x3c0   :  { %v957_v6 = vadd.f32 %v4544_v40, %v956_v4  ;;  %v1093_v7 = vadd.f32 %v4545_v41, %v1092_v5  ;;  %v1470_v5 = vld [vmem:[#allocation2 + $0x8] sm:$0xff] }
 0x3c1   :  { %980 = vst.msk [vmem:[#allocation4 + $0x28] sm:$0xff] %vm293_vm1, %v962_v2  ;;  %1116 = vst.msk [vmem:[#allocation5 + $0x28] sm:$0xff] %vm293_vm1, %v1098_v3  ;;  %v1377_v43 = vld [vmem:[#allocation5] sm:$0xff] }
 0x3c2   :  { %979 = vst.msk [vmem:[#allocation4 + $0x20] sm:$0xff] %vm293_vm1, %v957_v6  ;;  %1115 = vst.msk [vmem:[#allocation5 + $0x20] sm:$0xff] %vm293_vm1, %v1093_v7  ;;  %v5306_v8 = vpop.f32.mrb[22].mxu1  ;;  %v5350_v9 = vpop.f32.mrb[30].mxu0  ;;  %v1560_v7 = vld [vmem:[#allocation3 + $0x8] sm:$0xff] }
 0x3c3   :  { %v972_v10 = vadd.f32 %v5306_v8, %v4544_v40  ;;  %v1108_v14 = vadd.f32 %v5350_v9, %v4545_v41  ;;  %v966_v15 = vpop.f32.mrb[23].mxu1  ;;  %v1102_v16 = vpop.f32.mrb[31].mxu0 }
 0x3c4   :  { %v967_v17 = vadd.f32 %v4544_v40, %v966_v15  ;;  %v1103_v21 = vadd.f32 %v4545_v41, %v1102_v16  ;;  %v1296_v41 = vld [vmem:[#allocation4] sm:$0xff] }
 0x3c5   :  { %982 = vst.msk [vmem:[#allocation4 + $0x38] sm:$0xff] %vm293_vm1, %v972_v10  ;;  %1118 = vst.msk [vmem:[#allocation5 + $0x38] sm:$0xff] %vm293_vm1, %v1108_v14 }
 0x3c6   :  { %981 = vst.msk [vmem:[#allocation4 + $0x30] sm:$0xff] %vm293_vm1, %v967_v17  ;;  %1117 = vst.msk [vmem:[#allocation5 + $0x30] sm:$0xff] %vm293_vm1, %v1103_v21 }
 0x3c7   :  { %v1199_v22 = vpop.f32.mrb[24].mxu1  ;;  %v1285_v26 = vpop.f32.mrb[32].mxu0 }
 0x3c8   :  { %v1203_v27 = vadd.f32 %v1199_v22, %v1121_v20  ;;  %v1289_v28 = vadd.f32 %v1285_v26, %v1210_v23  ;;  %v5369_v29 = vpop.f32.mrb[25].mxu1  ;;  %v5388_v32 = vpop.f32.mrb[33].mxu0  ;;  %v1647_v23 = vld [vmem:[#allocation4 + $0x8] sm:$0xff] }
 0x3ca   :  { %v4547_v33 = vmul.f32 -1.442695, %v1203_v27  ;;  %v4549_v34 = vmul.f32 -1.442695, %v1289_v28  ;;  %v1729_v27 = vld [vmem:[#allocation5 + $0x8] sm:$0xff] }
 0x3cc   :  { %6606 = vpow2.f32 %v4547_v33 }
 0x3cd   :  { %6608 = vpow2.f32 %v4549_v34 }
 0x3d6   :  { %v6607_v35 = vpop.eup %6606 }
 0x3d7   :  { %v6609_v37 = vpop.eup %6608  ;;  %v1207_v40 = vadd.f32 1.0, %v6607_v35  ;;  %v1371_v42 = vpop.f32.mrb[26].mxu1 }
 0x3d8   :  { %v1452_v46 = vpop.f32.mrb[34].mxu0  ;;  %v1293_v47 = vadd.f32 1.0, %v6609_v37  ;;  %v1375_v48 = vadd.f32 %v1371_v42, %v1296_v41  ;;  %v5407_v52 = vpop.f32.mrb[27].mxu1 }
 0x3d9   :  { %v1456_v49 = vadd.f32 %v1452_v46, %v1377_v43  ;;  %v5426_v53 = vpop.f32.mrb[35].mxu0  ;;  %6610 = vrcp.f32 %v1207_v40 }
 0x3da   :  { %6612 = vrcp.f32 %v1293_v47 }
 0x3db   :  { %v4552_v54 = vmul.f32 -1.442695, %v1456_v49  ;;  %6614 = vtanh.f32 %v1375_v48 }
 0x3dd   :  { %6616 = vpow2.f32 %v4552_v54 }
 0x3e3   :  { %v6611_v58 = vpop.eup %6610 }
 0x3e4   :  { %v6613_v59 = vpop.eup %6612 }
 0x3e5   :  { %v6615_v60 = vpop.eup %6614  ;;  %v1463_v61 = vmul.f32 %v6613_v59, %v1120_v55 }
 0x3e6   :  { %v1464_v63 = vmul.f32 %v6615_v60, %v6611_v58 }
 0x3e7   :  { %v6617_v62 = vpop.eup %6616 }
 0x3e8   :  { %v1460_v0 = vadd.f32 1.0, %v6617_v62  ;;  %v7302_v1 = vadd.f32 %v1464_v63, %v1463_v61 }
 0x3ea   :  { %6618 = vrcp.f32 %v1460_v0  ;;  %v2082_v0 = vld [vmem:[#allocation5 + $0x10] sm:$0xff] }
 0x3eb   :  { %6620 = vtanh.f32 %v7302_v1 }
 0x3f4   :  { %v6619_v2 = vpop.eup %6618 }
 0x3f5   :  { %v6621_v3 = vpop.eup %6620 }
 0x3f6   :  { %v1467_v4 = vmul.f32 %v6621_v3, %v6619_v2 }
 0x3f8   :  { %1468 = vst.msk [vmem:[#allocation6] sm:$0xff] %vm293_vm1, %v1467_v4  ;;  %5444 = vmatmul.mubr.msk.f32.vlgmr.msra.gmra.mrb[28].mxu1 %vm293_vm1, %v1467_v4  ;;  %5463 = vmatmul.mubr.msk.f32.vlgmr.msra.gmra.mrb[36].mxu0 %vm293_vm1, %v1467_v4 }
 0x3f9   :  { %6197 = vmatpush3.bf16.msra.mxu1 %v7191_v38  ;;  %6209 = vmatpush3.bf16.msra.mxu0 %v7193_v39 }
 0x3fa   :  { %6198 = vmatprep.subr.bf16.mxu1 %v6811_v11  ;;  %6210 = vmatprep.subr.bf16.mxu0 %v6811_v11 }
 0x3fb   :  { %5481 = vmatprep.mubr.msk.f32.mxu1 %vm6812_vm2, %v6813_v36  ;;  %5500 = vmatprep.mubr.msk.f32.mxu0 %vm6812_vm2, %v6813_v36 }
 0x3fd   :  { %6200 = vmatpush3.bf16.msra.mxu1 %v7205_v44  ;;  %6212 = vmatpush3.bf16.msra.mxu0 %v7207_v45 }
 0x3fe   :  { %6201 = vmatprep.subr.bf16.mxu1 %v6811_v11  ;;  %6213 = vmatprep.subr.bf16.mxu0 %v6811_v11 }
 0x401   :  { %6203 = vmatpush3.bf16.msra.mxu1 %v7221_v50  ;;  %6215 = vmatpush3.bf16.msra.mxu0 %v7223_v51 }
 0x402   :  { %6204 = vmatprep.subr.bf16.mxu1 %v6811_v11  ;;  %6216 = vmatprep.subr.bf16.mxu0 %v6811_v11 }
 0x405   :  { %6206 = vmatpush3.bf16.msra.mxu1 %v7233_v56  ;;  %6218 = vmatpush3.bf16.msra.mxu0 %v7235_v57 }
 0x406   :  { %6219 = vmatprep.subr.bf16.mxu1 %v6811_v11  ;;  %6231 = vmatprep.subr.bf16.mxu0 %v6811_v11 }
 0x408   :  { %5482 = vmatmul.mubr.msk.f32.vlgmr.msra.gmra.mrb[30].mxu1 %vm293_vm1, %v1467_v4  ;;  %5501 = vmatmul.mubr.msk.f32.vlgmr.msra.gmra.mrb[38].mxu0 %vm293_vm1, %v1467_v4 }
 0x409   :  { %6221 = vmatpush3.bf16.msra.mxu1 %v7126_v12  ;;  %6233 = vmatpush3.bf16.msra.mxu0 %v7128_v13 }
 0x40a   :  { %6222 = vmatprep.subr.bf16.mxu1 %v6811_v11  ;;  %6234 = vmatprep.subr.bf16.mxu0 %v6811_v11 }
 0x40b   :  { %5519 = vmatprep.mubr.msk.f32.mxu1 %vm6812_vm2, %v6813_v36  ;;  %5538 = vmatprep.mubr.msk.f32.mxu0 %vm6812_vm2, %v6813_v36 }
 0x40d   :  { %6224 = vmatpush3.bf16.msra.mxu1 %v7140_v18  ;;  %6236 = vmatpush3.bf16.msra.mxu0 %v7142_v19 }
 0x40e   :  { %6225 = vmatprep.subr.bf16.mxu1 %v6811_v11  ;;  %6237 = vmatprep.subr.bf16.mxu0 %v6811_v11 }
 0x411   :  { %6227 = vmatpush3.bf16.msra.mxu1 %v7156_v24  ;;  %6239 = vmatpush3.bf16.msra.mxu0 %v7158_v25 }
 0x412   :  { %6228 = vmatprep.subr.bf16.mxu1 %v6811_v11  ;;  %6240 = vmatprep.subr.bf16.mxu0 %v6811_v11 }
 0x415   :  { %6230 = vmatpush3.bf16.msra.mxu1 %v7172_v30  ;;  %6242 = vmatpush3.bf16.msra.mxu0 %v7174_v31 }
 0x416   :  { %6243 = vmatprep.subr.bf16.mxu1 %v6811_v11  ;;  %6255 = vmatprep.subr.bf16.mxu0 %v6811_v11 }
 0x4cb   :  { %v1548_v6 = vpop.f32.mrb[28].mxu1  ;;  %v1635_v8 = vpop.f32.mrb[36].mxu0 }
 0x4cc   :  { %v1552_v9 = vadd.f32 %v1548_v6, %v1470_v5  ;;  %v1639_v10 = vadd.f32 %v1635_v8, %v1560_v7  ;;  %v5445_v14 = vpop.f32.mrb[29].mxu1  ;;  %v5464_v15 = vpop.f32.mrb[37].mxu0 }
 0x4ce   :  { %v4554_v16 = vmul.f32 -1.442695, %v1552_v9  ;;  %v4556_v17 = vmul.f32 -1.442695, %v1639_v10 }
 0x4d0   :  { %6622 = vpow2.f32 %v4554_v16 }
 0x4d1   :  { %6624 = vpow2.f32 %v4556_v17 }
 0x4da   :  { %v6623_v21 = vpop.eup %6622 }
 0x4db   :  { %v6625_v20 = vpop.eup %6624  ;;  %v1556_v22 = vadd.f32 1.0, %v6623_v21  ;;  %v1722_v26 = vpop.f32.mrb[30].mxu1 }
 0x4dc   :  { %v1804_v28 = vpop.f32.mrb[38].mxu0  ;;  %v1643_v29 = vadd.f32 1.0, %v6625_v20  ;;  %v1726_v32 = vadd.f32 %v1722_v26, %v1647_v23  ;;  %v5483_v34 = vpop.f32.mrb[31].mxu1  ;;  %v2622_v26 = vld [vmem:[%s6919_s17 + $0x10] sm:$0xff] }
 0x4dd   :  { %v1808_v33 = vadd.f32 %v1804_v28, %v1729_v27  ;;  %v5502_v35 = vpop.f32.mrb[39].mxu0  ;;  %6626 = vrcp.f32 %v1556_v22  ;;  %v2623_v28 = vld [vmem:[%s6919_s17 + $0x18] sm:$0xff]  ;;  %v2624_v34 = vld [vmem:[%s6919_s17 + $0x20] sm:$0xff] }
 0x4de   :  { %6628 = vrcp.f32 %v1643_v29  ;;  %v7450_v29 = vpack.c.bf16 %v2623_v28, %v2622_v26 }
 0x4df   :  { %v4559_v37 = vmul.f32 -1.442695, %v1808_v33  ;;  %6630 = vtanh.f32 %v1726_v32  ;;  %v2534_v32 = vld [vmem:[%s6914_s9 + $0x20] sm:$0xff]  ;;  %v2535_v33 = vld [vmem:[%s6914_s9 + $0x28] sm:$0xff] }
 0x4e0   :  { %v7456_v35 = vpack.c.bf16 %v2535_v33, %v2534_v32  ;;  %v2711_v32 = vld [vmem:[%s6924_s27 + $0x20] sm:$0xff]  ;;  %v2712_v33 = vld [vmem:[%s6924_s27 + $0x28] sm:$0xff] }
 0x4e1   :  { %6632 = vpow2.f32 %v4559_v37  ;;  %v2625_v37 = vld [vmem:[%s6919_s17 + $0x28] sm:$0xff] }
 0x4e7   :  { %v6627_v40 = vpop.eup %6626 }
 0x4e8   :  { %v6629_v41 = vpop.eup %6628 }
 0x4e9   :  { %v6631_v42 = vpop.eup %6630  ;;  %v1815_v43 = vmul.f32 %v6629_v41, %v7302_v1  ;;  %v2536_v41 = vld [vmem:[%s6914_s9 + $0x30] sm:$0xff] }
 0x4ea   :  { %v1816_v47 = vmul.f32 %v6631_v42, %v6627_v40  ;;  %v7461_v40 = vpack.c.bf16 %v2625_v37, %v2624_v34  ;;  %v2537_v42 = vld [vmem:[%s6914_s9 + $0x38] sm:$0xff]  ;;  %v2793_v34 = vld [vmem:[%s7831_s0 + $0x20] sm:$0xff]  ;;  %v2794_v37 = vld [vmem:[%s7831_s0 + $0x28] sm:$0xff] }
 0x4eb   :  { %v6633_v46 = vpop.eup %6632 }
 0x4ec   :  { %v1812_v48 = vadd.f32 1.0, %v6633_v46  ;;  %v7351_v49 = vadd.f32 %v1816_v47, %v1815_v43  ;;  %v2626_v43 = vld [vmem:[%s6919_s17 + $0x30] sm:$0xff]  ;;  %v2627_v46 = vld [vmem:[%s6919_s17 + $0x38] sm:$0xff]  ;;  %v7469_v47 = vpack.c.bf16 %v2537_v42, %v2536_v41  ;;  %v7517_v41 = vpack.c.bf16 %v2712_v33, %v2711_v32 }
 0x4ed   :  { %v7519_v42 = vpack.c.bf16 %v2794_v37, %v2793_v34 }
 0x4ee   :  { %6634 = vrcp.f32 %v1812_v48  ;;  %v7473_v48 = vpack.c.bf16 %v2627_v46, %v2626_v43  ;;  %v2713_v43 = vld [vmem:[%s6924_s27 + $0x30] sm:$0xff]  ;;  %v2714_v46 = vld [vmem:[%s6924_s27 + $0x38] sm:$0xff] }
 0x4ef   :  { %6636 = vtanh.f32 %v7351_v49 }
 0x4f8   :  { %v6635_v52 = vpop.eup %6634 }
 0x4f9   :  { %v6637_v53 = vpop.eup %6636 }
 0x4fa   :  { %v1819_v54 = vmul.f32 %v6637_v53, %v6635_v52  ;;  %v2266_v53 = vld [vmem:[#allocation3 + $0x18] sm:$0xff] }
 0x4fc   :  { %1821 = vst.msk [vmem:[#allocation6 + $0x8] sm:$0xff] %vm293_vm1, %v1819_v54  ;;  %5520 = vmatmul.mubr.msk.f32.vlgmr.msra.gmra.mrb[32].mxu1 %vm293_vm1, %v1819_v54  ;;  %5539 = vmatmul.mubr.msk.f32.vlgmr.msra.gmra.mrb[40].mxu0 %vm293_vm1, %v1819_v54 }
 0x4fd   :  { %6245 = vmatpush3.bf16.msra.mxu1 %v7191_v38  ;;  %6257 = vmatpush3.bf16.msra.mxu0 %v7193_v39 }
 0x4fe   :  { %6246 = vmatprep.subr.bf16.mxu1 %v6811_v11  ;;  %6258 = vmatprep.subr.bf16.mxu0 %v6811_v11 }
 0x4ff   :  { %5557 = vmatprep.mubr.msk.f32.mxu1 %vm6812_vm2, %v6813_v36  ;;  %5576 = vmatprep.mubr.msk.f32.mxu0 %vm6812_vm2, %v6813_v36 }
 0x501   :  { %6248 = vmatpush3.bf16.msra.mxu1 %v7205_v44  ;;  %6260 = vmatpush3.bf16.msra.mxu0 %v7207_v45 }
 0x502   :  { %6249 = vmatprep.subr.bf16.mxu1 %v6811_v11  ;;  %6261 = vmatprep.subr.bf16.mxu0 %v6811_v11 }
 0x505   :  { %6251 = vmatpush3.bf16.msra.mxu1 %v7221_v50  ;;  %6263 = vmatpush3.bf16.msra.mxu0 %v7223_v51 }
 0x506   :  { %6252 = vmatprep.subr.bf16.mxu1 %v6811_v11  ;;  %6264 = vmatprep.subr.bf16.mxu0 %v6811_v11 }
 0x509   :  { %6254 = vmatpush3.bf16.msra.mxu1 %v7233_v56  ;;  %6266 = vmatpush3.bf16.msra.mxu0 %v7235_v57 }
 0x50a   :  { %6267 = vmatprep.subr.bf16.mxu1 %v6811_v11  ;;  %6279 = vmatprep.subr.bf16.mxu0 %v6811_v11 }
 0x50c   :  { %5558 = vmatmul.mubr.msk.f32.vlgmr.msra.gmra.mrb[34].mxu1 %vm293_vm1, %v1819_v54  ;;  %5577 = vmatmul.mubr.msk.f32.vlgmr.msra.gmra.mrb[42].mxu0 %vm293_vm1, %v1819_v54 }
 0x50d   :  { %6269 = vmatpush3.bf16.msra.mxu1 %v7126_v12  ;;  %6281 = vmatpush3.bf16.msra.mxu0 %v7128_v13  ;;  %v1823_v12 = vld [vmem:[#allocation2 + $0x10] sm:$0xff] }
 0x50e   :  { %6270 = vmatprep.subr.bf16.mxu1 %v6811_v11  ;;  %6282 = vmatprep.subr.bf16.mxu0 %v6811_v11 }
 0x50f   :  { %5595 = vmatprep.mubr.msk.f32.mxu1 %vm6812_vm2, %v6813_v36  ;;  %5614 = vmatprep.mubr.msk.f32.mxu0 %vm6812_vm2, %v6813_v36 }
 0x511   :  { %6272 = vmatpush3.bf16.msra.mxu1 %v7140_v18  ;;  %6284 = vmatpush3.bf16.msra.mxu0 %v7142_v19  ;;  %v1913_v18 = vld [vmem:[#allocation3 + $0x10] sm:$0xff] }
 0x512   :  { %6273 = vmatprep.subr.bf16.mxu1 %v6811_v11  ;;  %6285 = vmatprep.subr.bf16.mxu0 %v6811_v11 }
 0x515   :  { %6275 = vmatpush3.bf16.msra.mxu1 %v7156_v24  ;;  %6287 = vmatpush3.bf16.msra.mxu0 %v7158_v25 }
 0x516   :  { %6276 = vmatprep.subr.bf16.mxu1 %v6811_v11  ;;  %6288 = vmatprep.subr.bf16.mxu0 %v6811_v11 }
 0x519   :  { %6278 = vmatpush3.bf16.msra.mxu1 %v7172_v30  ;;  %6290 = vmatpush3.bf16.msra.mxu0 %v7174_v31  ;;  %v2000_v31 = vld [vmem:[#allocation4 + $0x10] sm:$0xff] }
 0x51a   :  { %6291 = vmatprep.subr.bf16.mxu1 %v6811_v11  ;;  %6303 = vmatprep.subr.bf16.mxu0 %v6811_v11 }
 0x5cf   :  { %v1901_v13 = vpop.f32.mrb[32].mxu1  ;;  %v1988_v19 = vpop.f32.mrb[40].mxu0 }
 0x5d0   :  { %v1905_v55 = vadd.f32 %v1901_v13, %v1823_v12  ;;  %v1992_v24 = vadd.f32 %v1988_v19, %v1913_v18  ;;  %v5521_v58 = vpop.f32.mrb[33].mxu1  ;;  %v5540_v25 = vpop.f32.mrb[41].mxu0 }
 0x5d2   :  { %v4561_v59 = vmul.f32 -1.442695, %v1905_v55  ;;  %v4563_v60 = vmul.f32 -1.442695, %v1992_v24 }
 0x5d4   :  { %6638 = vpow2.f32 %v4561_v59 }
 0x5d5   :  { %6640 = vpow2.f32 %v4563_v60  ;;  %v2353_v60 = vld [vmem:[#allocation4 + $0x18] sm:$0xff] }
 0x5de   :  { %v6639_v61 = vpop.eup %6638 }
 0x5df   :  { %v6641_v30 = vpop.eup %6640  ;;  %v1909_v62 = vadd.f32 1.0, %v6639_v61  ;;  %v2075_v63 = vpop.f32.mrb[34].mxu1 }
 0x5e0   :  { %v2157_v1 = vpop.f32.mrb[42].mxu0  ;;  %v1996_v2 = vadd.f32 1.0, %v6641_v30  ;;  %v2079_v3 = vadd.f32 %v2075_v63, %v2000_v31  ;;  %v5559_v5 = vpop.f32.mrb[35].mxu1  ;;  %v2435_v30 = vld [vmem:[#allocation5 + $0x18] sm:$0xff] }
 0x5e1   :  { %v2161_v4 = vadd.f32 %v2157_v1, %v2082_v0  ;;  %v5578_v6 = vpop.f32.mrb[43].mxu0  ;;  %6642 = vrcp.f32 %v1909_v62 }
 0x5e2   :  { %6644 = vrcp.f32 %v1996_v2 }
 0x5e3   :  { %v4566_v7 = vmul.f32 -1.442695, %v2161_v4  ;;  %6646 = vtanh.f32 %v2079_v3 }
 0x5e5   :  { %6648 = vpow2.f32 %v4566_v7 }
 0x5eb   :  { %v6643_v8 = vpop.eup %6642 }
 0x5ec   :  { %v6645_v9 = vpop.eup %6644 }
 0x5ed   :  { %v6647_v10 = vpop.eup %6646  ;;  %v2168_v14 = vmul.f32 %v6645_v9, %v7351_v49  ;;  %v2176_v49 = vld [vmem:[#allocation2 + $0x18] sm:$0xff] }
 0x5ee   :  { %v2169_v16 = vmul.f32 %v6647_v10, %v6643_v8 }
 0x5ef   :  { %v6649_v15 = vpop.eup %6648 }
 0x5f0   :  { %v2165_v17 = vadd.f32 1.0, %v6649_v15  ;;  %v7400_v21 = vadd.f32 %v2169_v16, %v2168_v14  ;;  %v2707_v15 = vld [vmem:[%s6924_s27] sm:$0xff]  ;;  %v2708_v16 = vld [vmem:[%s6924_s27 + $0x8] sm:$0xff] }
 0x5f2   :  { %6650 = vrcp.f32 %v2165_v17  ;;  %v2789_v17 = vld [vmem:[%s7831_s0] sm:$0xff] }
 0x5f3   :  { %6652 = vtanh.f32 %v7400_v21 }
 0x5fc   :  { %v6651_v20 = vpop.eup %6650 }
 0x5fd   :  { %v6653_v22 = vpop.eup %6652 }
 0x5fe   :  { %v2172_v23 = vmul.f32 %v6653_v22, %v6651_v20  ;;  %v2790_v20 = vld [vmem:[%s7831_s0 + $0x8] sm:$0xff] }
 0x600   :  { %2174 = vst.msk [vmem:[#allocation6 + $0x10] sm:$0xff] %vm293_vm1, %v2172_v23  ;;  %5596 = vmatmul.mubr.msk.f32.vlgmr.msra.gmra.mrb[36].mxu1 %vm293_vm1, %v2172_v23  ;;  %5615 = vmatmul.mubr.msk.f32.vlgmr.msra.gmra.mrb[44].mxu0 %vm293_vm1, %v2172_v23 }
 0x601   :  { %6293 = vmatpush3.bf16.msra.mxu1 %v7191_v38  ;;  %6305 = vmatpush3.bf16.msra.mxu0 %v7193_v39  ;;  %v2530_v38 = vld [vmem:[%s6914_s9] sm:$0xff]  ;;  %v2531_v39 = vld [vmem:[%s6914_s9 + $0x8] sm:$0xff] }
 0x602   :  { %6294 = vmatprep.subr.bf16.mxu1 %v6811_v11  ;;  %6306 = vmatprep.subr.bf16.mxu0 %v6811_v11 }
 0x603   :  { %5633 = vmatprep.mubr.msk.f32.mxu1 %vm6812_vm2, %v6813_v36  ;;  %5652 = vmatprep.mubr.msk.f32.mxu0 %vm6812_vm2, %v6813_v36 }
 0x605   :  { %6296 = vmatpush3.bf16.msra.mxu1 %v7205_v44  ;;  %6308 = vmatpush3.bf16.msra.mxu0 %v7207_v45  ;;  %v2620_v44 = vld [vmem:[%s6919_s17] sm:$0xff]  ;;  %v7435_v45 = vpack.c.bf16 %v2531_v39, %v2530_v38  ;;  %v7488_v38 = vpack.c.bf16 %v2708_v16, %v2707_v15  ;;  %v2709_v39 = vld [vmem:[%s6924_s27 + $0x10] sm:$0xff] }
 0x606   :  { %6297 = vmatprep.subr.bf16.mxu1 %v6811_v11  ;;  %6309 = vmatprep.subr.bf16.mxu0 %v6811_v11 }
 0x609   :  { %6299 = vmatpush3.bf16.msra.mxu1 %v7221_v50  ;;  %6311 = vmatpush3.bf16.msra.mxu0 %v7223_v51  ;;  %v2621_v50 = vld [vmem:[%s6919_s17 + $0x8] sm:$0xff]  ;;  %s7839_s17 = sld [smem:[#allocation22_spill]] }
 0x60a   :  { %6300 = vmatprep.subr.bf16.mxu1 %v6811_v11  ;;  %6312 = vmatprep.subr.bf16.mxu0 %v6811_v11  ;;  %v7438_v51 = vpack.c.bf16 %v2621_v50, %v2620_v44  ;;  %v2710_v50 = vld [vmem:[%s6924_s27 + $0x18] sm:$0xff]  ;;  %s4472_s27 = sshll.u32 %s6815_s20, 4  ;;  %s4473_s27 = int_to_ptr.vmem [resolvable:$true] %s4472_s27 }
 0x60b   :  { %v7501_v26 = vpack.c.bf16 %v2710_v50, %v2709_v39 }
 0x60d   :  { %6302 = vmatpush3.bf16.msra.mxu1 %v7233_v56  ;;  %6314 = vmatpush3.bf16.msra.mxu0 %v7235_v57  ;;  %v2532_v56 = vld [vmem:[%s6914_s9 + $0x10] sm:$0xff]  ;;  %v2533_v57 = vld [vmem:[%s6914_s9 + $0x18] sm:$0xff]  ;;  %s7838_s9 = sld [smem:[#allocation23_spill]] }
 0x60e   :  { %6315 = vmatprep.subr.bf16.mxu1 %v6811_v11  ;;  %6327 = vmatprep.subr.bf16.mxu0 %v6811_v11  ;;  %v7447_v27 = vpack.c.bf16 %v2533_v57, %v2532_v56  ;;  %v2791_v56 = vld [vmem:[%s7831_s0 + $0x10] sm:$0xff]  ;;  %v2792_v57 = vld [vmem:[%s7831_s0 + $0x18] sm:$0xff] }
 0x60f   :  { %v7503_v28 = vpack.c.bf16 %v2792_v57, %v2791_v56  ;;  %v2972_v56 = vld [vmem:[#allocation3 + $0x28] sm:$0xff] }
 0x610   :  { %5634 = vmatmul.mubr.msk.f32.vlgmr.msra.gmra.mrb[38].mxu1 %vm293_vm1, %v2172_v23  ;;  %5653 = vmatmul.mubr.msk.f32.vlgmr.msra.gmra.mrb[46].mxu0 %vm293_vm1, %v2172_v23 }
 0x611   :  { %5671 = vmatprep.mubr.msk.f32.mxu1 %vm6812_vm2, %v6813_v36  ;;  %5690 = vmatprep.mubr.msk.f32.mxu0 %vm6812_vm2, %v6813_v36 }
 0x612   :  { %6317 = vmatpush3.bf16.msra.mxu1 %v7435_v45  ;;  %6329 = vmatpush3.bf16.msra.mxu0 %v7438_v51 }
 0x613   :  { %6318 = vmatprep.subr.bf16.mxu1 %v6811_v11  ;;  %6330 = vmatprep.subr.bf16.mxu0 %v6811_v11 }
 0x616   :  { %6320 = vmatpush3.bf16.msra.mxu1 %v7447_v27  ;;  %6332 = vmatpush3.bf16.msra.mxu0 %v7450_v29 }
 0x617   :  { %6321 = vmatprep.subr.bf16.mxu1 %v6811_v11  ;;  %6333 = vmatprep.subr.bf16.mxu0 %v6811_v11 }
 0x61a   :  { %6323 = vmatpush3.bf16.msra.mxu1 %v7456_v35  ;;  %6335 = vmatpush3.bf16.msra.mxu0 %v7461_v40 }
 0x61b   :  { %6324 = vmatprep.subr.bf16.mxu1 %v6811_v11  ;;  %6336 = vmatprep.subr.bf16.mxu0 %v6811_v11 }
 0x61e   :  { %6326 = vmatpush3.bf16.msra.mxu1 %v7469_v47  ;;  %6338 = vmatpush3.bf16.msra.mxu0 %v7473_v48 }
 0x61f   :  { %6339 = vmatprep.subr.bf16.mxu1 %v6811_v11  ;;  %6351 = vmatprep.subr.bf16.mxu0 %v6811_v11 }
 0x6d3   :  { %v2254_v52 = vpop.f32.mrb[36].mxu1  ;;  %v2341_v54 = vpop.f32.mrb[44].mxu0 }
 0x6d4   :  { %v2258_v12 = vadd.f32 %v2254_v52, %v2176_v49  ;;  %v2345_v13 = vadd.f32 %v2341_v54, %v2266_v53  ;;  %v5597_v18 = vpop.f32.mrb[37].mxu1  ;;  %v5616_v19 = vpop.f32.mrb[45].mxu0  ;;  %v2795_v49 = vld [vmem:[%s7831_s0 + $0x30] sm:$0xff]  ;;  %v2796_v52 = vld [vmem:[%s7831_s0 + $0x38] sm:$0xff]  ;;  %v7529_v53 = vpack.c.bf16 %v2714_v46, %v2713_v43 }
 0x6d5   :  { %v7531_v54 = vpack.c.bf16 %v2796_v52, %v2795_v49  ;;  %v2619_v18 = vld [vmem:[#allocation3 + $0x20] sm:$0xff] }
 0x6d6   :  { %v4568_v55 = vmul.f32 -1.442695, %v2258_v12  ;;  %v4570_v24 = vmul.f32 -1.442695, %v2345_v13  ;;  %v2529_v12 = vld [vmem:[#allocation2 + $0x20] sm:$0xff] }
 0x6d8   :  { %6654 = vpow2.f32 %v4568_v55 }
 0x6d9   :  { %6656 = vpow2.f32 %v4570_v24 }
 0x6e2   :  { %v6655_v58 = vpop.eup %6654 }
 0x6e3   :  { %v6657_v25 = vpop.eup %6656  ;;  %v2262_v59 = vadd.f32 1.0, %v6655_v58  ;;  %v2428_v61 = vpop.f32.mrb[38].mxu1 }
 0x6e4   :  { %v2510_v62 = vpop.f32.mrb[46].mxu0  ;;  %v2349_v31 = vadd.f32 1.0, %v6657_v25  ;;  %v2432_v63 = vadd.f32 %v2428_v61, %v2353_v60  ;;  %v5635_v1 = vpop.f32.mrb[39].mxu1 }
 0x6e5   :  { %v2514_v0 = vadd.f32 %v2510_v62, %v2435_v30  ;;  %v5654_v2 = vpop.f32.mrb[47].mxu0  ;;  %6658 = vrcp.f32 %v2262_v59 }
 0x6e6   :  { %6660 = vrcp.f32 %v2349_v31  ;;  %v2706_v31 = vld [vmem:[#allocation4 + $0x20] sm:$0xff] }
 0x6e7   :  { %v4573_v3 = vmul.f32 -1.442695, %v2514_v0  ;;  %6662 = vtanh.f32 %v2432_v63  ;;  %v2788_v0 = vld [vmem:[#allocation5 + $0x20] sm:$0xff] }
 0x6e9   :  { %6664 = vpow2.f32 %v4573_v3 }
 0x6ef   :  { %v6659_v4 = vpop.eup %6658 }
 0x6f0   :  { %v6661_v5 = vpop.eup %6660 }
 0x6f1   :  { %v6663_v6 = vpop.eup %6662  ;;  %v2521_v7 = vmul.f32 %v6661_v5, %v7400_v21  ;;  %v7490_v21 = vpack.c.bf16 %v2790_v20, %v2789_v17 }
 0x6f2   :  { %v2522_v9 = vmul.f32 %v6663_v6, %v6659_v4 }
 0x6f3   :  { %v6665_v8 = vpop.eup %6664 }
 0x6f4   :  { %v2518_v10 = vadd.f32 1.0, %v6665_v8  ;;  %v7481_v14 = vadd.f32 %v2522_v9, %v2521_v7 }
 0x6f6   :  { %6666 = vrcp.f32 %v2518_v10 }
 0x6f7   :  { %6668 = vtanh.f32 %v7481_v14 }
 0x700   :  { %v6667_v22 = vpop.eup %6666 }
 0x701   :  { %v6669_v23 = vpop.eup %6668 }
 0x702   :  { %v2525_v44 = vmul.f32 %v6669_v23, %v6667_v22 }
 0x704   :  { %2527 = vst.msk [vmem:[#allocation6 + $0x18] sm:$0xff] %vm293_vm1, %v2525_v44  ;;  %5672 = vmatmul.mubr.msk.f32.vlgmr.msra.gmra.mrb[40].mxu1 %vm293_vm1, %v2525_v44  ;;  %5691 = vmatmul.mubr.msk.f32.vlgmr.msra.gmra.mrb[48].mxu0 %vm293_vm1, %v2525_v44 }
 0x705   :  { %6341 = vmatpush3.bf16.msra.mxu1 %v7488_v38  ;;  %6353 = vmatpush3.bf16.msra.mxu0 %v7490_v21 }
 0x706   :  { %6342 = vmatprep.subr.bf16.mxu1 %v6811_v11  ;;  %6354 = vmatprep.subr.bf16.mxu0 %v6811_v11 }
 0x707   :  { %5709 = vmatprep.mubr.msk.f32.mxu1 %vm6812_vm2, %v6813_v36  ;;  %5728 = vmatprep.mubr.msk.f32.mxu0 %vm6812_vm2, %v6813_v36 }
 0x709   :  { %6344 = vmatpush3.bf16.msra.mxu1 %v7501_v26  ;;  %6356 = vmatpush3.bf16.msra.mxu0 %v7503_v28 }
 0x70a   :  { %6345 = vmatprep.subr.bf16.mxu1 %v6811_v11  ;;  %6357 = vmatprep.subr.bf16.mxu0 %v6811_v11 }
 0x70d   :  { %6347 = vmatpush3.bf16.msra.mxu1 %v7517_v41  ;;  %6359 = vmatpush3.bf16.msra.mxu0 %v7519_v42 }
 0x70e   :  { %6348 = vmatprep.subr.bf16.mxu1 %v6811_v11  ;;  %6360 = vmatprep.subr.bf16.mxu0 %v6811_v11 }
 0x711   :  { %6350 = vmatpush3.bf16.msra.mxu1 %v7529_v53  ;;  %6362 = vmatpush3.bf16.msra.mxu0 %v7531_v54 }
 0x712   :  { %6363 = vmatprep.subr.bf16.mxu1 %v6811_v11  ;;  %6375 = vmatprep.subr.bf16.mxu0 %v6811_v11 }
 0x714   :  { %5710 = vmatmul.mubr.msk.f32.vlgmr.msra.gmra.mrb[42].mxu1 %vm293_vm1, %v2525_v44  ;;  %5729 = vmatmul.mubr.msk.f32.vlgmr.msra.gmra.mrb[50].mxu0 %vm293_vm1, %v2525_v44 }
 0x715   :  { %6365 = vmatpush3.bf16.msra.mxu1 %v7435_v45  ;;  %6377 = vmatpush3.bf16.msra.mxu0 %v7438_v51 }
 0x716   :  { %6366 = vmatprep.subr.bf16.mxu1 %v6811_v11  ;;  %6378 = vmatprep.subr.bf16.mxu0 %v6811_v11 }
 0x717   :  { %5747 = vmatprep.mubr.msk.f32.mxu1 %vm6812_vm2, %v6813_v36  ;;  %5766 = vmatprep.mubr.msk.f32.mxu0 %vm6812_vm2, %v6813_v36 }
 0x719   :  { %6368 = vmatpush3.bf16.msra.mxu1 %v7447_v27  ;;  %6380 = vmatpush3.bf16.msra.mxu0 %v7450_v29 }
 0x71a   :  { %6369 = vmatprep.subr.bf16.mxu1 %v6811_v11  ;;  %6381 = vmatprep.subr.bf16.mxu0 %v6811_v11 }
 0x71d   :  { %6371 = vmatpush3.bf16.msra.mxu1 %v7456_v35  ;;  %6383 = vmatpush3.bf16.msra.mxu0 %v7461_v40 }
 0x71e   :  { %6372 = vmatprep.subr.bf16.mxu1 %v6811_v11  ;;  %6384 = vmatprep.subr.bf16.mxu0 %v6811_v11 }
 0x721   :  { %6374 = vmatpush3.bf16.msra.mxu1 %v7469_v47  ;;  %6386 = vmatpush3.bf16.msra.mxu0 %v7473_v48 }
 0x722   :  { %6387 = vmatprep.subr.bf16.mxu1 %v6811_v11  ;;  %6399 = vmatprep.subr.bf16.mxu0 %v6811_v11 }
 0x7d7   :  { %v2607_v13 = vpop.f32.mrb[40].mxu1  ;;  %v2694_v19 = vpop.f32.mrb[48].mxu0 }
 0x7d8   :  { %v2611_v55 = vadd.f32 %v2607_v13, %v2529_v12  ;;  %v2698_v24 = vadd.f32 %v2694_v19, %v2619_v18  ;;  %v5673_v58 = vpop.f32.mrb[41].mxu1  ;;  %v5692_v25 = vpop.f32.mrb[49].mxu0  ;;  %v3059_v13 = vld [vmem:[#allocation4 + $0x28] sm:$0xff] }
 0x7d9   :  { %v3141_v19 = vld [vmem:[#allocation5 + $0x28] sm:$0xff] }
 0x7da   :  { %v4575_v59 = vmul.f32 -1.442695, %v2611_v55  ;;  %v4577_v60 = vmul.f32 -1.442695, %v2698_v24 }
 0x7dc   :  { %6670 = vpow2.f32 %v4575_v59 }
 0x7dd   :  { %6672 = vpow2.f32 %v4577_v60 }
 0x7e6   :  { %v6671_v61 = vpop.eup %6670 }
 0x7e7   :  { %v6673_v30 = vpop.eup %6672  ;;  %v2615_v62 = vadd.f32 1.0, %v6671_v61  ;;  %v2781_v63 = vpop.f32.mrb[42].mxu1 }
 0x7e8   :  { %v2863_v1 = vpop.f32.mrb[50].mxu0  ;;  %v2702_v2 = vadd.f32 1.0, %v6673_v30  ;;  %v2785_v3 = vadd.f32 %v2781_v63, %v2706_v31  ;;  %v5711_v5 = vpop.f32.mrb[43].mxu1 }
 0x7e9   :  { %v2867_v4 = vadd.f32 %v2863_v1, %v2788_v0  ;;  %v5730_v6 = vpop.f32.mrb[51].mxu0  ;;  %6674 = vrcp.f32 %v2615_v62 }
 0x7ea   :  { %6676 = vrcp.f32 %v2702_v2 }
 0x7eb   :  { %v4580_v7 = vmul.f32 -1.442695, %v2867_v4  ;;  %6678 = vtanh.f32 %v2785_v3 }
 0x7ed   :  { %6680 = vpow2.f32 %v4580_v7 }
 0x7f3   :  { %v6675_v8 = vpop.eup %6674 }
 0x7f4   :  { %v6677_v9 = vpop.eup %6676 }
 0x7f5   :  { %v6679_v10 = vpop.eup %6678  ;;  %v2874_v15 = vmul.f32 %v6677_v9, %v7481_v14  ;;  %v2882_v14 = vld [vmem:[#allocation2 + $0x28] sm:$0xff] }
 0x7f6   :  { %v2875_v17 = vmul.f32 %v6679_v10, %v6675_v8 }
 0x7f7   :  { %v6681_v16 = vpop.eup %6680 }
 0x7f8   :  { %v2871_v20 = vadd.f32 1.0, %v6681_v16  ;;  %v7562_v22 = vadd.f32 %v2875_v17, %v2874_v15 }
 0x7fa   :  { %6682 = vrcp.f32 %v2871_v20  ;;  %v3494_v20 = vld [vmem:[#allocation5 + $0x30] sm:$0xff] }
 0x7fb   :  { %6684 = vtanh.f32 %v7562_v22 }
 0x804   :  { %v6683_v23 = vpop.eup %6682 }
 0x805   :  { %v6685_v39 = vpop.eup %6684 }
 0x806   :  { %v2878_v44 = vmul.f32 %v6685_v39, %v6683_v23 }
 0x808   :  { %2880 = vst.msk [vmem:[#allocation6 + $0x20] sm:$0xff] %vm293_vm1, %v2878_v44  ;;  %5748 = vmatmul.mubr.msk.f32.vlgmr.msra.gmra.mrb[44].mxu1 %vm293_vm1, %v2878_v44  ;;  %5767 = vmatmul.mubr.msk.f32.vlgmr.msra.gmra.mrb[52].mxu0 %vm293_vm1, %v2878_v44 }
 0x809   :  { %6389 = vmatpush3.bf16.msra.mxu1 %v7488_v38  ;;  %6401 = vmatpush3.bf16.msra.mxu0 %v7490_v21 }
 0x80a   :  { %6390 = vmatprep.subr.bf16.mxu1 %v6811_v11  ;;  %6402 = vmatprep.subr.bf16.mxu0 %v6811_v11 }
 0x80b   :  { %5785 = vmatprep.mubr.msk.f32.mxu1 %vm6812_vm2, %v6813_v36  ;;  %5804 = vmatprep.mubr.msk.f32.mxu0 %vm6812_vm2, %v6813_v36 }
 0x80d   :  { %6392 = vmatpush3.bf16.msra.mxu1 %v7501_v26  ;;  %6404 = vmatpush3.bf16.msra.mxu0 %v7503_v28 }
 0x80e   :  { %6393 = vmatprep.subr.bf16.mxu1 %v6811_v11  ;;  %6405 = vmatprep.subr.bf16.mxu0 %v6811_v11 }
 0x811   :  { %6395 = vmatpush3.bf16.msra.mxu1 %v7517_v41  ;;  %6407 = vmatpush3.bf16.msra.mxu0 %v7519_v42 }
 0x812   :  { %6396 = vmatprep.subr.bf16.mxu1 %v6811_v11  ;;  %6408 = vmatprep.subr.bf16.mxu0 %v6811_v11 }
 0x815   :  { %6398 = vmatpush3.bf16.msra.mxu1 %v7529_v53  ;;  %6410 = vmatpush3.bf16.msra.mxu0 %v7531_v54 }
 0x816   :  { %6411 = vmatprep.subr.bf16.mxu1 %v6811_v11  ;;  %6423 = vmatprep.subr.bf16.mxu0 %v6811_v11 }
 0x818   :  { %5786 = vmatmul.mubr.msk.f32.vlgmr.msra.gmra.mrb[46].mxu1 %vm293_vm1, %v2878_v44  ;;  %5805 = vmatmul.mubr.msk.f32.vlgmr.msra.gmra.mrb[54].mxu0 %vm293_vm1, %v2878_v44 }
 0x819   :  { %6413 = vmatpush3.bf16.msra.mxu1 %v7435_v45  ;;  %6425 = vmatpush3.bf16.msra.mxu0 %v7438_v51 }
 0x81a   :  { %6414 = vmatprep.subr.bf16.mxu1 %v6811_v11  ;;  %6426 = vmatprep.subr.bf16.mxu0 %v6811_v11 }
 0x81b   :  { %5823 = vmatprep.mubr.msk.f32.mxu1 %vm6812_vm2, %v6813_v36  ;;  %5842 = vmatprep.mubr.msk.f32.mxu0 %vm6812_vm2, %v6813_v36 }
 0x81d   :  { %6416 = vmatpush3.bf16.msra.mxu1 %v7447_v27  ;;  %6428 = vmatpush3.bf16.msra.mxu0 %v7450_v29 }
 0x81e   :  { %6417 = vmatprep.subr.bf16.mxu1 %v6811_v11  ;;  %6429 = vmatprep.subr.bf16.mxu0 %v6811_v11 }
 0x821   :  { %6419 = vmatpush3.bf16.msra.mxu1 %v7456_v35  ;;  %6431 = vmatpush3.bf16.msra.mxu0 %v7461_v40 }
 0x822   :  { %6420 = vmatprep.subr.bf16.mxu1 %v6811_v11  ;;  %6432 = vmatprep.subr.bf16.mxu0 %v6811_v11 }
 0x825   :  { %6422 = vmatpush3.bf16.msra.mxu1 %v7469_v47  ;;  %6434 = vmatpush3.bf16.msra.mxu0 %v7473_v48 }
 0x826   :  { %6435 = vmatprep.subr.bf16.mxu1 %v6811_v11  ;;  %6447 = vmatprep.subr.bf16.mxu0 %v6811_v11 }
 0x8db   :  { %v2960_v50 = vpop.f32.mrb[44].mxu1  ;;  %v3047_v57 = vpop.f32.mrb[52].mxu0 }
 0x8dc   :  { %v2964_v32 = vadd.f32 %v2960_v50, %v2882_v14  ;;  %v3051_v33 = vadd.f32 %v3047_v57, %v2972_v56  ;;  %v5749_v34 = vpop.f32.mrb[45].mxu1  ;;  %v5768_v37 = vpop.f32.mrb[53].mxu0 }
 0x8de   :  { %v4582_v43 = vmul.f32 -1.442695, %v2964_v32  ;;  %v4584_v46 = vmul.f32 -1.442695, %v3051_v33 }
 0x8e0   :  { %6686 = vpow2.f32 %v4582_v43 }
 0x8e1   :  { %6688 = vpow2.f32 %v4584_v46 }
 0x8ea   :  { %v6687_v49 = vpop.eup %6686 }
 0x8eb   :  { %v6689_v52 = vpop.eup %6688  ;;  %v2968_v12 = vadd.f32 1.0, %v6687_v49  ;;  %v3134_v18 = vpop.f32.mrb[46].mxu1 }
 0x8ec   :  { %v3216_v55 = vpop.f32.mrb[54].mxu0  ;;  %v3055_v24 = vadd.f32 1.0, %v6689_v52  ;;  %v3138_v58 = vadd.f32 %v3134_v18, %v3059_v13  ;;  %v5787_v59 = vpop.f32.mrb[47].mxu1 }
 0x8ed   :  { %v3220_v25 = vadd.f32 %v3216_v55, %v3141_v19  ;;  %v5806_v60 = vpop.f32.mrb[55].mxu0  ;;  %6690 = vrcp.f32 %v2968_v12  ;;  %v3955_v19 = vld [vmem:[%s7839_s17 + $0x28] sm:$0xff]  ;;  %v3957_v55 = vld [vmem:[%s7839_s17 + $0x38] sm:$0xff] }
 0x8ee   :  { %6692 = vrcp.f32 %v3055_v24  ;;  %v3954_v24 = vld [vmem:[%s7839_s17 + $0x20] sm:$0xff]  ;;  %v3961_v59 = vld [vmem:[%s7839_s17 + $0x58] sm:$0xff]  ;;  %v3967_v60 = vld [vmem:[%s7840_s14 + $0x8] sm:$0xff] }
 0x8ef   :  { %v4587_v61 = vmul.f32 -1.442695, %v3220_v25  ;;  %6694 = vtanh.f32 %v3138_v58  ;;  %v3956_v58 = vld [vmem:[%s7839_s17 + $0x30] sm:$0xff]  ;;  %v3959_v25 = vld [vmem:[%s7839_s17 + $0x48] sm:$0xff] }
 0x8f1   :  { %6696 = vpow2.f32 %v4587_v61  ;;  %v6513_v61 = vpack.c.bf16 %v3956_v58, %v3954_v24  ;;  %v4312_v24 = vld [vmem:[%s7841_s19 + $0x58] sm:$0xff] }
 0x8f7   :  { %v6691_v30 = vpop.eup %6690 }
 0x8f8   :  { %v6693_v62 = vpop.eup %6692 }
 0x8f9   :  { %v6695_v31 = vpop.eup %6694  ;;  %v3227_v63 = vmul.f32 %v6693_v62, %v7562_v22  ;;  %v3958_v62 = vld [vmem:[%s7839_s17 + $0x40] sm:$0xff] }
 0x8fa   :  { %v3228_v1 = vmul.f32 %v6695_v31, %v6691_v30  ;;  %v6515_v30 = vpack.c.bf16 %v3961_v59, %v3959_v25  ;;  %v3960_v31 = vld [vmem:[%s7839_s17 + $0x50] sm:$0xff]  ;;  %v4329_v25 = vld [vmem:[%s7841_s19 + $0xe0] sm:$0xff]  ;;  %v4330_v59 = vld [vmem:[%s7841_s19 + $0xe8] sm:$0xff] }
 0x8fb   :  { %v6697_v0 = vpop.eup %6696 }
 0x8fc   :  { %v3224_v2 = vadd.f32 1.0, %v6697_v0  ;;  %v7611_v3 = vadd.f32 %v3228_v1, %v3227_v63  ;;  %v3963_v63 = vld [vmem:[%s7839_s17 + $0x68] sm:$0xff]  ;;  %v3965_v0 = vld [vmem:[%s7839_s17 + $0x78] sm:$0xff]  ;;  %v3968_v1 = vld [vmem:[%s7840_s14 + $0x10] sm:$0xff] }
 0x8fe   :  { %6698 = vrcp.f32 %v3224_v2  ;;  %v6517_v2 = vpack.c.bf16 %v3960_v31, %v3958_v62  ;;  %v4331_v31 = vld [vmem:[%s7841_s19 + $0xf0] sm:$0xff] }
 0x8ff   :  { %6700 = vtanh.f32 %v7611_v3 }
 0x908   :  { %v6699_v4 = vpop.eup %6698 }
 0x909   :  { %v6701_v5 = vpop.eup %6700 }
 0x90a   :  { %v3231_v6 = vmul.f32 %v6701_v5, %v6699_v4  ;;  %v3962_v4 = vld [vmem:[%s7839_s17 + $0x60] sm:$0xff]  ;;  %v3964_v5 = vld [vmem:[%s7839_s17 + $0x70] sm:$0xff] }
 0x90c   :  { %3233 = vst.msk [vmem:[#allocation6 + $0x28] sm:$0xff] %vm293_vm1, %v3231_v6  ;;  %5824 = vmatmul.mubr.msk.f32.vlgmr.msra.gmra.mrb[48].mxu1 %vm293_vm1, %v3231_v6  ;;  %5843 = vmatmul.mubr.msk.f32.vlgmr.msra.gmra.mrb[56].mxu0 %vm293_vm1, %v3231_v6 }
 0x90d   :  { %6437 = vmatpush3.bf16.msra.mxu1 %v7488_v38  ;;  %6449 = vmatpush3.bf16.msra.mxu0 %v7490_v21 }
 0x90e   :  { %6438 = vmatprep.subr.bf16.mxu1 %v6811_v11  ;;  %6450 = vmatprep.subr.bf16.mxu0 %v6811_v11 }
 0x90f   :  { %5861 = vmatprep.mubr.msk.f32.mxu1 %vm6812_vm2, %v6813_v36  ;;  %5880 = vmatprep.mubr.msk.f32.mxu0 %vm6812_vm2, %v6813_v36 }
 0x911   :  { %6440 = vmatpush3.bf16.msra.mxu1 %v7501_v26  ;;  %6452 = vmatpush3.bf16.msra.mxu0 %v7503_v28 }
 0x912   :  { %6441 = vmatprep.subr.bf16.mxu1 %v6811_v11  ;;  %6453 = vmatprep.subr.bf16.mxu0 %v6811_v11 }
 0x915   :  { %6443 = vmatpush3.bf16.msra.mxu1 %v7517_v41  ;;  %6455 = vmatpush3.bf16.msra.mxu0 %v7519_v42 }
 0x916   :  { %6444 = vmatprep.subr.bf16.mxu1 %v6811_v11  ;;  %6456 = vmatprep.subr.bf16.mxu0 %v6811_v11 }
 0x919   :  { %6446 = vmatpush3.bf16.msra.mxu1 %v7529_v53  ;;  %6458 = vmatpush3.bf16.msra.mxu0 %v7531_v54 }
 0x91a   :  { %6459 = vmatprep.subr.bf16.mxu1 %v6811_v11  ;;  %6471 = vmatprep.subr.bf16.mxu0 %v6811_v11 }
 0x91c   :  { %5862 = vmatmul.mubr.msk.f32.vlgmr.msra.gmra.mrb[50].mxu1 %vm293_vm1, %v3231_v6  ;;  %5881 = vmatmul.mubr.msk.f32.vlgmr.msra.gmra.mrb[58].mxu0 %vm293_vm1, %v3231_v6  ;;  %v3969_v6 = vld [vmem:[%s7840_s14 + $0x18] sm:$0xff] }
 0x91d   :  { %6461 = vmatpush3.bf16.msra.mxu1 %v7435_v45  ;;  %6473 = vmatpush3.bf16.msra.mxu0 %v7438_v51  ;;  %v3235_v45 = vld [vmem:[#allocation2 + $0x30] sm:$0xff] }
 0x91e   :  { %6462 = vmatprep.subr.bf16.mxu1 %v6811_v11  ;;  %6474 = vmatprep.subr.bf16.mxu0 %v6811_v11 }
 0x91f   :  { %5899 = vmatprep.mubr.msk.f32.mxu1 %vm6812_vm2, %v6813_v36  ;;  %5918 = vmatprep.mubr.msk.f32.mxu0 %vm6812_vm2, %v6813_v36 }
 0x921   :  { %6464 = vmatpush3.bf16.msra.mxu1 %v7447_v27  ;;  %6476 = vmatpush3.bf16.msra.mxu0 %v7450_v29  ;;  %v3325_v27 = vld [vmem:[#allocation3 + $0x30] sm:$0xff] }
 0x922   :  { %6465 = vmatprep.subr.bf16.mxu1 %v6811_v11  ;;  %6477 = vmatprep.subr.bf16.mxu0 %v6811_v11 }
 0x925   :  { %6467 = vmatpush3.bf16.msra.mxu1 %v7456_v35  ;;  %6479 = vmatpush3.bf16.msra.mxu0 %v7461_v40 }
 0x926   :  { %6468 = vmatprep.subr.bf16.mxu1 %v6811_v11  ;;  %6480 = vmatprep.subr.bf16.mxu0 %v6811_v11 }
 0x929   :  { %6470 = vmatpush3.bf16.msra.mxu1 %v7469_v47  ;;  %6482 = vmatpush3.bf16.msra.mxu0 %v7473_v48  ;;  %v3412_v48 = vld [vmem:[#allocation4 + $0x30] sm:$0xff] }
 0x92a   :  { %6483 = vmatprep.subr.bf16.mxu1 %v6811_v11  ;;  %6495 = vmatprep.subr.bf16.mxu0 %v6811_v11 }
 0x9df   :  { %v3313_v51 = vpop.f32.mrb[48].mxu1  ;;  %v3400_v29 = vpop.f32.mrb[56].mxu0 }
 0x9e0   :  { %v3317_v7 = vadd.f32 %v3313_v51, %v3235_v45  ;;  %v3404_v35 = vadd.f32 %v3400_v29, %v3325_v27  ;;  %v5825_v8 = vpop.f32.mrb[49].mxu1  ;;  %v5844_v40 = vpop.f32.mrb[57].mxu0  ;;  %v6521_v45 = vpack.c.bf16 %v3964_v5, %v3962_v4  ;;  %v3970_v51 = vld [vmem:[%s7840_s14 + $0x20] sm:$0xff]  ;;  %v3971_v27 = vld [vmem:[%s7840_s14 + $0x28] sm:$0xff]  ;;  %v3972_v29 = vld [vmem:[%s7840_s14 + $0x30] sm:$0xff] }
 0x9e1   :  { %v3943_v8 = vld [vmem:[#allocation6 + $0x8] sm:$0xff]  ;;  %v3944_v40 = vld [vmem:[#allocation6 + $0x10] sm:$0xff]  ;;  %v3588_v4 = vld [vmem:[#allocation2 + $0x38] sm:$0xff] }
 0x9e2   :  { %v4589_v9 = vmul.f32 -1.442695, %v3317_v7  ;;  %v4591_v10 = vmul.f32 -1.442695, %v3404_v35  ;;  %v3973_v7 = vld [vmem:[%s7840_s14 + $0x38] sm:$0xff]  ;;  %v3942_v35 = vld [vmem:[#allocation6] sm:$0xff] }
 0x9e4   :  { %6702 = vpow2.f32 %v4589_v9  ;;  %v3945_v9 = vld [vmem:[#allocation6 + $0x18] sm:$0xff] }
 0x9e5   :  { %6704 = vpow2.f32 %v4591_v10  ;;  %v3946_v10 = vld [vmem:[#allocation6 + $0x20] sm:$0xff] }
 0x9ee   :  { %v6703_v15 = vpop.eup %6702 }
 0x9ef   :  { %v6705_v47 = vpop.eup %6704  ;;  %v3321_v16 = vadd.f32 1.0, %v6703_v15  ;;  %v3487_v17 = vpop.f32.mrb[50].mxu1  ;;  %v3947_v15 = vld [vmem:[#allocation6 + $0x28] sm:$0xff] }
 0x9f0   :  { %v3569_v22 = vpop.f32.mrb[58].mxu0  ;;  %v3408_v23 = vadd.f32 1.0, %v6705_v47  ;;  %v3491_v39 = vadd.f32 %v3487_v17, %v3412_v48  ;;  %v5863_v14 = vpop.f32.mrb[51].mxu1  ;;  %v4318_v48 = vld [vmem:[%s7841_s19 + $0x88] sm:$0xff] }
 0x9f1   :  { %v3573_v44 = vadd.f32 %v3569_v22, %v3494_v20  ;;  %v5882_v50 = vpop.f32.mrb[59].mxu0  ;;  %6706 = vrcp.f32 %v3321_v16  ;;  %v4317_v16 = vld [vmem:[%s7841_s19 + $0x80] sm:$0xff]  ;;  %v4302_v22 = vld [vmem:[%s7841_s19 + $0x8] sm:$0xff] }
 0x9f2   :  { %6708 = vrcp.f32 %v3408_v23  ;;  %v6523_v17 = vpack.c.bf16 %v4318_v48, %v4317_v16  ;;  %v4301_v20 = vld [vmem:[%s7841_s19] sm:$0xff]  ;;  %v4303_v50 = vld [vmem:[%s7841_s19 + $0x10] sm:$0xff]  ;;  %v3847_v16 = vld [vmem:[#allocation5 + $0x38] sm:$0xff] }
 0x9f3   :  { %v4594_v56 = vmul.f32 -1.442695, %v3573_v44  ;;  %6710 = vtanh.f32 %v3491_v39  ;;  %v6525_v23 = vpack.c.bf16 %v4302_v22, %v4301_v20  ;;  %v4319_v39 = vld [vmem:[%s7841_s19 + $0x90] sm:$0xff]  ;;  %v4320_v44 = vld [vmem:[%s7841_s19 + $0x98] sm:$0xff] }
 0x9f4   :  { %v6527_v14 = vpack.c.bf16 %v4320_v44, %v4319_v39 }
 0x9f5   :  { %6712 = vpow2.f32 %v4594_v56 }
 0x9fb   :  { %v6707_v57 = vpop.eup %6706 }
 0x9fc   :  { %v6709_v32 = vpop.eup %6708 }
 0x9fd   :  { %v6711_v33 = vpop.eup %6710  ;;  %v3580_v34 = vmul.f32 %v6709_v32, %v7611_v3  ;;  %v6519_v3 = vpack.c.bf16 %v3965_v0, %v3963_v63  ;;  %v4322_v32 = vld [vmem:[%s7841_s19 + $0xa8] sm:$0xff]  ;;  %v4332_v63 = vld [vmem:[%s7841_s19 + $0xf8] sm:$0xff] }
 0x9fe   :  { %v3581_v43 = vmul.f32 %v6711_v33, %v6707_v57  ;;  %v4321_v57 = vld [vmem:[%s7841_s19 + $0xa0] sm:$0xff]  ;;  %v6551_v0 = vpack.c.bf16 %v4332_v63, %v4331_v31 }
 0x9ff   :  { %v6713_v37 = vpop.eup %6712  ;;  %v6531_v33 = vpack.c.bf16 %v4322_v32, %v4321_v57 }
 0xa00   :  { %v3577_v46 = vadd.f32 1.0, %v6713_v37  ;;  %v7660_v49 = vadd.f32 %v3581_v43, %v3580_v34  ;;  %v4305_v34 = vld [vmem:[%s7841_s19 + $0x20] sm:$0xff]  ;;  %v4306_v37 = vld [vmem:[%s7841_s19 + $0x28] sm:$0xff] }
 0xa01   :  { %v6533_v43 = vpack.c.bf16 %v4306_v37, %v4305_v34  ;;  %v4259_v37 = vlaneseq }
 0xa02   :  { %6714 = vrcp.f32 %v3577_v46  ;;  %v4323_v46 = vld [vmem:[%s7841_s19 + $0xb0] sm:$0xff] }
 0xa03   :  { %6716 = vtanh.f32 %v7660_v49 }
 0xa0c   :  { %v6715_v52 = vpop.eup %6714 }
 0xa0d   :  { %v6717_v12 = vpop.eup %6716 }
 0xa0e   :  { %v3584_v13 = vmul.f32 %v6717_v12, %v6715_v52  ;;  %v4324_v52 = vld [vmem:[%s7841_s19 + $0xb8] sm:$0xff] }
 0xa0f   :  { %v6535_v12 = vpack.c.bf16 %v4324_v52, %v4323_v46 }
 0xa10   :  { %3586 = vst.msk [vmem:[#allocation6 + $0x30] sm:$0xff] %vm293_vm1, %v3584_v13  ;;  %5900 = vmatmul.mubr.msk.f32.vlgmr.msra.gmra.mrb[52].mxu1 %vm293_vm1, %v3584_v13  ;;  %5919 = vmatmul.mubr.msk.f32.vlgmr.msra.gmra.mrb[60].mxu0 %vm293_vm1, %v3584_v13 }
 0xa11   :  { %6485 = vmatpush3.bf16.msra.mxu1 %v7488_v38  ;;  %6497 = vmatpush3.bf16.msra.mxu0 %v7490_v21  ;;  %v3974_v38 = vld [vmem:[%s7838_s9] sm:$0xff] }
 0xa12   :  { %6486 = vmatprep.subr.bf16.mxu1 %v6811_v11  ;;  %6498 = vmatprep.subr.bf16.mxu0 %v6811_v11  ;;  %v3976_v21 = vcombine.high %v3974_v38, %v3974_v38 }
 0xa13   :  { %5937 = vmatprep.mubr.msk.f32.mxu1 %vm6812_vm2, %v6813_v36  ;;  %5956 = vmatprep.mubr.msk.f32.mxu0 %vm6812_vm2, %v6813_v36 }
 0xa15   :  { %6488 = vmatpush3.bf16.msra.mxu1 %v7501_v26  ;;  %6500 = vmatpush3.bf16.msra.mxu0 %v7503_v28  ;;  %v3951_v26 = vld [vmem:[%s7839_s17 + $0x8] sm:$0xff]  ;;  %v3953_v28 = vld [vmem:[%s7839_s17 + $0x18] sm:$0xff] }
 0xa16   :  { %6489 = vmatprep.subr.bf16.mxu1 %v6811_v11  ;;  %6501 = vmatprep.subr.bf16.mxu0 %v6811_v11  ;;  %v6507_v18 = vpack.c.bf16 %v3953_v28, %v3951_v26  ;;  %v4325_v26 = vld [vmem:[%s7841_s19 + $0xc0] sm:$0xff]  ;;  %v4326_v28 = vld [vmem:[%s7841_s19 + $0xc8] sm:$0xff] }
 0xa17   :  { %v3948_v47 = vld [vmem:[#allocation6 + $0x30] sm:$0xff] }
 0xa19   :  { %6491 = vmatpush3.bf16.msra.mxu1 %v7517_v41  ;;  %6503 = vmatpush3.bf16.msra.mxu0 %v7519_v42  ;;  %v3950_v41 = vld [vmem:[%s7839_s17] sm:$0xff]  ;;  %v3952_v42 = vld [vmem:[%s7839_s17 + $0x10] sm:$0xff] }
 0xa1a   :  { %6492 = vmatprep.subr.bf16.mxu1 %v6811_v11  ;;  %6504 = vmatprep.subr.bf16.mxu0 %v6811_v11  ;;  %v3966_v11 = vld [vmem:[%s7840_s14] sm:$0xff] }
 0xa1d   :  { %6494 = vmatpush3.bf16.msra.mxu1 %v7529_v53  ;;  %6506 = vmatpush3.bf16.msra.mxu0 %v7531_v54  ;;  %v6509_v53 = vpack.c.bf16 %v3952_v42, %v3950_v41  ;;  %v6511_v54 = vpack.c.bf16 %v3957_v55, %v3955_v19  ;;  %v4309_v41 = vld [vmem:[%s7841_s19 + $0x40] sm:$0xff]  ;;  %v4310_v42 = vld [vmem:[%s7841_s19 + $0x48] sm:$0xff]  ;;  %v4327_v55 = vld [vmem:[%s7841_s19 + $0xd0] sm:$0xff] }
 0xa1e   :  { %4602 = vmatprep.subr.msk.mxu1 %vm4002_vm3, %v3976_v21  ;;  %6524 = vmatprep.subr.bf16.mxu0 %v6523_v17  ;;  %v6541_v19 = vpack.c.bf16 %v4310_v42, %v4309_v41 }
 0xa20   :  { %5938 = vmatmul.mubr.msk.f32.vlgmr.msra.gmra.mrb[54].mxu1 %vm293_vm1, %v3584_v13  ;;  %5957 = vmatmul.mubr.msk.f32.vlgmr.msra.gmra.mrb[62].mxu0 %vm293_vm1, %v3584_v13  ;;  %v4307_v13 = vld [vmem:[%s7841_s19 + $0x30] sm:$0xff] }
 0xa21   :  { %4603 = vmatpush1.msk.msra.mxu1 %vm4002_vm3, %v3974_v38  ;;  %4071 = vmatprep.mubr.f32.mxu1 %v6813_v36  ;;  %v4308_v38 = vld [vmem:[%s7841_s19 + $0x38] sm:$0xff] }
 0xa22   :  { %6508 = vmatprep.subr.bf16.mxu1 %v6507_v18  ;;  %6526 = vmatpush3.bf16.msra.mxu0 %v6525_v23  ;;  %v6537_v21 = vpack.c.bf16 %v4308_v38, %v4307_v13  ;;  %v6539_v18 = vpack.c.bf16 %v4326_v28, %v4325_v26  ;;  %v4257_v38 = vld [vmem:[%s7842_s24] sm:$0x3] }
 0xa23   :  { %6528 = vmatprep.subr.bf16.mxu0 %v6527_v14 }
 0xa24   :  { %4604 = vmatmul.mubr.msk.f32.vlgmr.msra.gmra.mrb[56].mxu1 %vm3977_vm4, %v3966_v11  ;;  %v4328_v11 = vld [vmem:[%s7841_s19 + $0xd8] sm:$0xff] }
 0xa25   :  { %4077 = vmatprep.mubr.f32.mxu1 %v6813_v36  ;;  %6510 = vmatpush1.bf16.msra.mxu1 %v6509_v53  ;;  %v6543_v53 = vpack.c.bf16 %v4328_v11, %v4327_v55 }
 0xa26   :  { %6512 = vmatprep.subr.bf16.mxu1 %v6511_v54  ;;  %v4311_v54 = vld [vmem:[%s7841_s19 + $0x50] sm:$0xff] }
 0xa27   :  { %v6545_v58 = vpack.c.bf16 %v4312_v24, %v4311_v54 }
 0xa28   :  { %4605 = vmatmul.mubr.msk.f32.gmra.mrb[58].mxu1 %vm3977_vm4, %v3967_v60  ;;  %v6547_v60 = vpack.c.bf16 %v4330_v59, %v4329_v25 }
 0xa29   :  { %4083 = vmatprep.mubr.f32.mxu1 %v6813_v36  ;;  %6514 = vmatpush1.bf16.msra.mxu1 %v6513_v61  ;;  %v4313_v61 = vld [vmem:[%s7841_s19 + $0x60] sm:$0xff] }
 0xa2a   :  { %6516 = vmatprep.subr.bf16.mxu1 %v6515_v30  ;;  %v4314_v30 = vld [vmem:[%s7841_s19 + $0x68] sm:$0xff] }
 0xa2b   :  { %v6549_v62 = vpack.c.bf16 %v4314_v30, %v4313_v61 }
 0xa2c   :  { %4606 = vmatmul.mubr.msk.f32.gmra.mrb[60].mxu1 %vm3977_vm4, %v3968_v1  ;;  %v4315_v1 = vld [vmem:[%s7841_s19 + $0x70] sm:$0xff] }
 0xa2d   :  { %4089 = vmatprep.mubr.f32.mxu1 %v6813_v36  ;;  %6518 = vmatpush1.bf16.msra.mxu1 %v6517_v2  ;;  %v4316_v2 = vld [vmem:[%s7841_s19 + $0x78] sm:$0xff] }
 0xa2e   :  { %6520 = vmatprep.subr.bf16.mxu1 %v6519_v3  ;;  %v6553_v3 = vpack.c.bf16 %v4316_v2, %v4315_v1 }
 0xa30   :  { %4607 = vmatmul.mubr.msk.f32.gmra.mrb[62].mxu1 %vm3977_vm4, %v3969_v6  ;;  %v3678_v6 = vld [vmem:[#allocation3 + $0x38] sm:$0xff] }
 0xa31   :  { %4095 = vmatprep.mubr.f32.mxu1 %v6813_v36  ;;  %6522 = vmatpush1.bf16.msra.mxu1 %v6521_v45 }
 0xa34   :  { %4608 = vmatmul.mubr.msk.f32.gmra.mrb[64].mxu1 %vm3977_vm4, %v3970_v51 }
 0xa35   :  { %4101 = vmatprep.mubr.f32.mxu1 %v6813_v36 }
 0xa38   :  { %4609 = vmatmul.mubr.msk.f32.gmra.mrb[66].mxu1 %vm3977_vm4, %v3971_v27 }
 0xa39   :  { %4107 = vmatprep.mubr.f32.mxu1 %v6813_v36 }
 0xa3c   :  { %4610 = vmatmul.mubr.msk.f32.gmra.mrb[68].mxu1 %vm3977_vm4, %v3972_v29 }
 0xa3d   :  { %4113 = vmatprep.mubr.f32.mxu1 %v6813_v36 }
 0xa40   :  { %4611 = vmatmul.mubr.msk.f32.gmra.mrb[70].mxu1 %vm3977_vm4, %v3973_v7 }
 0xa41   :  { %4208 = vmatprep.mubr.f32.mxu1 %v6813_v36 }
 0xa44   :  { %4612 = vmatmul.mubr.msk.f32.vlgmr.msra.gmra.mrb[56].mxu1 %vm293_vm1, %v3942_v35 }
 0xa45   :  { %4214 = vmatprep.mubr.f32.mxu1 %v6813_v36 }
 0xa48   :  { %4613 = vmatmul.mubr.msk.f32.gmra.mrb[58].mxu1 %vm293_vm1, %v3943_v8 }
 0xa49   :  { %4220 = vmatprep.mubr.f32.mxu1 %v6813_v36 }
 0xa4c   :  { %4614 = vmatmul.mubr.msk.f32.gmra.mrb[60].mxu1 %vm293_vm1, %v3944_v40 }
 0xa4d   :  { %4226 = vmatprep.mubr.f32.mxu1 %v6813_v36 }
 0xa50   :  { %4615 = vmatmul.mubr.msk.f32.gmra.mrb[62].mxu1 %vm293_vm1, %v3945_v9 }
 0xa51   :  { %4232 = vmatprep.mubr.f32.mxu1 %v6813_v36 }
 0xa54   :  { %4616 = vmatmul.mubr.msk.f32.gmra.mrb[64].mxu1 %vm293_vm1, %v3946_v10 }
 0xa55   :  { %4238 = vmatprep.mubr.f32.mxu1 %v6813_v36 }
 0xa58   :  { %4617 = vmatmul.mubr.msk.f32.gmra.mrb[66].mxu1 %vm293_vm1, %v3947_v15  ;;  %v3765_v15 = vld [vmem:[#allocation4 + $0x38] sm:$0xff] }
 0xa59   :  { %4244 = vmatprep.mubr.f32.mxu1 %v6813_v36 }
 0xa5c   :  { %4618 = vmatmul.mubr.msk.f32.gmra.mrb[68].mxu1 %vm293_vm1, %v3948_v47 }
 0xa5d   :  { %4250 = vmatprep.mubr.f32.mxu1 %v6813_v36  ;;  %v4304_v36 = vld [vmem:[%s7841_s19 + $0x18] sm:$0xff] }
 0xa5e   :  { %v6529_v56 = vpack.c.bf16 %v4304_v36, %v4303_v50 }
 0xa60   :  { %6530 = vmatpush3.bf16.msra.mxu0 %v6529_v56 }
 0xa61   :  { %6532 = vmatprep.subr.bf16.mxu0 %v6531_v33 }
 0xa64   :  { %6534 = vmatpush3.bf16.msra.mxu0 %v6533_v43  ;;  %v4260_v43 = vshrl.u32 %v4259_v37, 7 }
 0xa65   :  { %6536 = vmatprep.subr.bf16.mxu0 %v6535_v12 }
 0xa66   :  { %v4261_v12 = vsub.s32 0, %v4260_v43 }
 0xa68   :  { %6538 = vmatpush3.bf16.msra.mxu0 %v6537_v21  ;;  %v4265_v21 = vsub.s32 1, %v4260_v43 }
 0xa69   :  { %6540 = vmatprep.subr.bf16.mxu0 %v6539_v18 }
 0xa6a   :  { %v4266_v26 = vrot.slane %v4257_v38, %v4265_v21 }
 0xa6c   :  { %6542 = vmatpush3.bf16.msra.mxu0 %v6541_v19 }
 0xa6d   :  { %6544 = vmatprep.subr.bf16.mxu0 %v6543_v53 }
 0xa70   :  { %6546 = vmatpush3.bf16.msra.mxu0 %v6545_v58 }
 0xa71   :  { %6548 = vmatprep.subr.bf16.mxu0 %v6547_v60 }
 0xa74   :  { %6550 = vmatpush3.bf16.msra.mxu0 %v6549_v62 }
 0xa75   :  { %6552 = vmatprep.subr.bf16.mxu0 %v6551_v0 }
 0xa78   :  { %6554 = vmatpush3.bf16.msra.mxu0 %v6553_v3 }
 0xae3   :  { %v3666_v5 = vpop.f32.mrb[52].mxu1  ;;  %v3753_v45 = vpop.f32.mrb[60].mxu0 }
 0xae4   :  { %v3670_v51 = vadd.f32 %v3666_v5, %v3588_v4  ;;  %v3757_v27 = vadd.f32 %v3753_v45, %v3678_v6  ;;  %v5901_v29 = vpop.f32.mrb[53].mxu1  ;;  %v5920_v7 = vpop.f32.mrb[61].mxu0 }
 0xae6   :  { %v4596_v35 = vmul.f32 -1.442695, %v3670_v51  ;;  %v4598_v8 = vmul.f32 -1.442695, %v3757_v27 }
 0xae8   :  { %6718 = vpow2.f32 %v4596_v35 }
 0xae9   :  { %6720 = vpow2.f32 %v4598_v8 }
 0xaf2   :  { %v6719_v40 = vpop.eup %6718 }
 0xaf3   :  { %v6721_v9 = vpop.eup %6720  ;;  %v3674_v10 = vadd.f32 1.0, %v6719_v40  ;;  %v3840_v47 = vpop.f32.mrb[54].mxu1 }
 0xaf4   :  { %v3922_v48 = vpop.f32.mrb[62].mxu0  ;;  %v3761_v17 = vadd.f32 1.0, %v6721_v9  ;;  %v3844_v20 = vadd.f32 %v3840_v47, %v3765_v15  ;;  %v5939_v23 = vpop.f32.mrb[55].mxu1 }
 0xaf5   :  { %v3926_v22 = vadd.f32 %v3922_v48, %v3847_v16  ;;  %v5958_v39 = vpop.f32.mrb[63].mxu0  ;;  %6722 = vrcp.f32 %v3674_v10 }
 0xaf6   :  { %6724 = vrcp.f32 %v3761_v17 }
 0xaf7   :  { %v4601_v44 = vmul.f32 -1.442695, %v3926_v22  ;;  %6726 = vtanh.f32 %v3844_v20 }
 0xaf9   :  { %6728 = vpow2.f32 %v4601_v44 }
 0xaff   :  { %v6723_v14 = vpop.eup %6722 }
 0xb00   :  { %v6725_v50 = vpop.eup %6724 }
 0xb01   :  { %v6727_v36 = vpop.eup %6726  ;;  %v3933_v56 = vmul.f32 %v6725_v50, %v7660_v49  ;;  %v4262_v49 = vrot.slane %v4257_v38, %v4261_v12 }
 0xb02   :  { %v3934_v32 = vmul.f32 %v6727_v36, %v6723_v14 }
 0xb03   :  { %v6729_v57 = vpop.eup %6728 }
 0xb04   :  { %v3930_v33 = vadd.f32 1.0, %v6729_v57  ;;  %v3935_v34 = vadd.f32 %v3934_v32, %v3933_v56  ;;  %v7780_v56 = vld [vmem:[#allocation7] ss:$0 sm:$0xff] }
 0xb06   :  { %6730 = vrcp.f32 %v3930_v33  ;;  %3941 = vst.msk [vmem:[#allocation10] sm:$0xff] %vm293_vm1, %v3935_v34 }
 0xb07   :  { %6732 = vtanh.f32 %v3935_v34 }
 0xb10   :  { %v6731_v46 = vpop.eup %6730 }
 0xb11   :  { %v6733_v52 = vpop.eup %6732 }
 0xb12   :  { %v3937_v13 = vmul.f32 %v6733_v52, %v6731_v46 }
 0xb14   :  { %3939 = vst.msk [vmem:[#allocation6 + $0x38] sm:$0xff] %vm293_vm1, %v3937_v13  ;;  %3940 = vst.msk [vmem:[#allocation8] sm:$0xff] %vm293_vm1, %v3937_v13 }
 0xb17   :  { %v4210_v28 = vpop.f32.mrb[56].mxu1 }
 0xb18   :  { %v4269_v18 = vadd.f32 %v4262_v49, %v4210_v28  ;;  %v4212_v41 = vpop.f32.mrb[57].mxu1 }
 0xb19   :  { %v4270_v42 = vadd.f32 %v4266_v26, %v4212_v41 }
 0xb1a   :  { %v4285_v53 = vmax.f32 %v4269_v18, 0.0 }
 0xb1b   :  { %v3949_v19 = vld [vmem:[#allocation6 + $0x38] sm:$0xff]  ;;  %v4286_v55 = vmax.f32 %v4270_v42, 0.0  ;;  %v4216_v11 = vpop.f32.mrb[58].mxu1 }
 0xb1c   :  { %4619 = vmatmul.mubr.msk.f32.gmra.mrb[70].mxu1 %vm293_vm1, %v3949_v19  ;;  %v4271_v54 = vadd.f32 %v4262_v49, %v4216_v11  ;;  %v4218_v24 = vpop.f32.mrb[59].mxu1 }
 0xb1d   :  { %v4272_v58 = vadd.f32 %v4266_v26, %v4218_v24  ;;  %4404 = vmatprep.mubr.f32.mxu0 %v4286_v55 }
 0xb1e   :  { %4405 = vmatmul.mubr.f32.vlgmr.msra.gmra.mrb[64].mxu0 %v4285_v53  ;;  %v4287_v60 = vmax.f32 %v4271_v54, 0.0 }
 0xb1f   :  { %v4288_v25 = vmax.f32 %v4272_v58, 0.0  ;;  %v4222_v59 = vpop.f32.mrb[60].mxu1 }
 0xb20   :  { %v4273_v61 = vadd.f32 %v4262_v49, %v4222_v59  ;;  %v4224_v30 = vpop.f32.mrb[61].mxu1 }
 0xb21   :  { %v4274_v62 = vadd.f32 %v4266_v26, %v4224_v30  ;;  %4409 = vmatprep.mubr.f32.mxu0 %v4288_v25 }
 0xb22   :  { %4410 = vmatmul.mubr.f32.gmra.mrb[66].mxu0 %v4287_v60  ;;  %v4289_v0 = vmax.f32 %v4273_v61, 0.0 }
 0xb23   :  { %v4290_v31 = vmax.f32 %v4274_v62, 0.0  ;;  %v4228_v63 = vpop.f32.mrb[62].mxu1 }
 0xb24   :  { %v4275_v1 = vadd.f32 %v4262_v49, %v4228_v63  ;;  %v4230_v2 = vpop.f32.mrb[63].mxu1 }
 0xb25   :  { %v4276_v3 = vadd.f32 %v4266_v26, %v4230_v2  ;;  %4414 = vmatprep.mubr.f32.mxu0 %v4290_v31 }
 0xb26   :  { %4415 = vmatmul.mubr.f32.gmra.mrb[68].mxu0 %v4289_v0  ;;  %v4291_v6 = vmax.f32 %v4275_v1, 0.0 }
 0xb27   :  { %v4292_v4 = vmax.f32 %v4276_v3, 0.0  ;;  %v4234_v5 = vpop.f32.mrb[64].mxu1 }
 0xb28   :  { %v4277_v45 = vadd.f32 %v4262_v49, %v4234_v5  ;;  %v4236_v51 = vpop.f32.mrb[65].mxu1 }
 0xb29   :  { %v4278_v27 = vadd.f32 %v4266_v26, %v4236_v51  ;;  %4419 = vmatprep.mubr.f32.mxu0 %v4292_v4 }
 0xb2a   :  { %4420 = vmatmul.mubr.f32.gmra.mrb[70].mxu0 %v4291_v6  ;;  %v4293_v35 = vmax.f32 %v4277_v45, 0.0 }
 0xb2b   :  { %v4294_v29 = vmax.f32 %v4278_v27, 0.0  ;;  %v4240_v7 = vpop.f32.mrb[66].mxu1 }
 0xb2c   :  { %v4279_v8 = vadd.f32 %v4262_v49, %v4240_v7  ;;  %v4242_v40 = vpop.f32.mrb[67].mxu1 }
 0xb2d   :  { %v4280_v9 = vadd.f32 %v4266_v26, %v4242_v40  ;;  %4424 = vmatprep.mubr.f32.mxu0 %v4294_v29 }
 0xb2e   :  { %4425 = vmatmul.mubr.f32.gmra.mrb[72].mxu0 %v4293_v35  ;;  %v4295_v47 = vmax.f32 %v4279_v8, 0.0 }
 0xb2f   :  { %v4296_v10 = vmax.f32 %v4280_v9, 0.0  ;;  %v4246_v15 = vpop.f32.mrb[68].mxu1 }
 0xb30   :  { %v4281_v16 = vadd.f32 %v4262_v49, %v4246_v15  ;;  %v4248_v48 = vpop.f32.mrb[69].mxu1 }
 0xb31   :  { %v4282_v17 = vadd.f32 %v4266_v26, %v4248_v48  ;;  %4429 = vmatprep.mubr.f32.mxu0 %v4296_v10 }
 0xb32   :  { %4430 = vmatmul.mubr.f32.gmra.mrb[74].mxu0 %v4295_v47  ;;  %v4297_v22 = vmax.f32 %v4281_v16, 0.0 }
 0xb33   :  { %v4298_v20 = vmax.f32 %v4282_v17, 0.0 }
 0xb35   :  { %4434 = vmatprep.mubr.f32.mxu0 %v4298_v20 }
 0xb36   :  { %4435 = vmatmul.mubr.f32.gmra.mrb[76].mxu0 %v4297_v22 }
 0xbef   :  { %v4252_v23 = vpop.f32.mrb[70].mxu1 }
 0xbf0   :  { %v4283_v39 = vadd.f32 %v4262_v49, %v4252_v23  ;;  %v4254_v44 = vpop.f32.mrb[71].mxu1 }
 0xbf1   :  { %v4284_v14 = vadd.f32 %v4266_v26, %v4254_v44  ;;  %v5079_v50 = vpop.f32.mrb[64].mxu0 }
 0xbf2   :  { %v5080_v57 = vpop.f32.mrb[65].mxu0  ;;  %v4299_v32 = vmax.f32 %v4283_v39, 0.0 }
 0xbf3   :  { %v4300_v36 = vmax.f32 %v4284_v14, 0.0  ;;  %v5081_v33 = vadd.f32 %v5080_v57, %v5079_v50 }
 0xbf5   :  { %4439 = vmatprep.mubr.f32.mxu0 %v4300_v36  ;;  %v4407_v34 = vadd.f32 %v5081_v33, %v7780_v56  ;;  %v5082_v37 = vpop.f32.mrb[66].mxu0 }
 0xbf6   :  { %4440 = vmatmul.mubr.f32.gmra.mrb[78].mxu0 %v4299_v32  ;;  %v5083_v43 = vpop.f32.mrb[67].mxu0 }
 0xbf7   :  { %4446 = vst.msk [vmem:[%s6957_s12] sm:$0xff] %vm4445_vm5, %v4407_v34  ;;  %v5084_v46 = vadd.f32 %v5083_v43, %v5082_v37 }
 0xbf9   :  { %v4412_v52 = vadd.f32 %v5084_v46, %v7780_v56  ;;  %v5085_v12 = vpop.f32.mrb[68].mxu0 }
 0xbfa   :  { %v5086_v13 = vpop.f32.mrb[69].mxu0 }
 0xbfb   :  { %4447 = vst.msk [vmem:[%s6957_s12 + $0x8] sm:$0xff] %vm4445_vm5, %v4412_v52  ;;  %v5087_v38 = vadd.f32 %v5086_v13, %v5085_v12 }
 0xbfd   :  { %v4417_v21 = vadd.f32 %v5087_v38, %v7780_v56  ;;  %v5088_v49 = vpop.f32.mrb[70].mxu0 }
 0xbfe   :  { %v5089_v26 = vpop.f32.mrb[71].mxu0 }
 0xbff   :  { %4448 = vst.msk [vmem:[%s6957_s12 + $0x10] sm:$0xff] %vm4445_vm5, %v4417_v21  ;;  %v5090_v28 = vadd.f32 %v5089_v26, %v5088_v49 }
 0xc01   :  { %v4422_v18 = vadd.f32 %v5090_v28, %v7780_v56  ;;  %v5091_v41 = vpop.f32.mrb[72].mxu0 }
 0xc02   :  { %v5092_v42 = vpop.f32.mrb[73].mxu0 }
 0xc03   :  { %4449 = vst.msk [vmem:[%s6957_s12 + $0x18] sm:$0xff] %vm4445_vm5, %v4422_v18  ;;  %v5093_v19 = vadd.f32 %v5092_v42, %v5091_v41 }
 0xc05   :  { %v4427_v55 = vadd.f32 %v5093_v19, %v7780_v56  ;;  %v5094_v11 = vpop.f32.mrb[74].mxu0 }
 0xc06   :  { %v5095_v53 = vpop.f32.mrb[75].mxu0 }
 0xc07   :  { %4450 = vst.msk [vmem:[%s6957_s12 + $0x20] sm:$0xff] %vm4445_vm5, %v4427_v55  ;;  %v5096_v54 = vadd.f32 %v5095_v53, %v5094_v11 }
 0xc09   :  { %v4432_v24 = vadd.f32 %v5096_v54, %v7780_v56  ;;  %v5097_v58 = vpop.f32.mrb[76].mxu0 }
 0xc0a   :  { %v5098_v25 = vpop.f32.mrb[77].mxu0 }
 0xc0b   :  { %4451 = vst.msk [vmem:[%s6957_s12 + $0x28] sm:$0xff] %vm4445_vm5, %v4432_v24  ;;  %v5099_v59 = vadd.f32 %v5098_v25, %v5097_v58 }
 0xc0d   :  { %v4437_v60 = vadd.f32 %v5099_v59, %v7780_v56 }
 0xc0f   :  { %4452 = vst.msk [vmem:[%s6957_s12 + $0x30] sm:$0xff] %vm4445_vm5, %v4437_v60 }
 0xc10   :  { %6745 = shalt.err (!%p6742_p4)
}
 0xc11   :  { %s6746_s10 = scalar_lea.hbm %s6962_s13, 128 }
 0xc12   :  { %p6747_p5 = scmp.ne.s32.totalorder %s6962_s13, %s6746_s10  ;;  %p6750_p6 = scmp.lt.u32.totalorder %s6746_s10, %s6962_s13 }
 0xc14   :  { %p6752_p7 = pnand %p6750_p6, %p6747_p5 }
 0xc16   :  { %6755 = shalt.err (!%p6752_p7)
}
 0xc17   :  { %4465 = dma.vmem_to_hbm [thread:$0]  %s4463_s6, 128, %s6962_s13, [#allocation9]  }
 0xc18   :  { %s6756_s11 = scalar_lea.vmem %s4473_s27, 128  ;;  %p6761_p9 = scmp.lt.s32.totalorder %s4473_s27, %s4473_s27 }
 0xc19   :  { %p6757_p8 = scmp.ne.s32.totalorder %s4473_s27, %s6756_s11  ;;  %p6762_p10 = scmp.lt.s32.totalorder %s6756_s11, %s6756_s11 }
 0xc1b   :  { %p6763_p11 = por %p6762_p10, %p6761_p9 }
 0xc1d   :  { %p6764_p12 = pnand %p6763_p11, %p6757_p8 }
 0xc1f   :  { %6767 = shalt.err (!%p6764_p12)
}
 0xc20   :  { %s6768_s16 = scalar_lea.hbm %s6967_s4, 128 }
 0xc21   :  { %p6769_p13 = scmp.ne.s32.totalorder %s6967_s4, %s6768_s16  ;;  %p6772_p0 = scmp.lt.u32.totalorder %s6768_s16, %s6967_s4 }
 0xc23   :  { %p6774_p1 = pnand %p6772_p0, %p6769_p13 }
 0xc25   :  { %6777 = shalt.err (!%p6774_p1)
}
 0xc26   :  { %4475 = dma.vmem_to_hbm [thread:$0]  %s4473_s27, 128, %s6967_s4, [#allocation11]  }
 0xcc9   :  { %v5100_v61 = vpop.f32.mrb[78].mxu0 }
 0xcca   :  { %v5101_v30 = vpop.f32.mrb[79].mxu0 }
 0xccb   :  { %v5102_v62 = vadd.f32 %v5101_v30, %v5100_v61 }
 0xccd   :  { %v4442_v31 = vadd.f32 %v5102_v62, %v7780_v56 }
 0xccf   :  { %4453 = vst.msk [vmem:[%s6957_s12 + $0x38] sm:$0xff] %vm4445_vm5, %v4442_v31 }
 0xcd0   :  { %6778 = dma.done.wait [#allocation9], 128  }
 0xcd1   :  { %6779 = vsyncadd [#allocation9], 4294967168 }
 0xcd2   :  { %6780 = dma.done.wait [#allocation11], 128  }
 0xcd3   :  { %6781 = vsyncadd [#allocation11], 4294967168 }
 0xcd4   :  { %4484 = vsyncpa [#allocation9], 1 }
 0xcd5   :  { %4485 = vsyncpa [#allocation11], 1 }

</bundles_post_ra>
